<compile_context>
chip_gen: v6e
topology: v6e:2x2x1
jax: 0.10.0
libtpu: 0.0.40
codegen_flags: <defaults>
</compile_context>

<pallas_src>
import jax
import jax.numpy as jnp
from jax.experimental import pallas as pl
from jax.experimental.pallas import tpu as pltpu


# ------------------------------ fused kernel -------------------------------

def _make_kernel(N, H, W, C1, C2, eps=1e-5, slope=0.2):
    OH2, OW2 = H // 4, W // 4          # conv2 output spatial
    OH3, OW3 = H // 8, W // 8          # conv3 output spatial
    Z2R, Z2C = OH2 + 1, OW2 + 1        # space-to-depth grid of padded conv1 output
    CB1 = 4 * C1                       # z2 channels: (pi, pj, c1)
    # z2 rows are stored column-parity-split: even cell columns first, then odd.
    # Start position of the run C = 2*b + s (b = 0..OW3-1) for s in {0, 1, 2}:
    col_start = {0: 0, 1: OW3 + 1, 2: 1}

    def kernel(a1_ref, w1_ref, w2_ref, b2_ref, g_ref, beta_ref, w3_ref, b3_ref,
               avg_ref, o_ref, z2_ref, a2_ref, y2_ref, a3_ref):
        # ---- conv1: one 256-lane-wide MXU GEMM.  Bias and the zero padding of
        #      the conv1 activation are folded into the block-diagonal weight,
        #      so the GEMM output is exactly z2 = space-to-depth(2) of the
        #      padded leaky_relu(conv1(x)).  Single full-width store.
        y1 = jnp.dot(a1_ref[...], w1_ref[...], preferred_element_type=jnp.float32)
        y1 = jnp.where(y1 > 0, y1, slope * y1)
        z2_ref[...] = y1.astype(z2_ref.dtype)

        # ---- gather z2 -> conv2 im2col A2 (rows ordered by conv2-output parity).
        #      Every copy is a contiguous run of OW3 rows x 256 lanes starting at
        #      a 256-aligned column.
        for pe_h in range(2):
            for pe_w in range(2):
                grp = pe_h * 2 + pe_w
                for dR in range(2):
                    for dC in range(2):
                        c0 = (dR * 2 + dC) * CB1
                        cs = col_start[pe_w + dC]
                        for n in range(N):
                            for a in range(OH3):
                                src = (n * Z2R + (2 * a + pe_h + dR)) * Z2C + cs
                                dst = ((grp * N + n) * OH3 + a) * OW3
                                a2_ref[dst:dst + OW3, c0:c0 + CB1] = \
                                    z2_ref[src:src + OW3, :]

        # ---- conv2 GEMM (bf16, K = 16*C1, out width = C2) + bias + BatchNorm
        #      (training-mode batch stats, biased variance) + leaky_relu.
        y2 = jnp.dot(a2_ref[...], w2_ref[...], preferred_element_type=jnp.float32)
        y2 = y2 + b2_ref[...]
        mu = jnp.mean(y2, axis=0, keepdims=True)
        var = jnp.mean((y2 - mu) ** 2, axis=0, keepdims=True)
        y2 = (y2 - mu) * jax.lax.rsqrt(var + eps)
        y2 = y2 * g_ref[...] + beta_ref[...]
        y2 = jnp.where(y2 > 0, y2, slope * y2)
        y2_ref[...] = y2.astype(y2_ref.dtype)

        # ---- scatter y2 (parity-ordered rows) -> conv3 im2col A3.  Contiguous
        #      row runs at 256-aligned columns; the zero init provides conv3's
        #      zero-padding halo.
        # TODO(synk): zero only the halo and convert these nests to lax.fori_loop
        # (and an M-tiled grid) when scaling beyond toy shapes.
        a3_ref[...] = jnp.zeros_like(a3_ref)
        for dR in range(2):
            for dC in range(2):
                for pi in range(2):
                    for pj in range(2):
                        c0 = (((dR * 2 + dC) * 2 + pi) * 2 + pj) * C2
                        g = (1 - pi) * 2 + (1 - pj)          # source parity group
                        sh = dR + pi - 1
                        sw = dC + pj - 1
                        oh_lo, oh_hi = max(0, -sh), OH3 - max(0, sh)
                        ow_lo, ow_hi = max(0, -sw), OW3 - max(0, sw)
                        cnt = ow_hi - ow_lo
                        if cnt <= 0 or oh_hi <= oh_lo:
                            continue
                        for n in range(N):
                            for oh3 in range(oh_lo, oh_hi):
                                src = ((g * N + n) * OH3 + (oh3 + sh)) * OW3 + (ow_lo + sw)
                                dst = (n * OH3 + oh3) * OW3 + ow_lo
                                a3_ref[dst:dst + cnt, c0:c0 + C2] = \
                                    y2_ref[src:src + cnt, :]

        # ---- conv3 as one MXU GEMM (K = 16*C2; the single output channel sits
        #      in lane 0 of a 128-wide weight), fused sigmoid and per-sample
        #      patch mean via a tiny averaging matmul (no serial add chain).
        l3 = jnp.dot(a3_ref[...], w3_ref[...], preferred_element_type=jnp.float32)
        patch = jax.nn.sigmoid(l3 + b3_ref[...])             # (N*NWIN, 128); lane 0 valid
        out = jnp.dot(avg_ref[...], patch, preferred_element_type=jnp.float32)
        o_ref[...] = out[:, 0:1]

    return kernel


# --------------------------- wrapper-side packing ---------------------------

def _build_conv1_operand(x_nhw):
    """im2col of x for conv1 with rows ordered as z2's rows (n, R, parity-split C)
    and columns = 4 parity blocks x 16 (kh,kw) taps + 4 validity (bias) columns,
    zero-padded to K = 128 and to an 8-row multiple."""
    N, H, W = x_nhw.shape
    OH1, OW1 = H // 2, W // 2
    OH2, OW2 = H // 4, W // 4
    Z2R, Z2C = OH2 + 1, OW2 + 1
    xp = jnp.pad(x_nhw, ((0, 0), (3, 3), (3, 3)))
    R = jnp.arange(Z2R)
    Cc = jnp.arange(Z2C)
    pi = jnp.arange(2)
    pj = jnp.arange(2)
    kh = jnp.arange(4)
    kw = jnp.arange(4)
    ridx = 4 * R[:, None, None] + 2 * pi[None, :, None] + kh[None, None, :]    # (Z2R,2,4)
    cidx = 4 * Cc[:, None, None] + 2 * pj[None, :, None] + kw[None, None, :]   # (Z2C,2,4)
    patches = xp[:, ridx[:, :, :, None, None, None], cidx[None, None, None, :, :, :]]
    patches = patches.transpose(0, 1, 4, 2, 5, 3, 6)       # (n, R, C, pi, pj, kh, kw)
    oh1 = 2 * R[:, None] + pi[None, :] - 1                  # conv1 out row of (R, pi)
    ow1 = 2 * Cc[:, None] + pj[None, :] - 1
    vr = (oh1 >= 0) & (oh1 < OH1)
    vc = (ow1 >= 0) & (ow1 < OW1)
    valid = (vr[:, :, None, None] & vc[None, None, :, :]).transpose(0, 2, 1, 3)
    validf = valid.astype(x_nhw.dtype)                      # (Z2R, Z2C, 2, 2)
    patches = patches * validf[None, :, :, :, :, None, None]
    blocks = patches.reshape(N, Z2R, Z2C, 64)               # (pi,pj,kh,kw) flattened
    vcols = jnp.broadcast_to(validf.reshape(1, Z2R, Z2C, 4), (N, Z2R, Z2C, 4))
    feat = jnp.concatenate([blocks, vcols], axis=-1)        # (N, Z2R, Z2C, 68)
    order = jnp.concatenate([jnp.arange(0, Z2C, 2), jnp.arange(1, Z2C, 2)])
    feat = feat[:, :, order, :].reshape(N * Z2R * Z2C, 68)  # column-parity-split rows
    m1 = N * Z2R * Z2C
    m1p = ((m1 + 7) // 8) * 8
    feat = jnp.pad(feat, ((0, m1p - m1), (0, 128 - 68)))
    return feat.astype(jnp.bfloat16)


def _build_conv1_weight(conv1_w, conv1_b):
    """Block-diagonal (128, 4*C1) weight: parity block (pi,pj) of the input maps
    to output channel block (pi,pj); rows 64..67 carry the bias via the validity
    columns; rows 68..127 are zero padding."""
    C1 = conv1_w.shape[0]
    w1k = conv1_w.reshape(C1, 16).T                          # (kh*4+kw, c1)
    W1 = jnp.zeros((128, 4 * C1), jnp.float32)
    for blk in range(4):
        W1 = W1.at[blk * 16:(blk + 1) * 16, blk * C1:(blk + 1) * C1].set(w1k)
        W1 = W1.at[64 + blk, blk * C1:(blk + 1) * C1].set(conv1_b)
    return W1.astype(jnp.bfloat16)


def patch_discriminator_forward(params, x):
    """x: (N, 1, H, W) float32 -> (N,) float32.  Training-mode BatchNorm."""
    N, Cin, H, W = x.shape
    assert Cin == 1 and H % 8 == 0 and W % 8 == 0
    C1 = params["conv1_w"].shape[0]          # d // 2
    C2 = params["conv2_w"].shape[0]          # 2 * d
    OH2, OW2 = H // 4, W // 4
    OH3, OW3 = H // 8, W // 8
    NWIN = OH3 * OW3
    Z2R, Z2C = OH2 + 1, OW2 + 1
    M1 = ((N * Z2R * Z2C + 7) // 8) * 8
    M2 = N * OH2 * OW2
    NW = N * NWIN

    # One-time (XLA-fused) repacking of input and weights, channel-last.
    a1 = _build_conv1_operand(x[:, 0])
    w1m = _build_conv1_weight(params["conv1_w"], params["conv1_b"])
    # conv2 weight rows ordered (dR, dC, pi, pj, ic) with kh = 2*dR+pi, kw = 2*dC+pj.
    w2m = (params["conv2_w"].reshape(C2, C1, 2, 2, 2, 2)
           .transpose(2, 4, 3, 5, 1, 0).reshape(16 * C1, C2).astype(jnp.bfloat16))
    # conv3 weight rows ordered (dR, dC, pi, pj, c2); single output channel in lane 0.
    w3flat = (params["conv3_w"][0].reshape(C2, 2, 2, 2, 2)
              .transpose(1, 3, 2, 4, 0).reshape(16 * C2))
    w3m = jnp.zeros((16 * C2, 128), jnp.float32).at[:, 0].set(w3flat).astype(jnp.bfloat16)
    b2 = params["conv2_b"].reshape(1, C2).astype(jnp.float32)
    gm = params["bn2_gamma"].reshape(1, C2).astype(jnp.float32)
    bt = params["bn2_beta"].reshape(1, C2).astype(jnp.float32)
    b3 = params["conv3_b"].reshape(1, 1).astype(jnp.float32)
    avg = jnp.repeat(jnp.eye(N, dtype=jnp.float32), NWIN, axis=1) / float(NWIN)

    kernel = _make_kernel(N, H, W, C1, C2)
    vmem = lambda: pl.BlockSpec(memory_space=pltpu.MemorySpace.VMEM)

    flops = 2 * (M1 * 128 * 4 * C1 + M2 * 16 * C1 * C2 + NW * 16 * C2 * 128 + N * NW * 128)
    bytes_accessed = sum(int(t.size) * t.dtype.itemsize
                         for t in (a1, w1m, w2m, b2, gm, bt, w3m, b3, avg)) + N * 4

    out = pl.pallas_call(
        kernel,
        out_shape=jax.ShapeDtypeStruct((N, 1), jnp.float32),
        in_specs=[vmem() for _ in range(9)],
        out_specs=vmem(),
        scratch_shapes=[
            pltpu.VMEM((M1, 4 * C1), jnp.bfloat16),     # z2: s2d(2) of padded conv1 out
            pltpu.VMEM((M2, 16 * C1), jnp.bfloat16),    # A2: conv2 im2col
            pltpu.VMEM((M2, C2), jnp.bfloat16),         # y2: conv2 activation (parity rows)
            pltpu.VMEM((NW, 16 * C2), jnp.bfloat16),    # A3: conv3 im2col
        ],
        compiler_params=pltpu.CompilerParams(vmem_limit_bytes=32 * 1024 * 1024),
        cost_estimate=pl.CostEstimate(flops=flops,
                                      transcendentals=NW * 128 + C2,
                                      bytes_accessed=bytes_accessed),
    )(a1, w1m, w2m, b2, gm, bt, w3m, b3, avg)
    return out[:, 0]


# ----------------------------- reference / init -----------------------------

def reference_forward(params, x, eps=1e-5, slope=0.2):
    """Pure-JAX reference of the PyTorch module's (train-mode) forward."""
    dn = ("NCHW", "OIHW", "NCHW")
    hi = jax.lax.Precision.HIGHEST
    y = jax.lax.conv_general_dilated(x, params["conv1_w"], (2, 2), ((1, 1), (1, 1)),
                                     dimension_numbers=dn, precision=hi)
    y = y + params["conv1_b"][None, :, None, None]
    y = jnp.where(y > 0, y, slope * y)
    y = jax.lax.conv_general_dilated(y, params["conv2_w"], (2, 2), ((1, 1), (1, 1)),
                                     dimension_numbers=dn, precision=hi)
    y = y + params["conv2_b"][None, :, None, None]
    mu = jnp.mean(y, axis=(0, 2, 3), keepdims=True)
    var = jnp.mean((y - mu) ** 2, axis=(0, 2, 3), keepdims=True)
    y = (y - mu) * jax.lax.rsqrt(var + eps)
    y = y * params["bn2_gamma"][None, :, None, None] + params["bn2_beta"][None, :, None, None]
    y = jnp.where(y > 0, y, slope * y)
    y = jax.lax.conv_general_dilated(y, params["conv3_w"], (2, 2), ((1, 1), (1, 1)),
                                     dimension_numbers=dn, precision=hi)
    y = y + params["conv3_b"][None, :, None, None]
    return jax.nn.sigmoid(y).reshape(x.shape[0], -1).mean(axis=1)


def init_params(key, d=128, std=0.02):
    k1, k2, k3, k4, k5, k6, k7, k8 = jax.random.split(key, 8)
    C1, C2 = d // 2, d * 2
    return {
        "conv1_w": jax.random.normal(k1, (C1, 1, 4, 4), jnp.float32) * std,
        "conv1_b": jax.random.normal(k4, (C1,), jnp.float32) * 0.05,
        "conv2_w": jax.random.normal(k2, (C2, C1, 4, 4), jnp.float32) * std,
        "conv2_b": jax.random.normal(k5, (C2,), jnp.float32) * 0.05,
        "bn2_gamma": 1.0 + 0.1 * jax.random.normal(k6, (C2,), jnp.float32),
        "bn2_beta": 0.1 * jax.random.normal(k7, (C2,), jnp.float32),
        "conv3_w": jax.random.normal(k3, (1, C2, 4, 4), jnp.float32) * std,
        "conv3_b": 0.1 * jax.random.normal(k8, (1,), jnp.float32),
    }


if __name__ == "__main__":
    key = jax.random.PRNGKey(0)
    pkey, xkey = jax.random.split(key)
    params = init_params(pkey, d=128)
    x = jax.random.normal(xkey, (2, 1, 16, 16), jnp.float32)

    out = jax.block_until_ready(jax.jit(patch_discriminator_forward)(params, x))
    ref = jax.block_until_ready(jax.jit(reference_forward)(params, x))

    assert out.shape == (2,) and out.dtype == jnp.float32
    assert bool(jnp.all(jnp.isfinite(out)))
    assert bool(jnp.all((out >= 0.0) & (out <= 1.0)))      # sigmoid-mean range
    err = float(jnp.max(jnp.abs(out - ref)))
    assert err < 3e-2, f"kernel/reference mismatch: max abs err = {err}"
    print("KERNEL_OK")
</pallas_src>

<mosaic_0001>
module attributes {stable_mosaic.version = 11 : i64} {
  func.func @kernel(%arg0: memref<56x128xbf16, #tpu.memory_space<vmem>>, %arg1: memref<128x256xbf16, #tpu.memory_space<vmem>>, %arg2: memref<1024x256xbf16, #tpu.memory_space<vmem>>, %arg3: memref<1x256xf32, #tpu.memory_space<vmem>>, %arg4: memref<1x256xf32, #tpu.memory_space<vmem>>, %arg5: memref<1x256xf32, #tpu.memory_space<vmem>>, %arg6: memref<4096x128xbf16, #tpu.memory_space<vmem>>, %arg7: memref<1x1xf32, #tpu.memory_space<vmem>>, %arg8: memref<2x8xf32, #tpu.memory_space<vmem>>, %arg9: memref<2x1xf32, #tpu.memory_space<vmem>>, %arg10: memref<56x256xbf16, #tpu.memory_space<vmem>>, %arg11: memref<32x1024xbf16, #tpu.memory_space<vmem>>, %arg12: memref<32x256xbf16, #tpu.memory_space<vmem>>, %arg13: memref<8x4096xbf16, #tpu.memory_space<vmem>>) attributes {dimension_semantics = [], scalar_prefetch = 0 : i64, scratch_operands = 4 : i64, tpu.core_type = #tpu.core_type<tc>} {
    %c0 = arith.constant 0 : index
    %c0_0 = arith.constant 0 : index
    %0 = vector.load %arg0[%c0, %c0_0] : memref<56x128xbf16, #tpu.memory_space<vmem>>, vector<56x128xbf16>
    %c0_1 = arith.constant 0 : index
    %c0_2 = arith.constant 0 : index
    %1 = vector.load %arg1[%c0_1, %c0_2] : memref<128x256xbf16, #tpu.memory_space<vmem>>, vector<128x256xbf16>
    %cst = arith.constant dense<0.000000e+00> : vector<56x256xf32>
    %2 = tpu.matmul %0, %1, %cst {dimension_numbers = #tpu.dot_dimension_numbers<[1], [0], [0], [1], [0, 0, 1, 1], [], []>} : vector<56x128xbf16>, vector<128x256xbf16>, vector<56x256xf32> -> vector<56x256xf32>
    %cst_3 = arith.constant 0.000000e+00 : f32
    %3 = vector.broadcast %cst_3 : f32 to vector<56x256xf32>
    %4 = arith.cmpf ogt, %2, %3 : vector<56x256xf32>
    %cst_4 = arith.constant 2.000000e-01 : f32
    %5 = vector.broadcast %cst_4 : f32 to vector<56x256xf32>
    %6 = arith.mulf %5, %2 : vector<56x256xf32>
    %7 = arith.select %4, %2, %6 : vector<56x256xi1>, vector<56x256xf32>
    %8 = arith.truncf %7 : vector<56x256xf32> to vector<56x256xbf16>
    %c0_5 = arith.constant 0 : index
    %c0_6 = arith.constant 0 : index
    %9 = vector.load %arg10[%c0_5, %c0_6] : memref<56x256xbf16, #tpu.memory_space<vmem>>, vector<56x256xbf16>
    tpu.vector_store %arg10[%c0_5, %c0_6], %8 {strides = array<i32>} : memref<56x256xbf16, #tpu.memory_space<vmem>>, vector<56x256xbf16>,
    %c0_7 = arith.constant 0 : index
    %c0_8 = arith.constant 0 : index
    %10 = vector.load %arg10[%c0_7, %c0_8] : memref<56x256xbf16, #tpu.memory_space<vmem>>, vector<2x256xbf16>
    %c0_9 = arith.constant 0 : index
    %c0_10 = arith.constant 0 : index
    %11 = vector.load %arg11[%c0_9, %c0_10] : memref<32x1024xbf16, #tpu.memory_space<vmem>>, vector<2x256xbf16>
    tpu.vector_store %arg11[%c0_9, %c0_10], %10 {strides = array<i32>} : memref<32x1024xbf16, #tpu.memory_space<vmem>>, vector<2x256xbf16>,
    %c10 = arith.constant 10 : index
    %c0_11 = arith.constant 0 : index
    %12 = vector.load %arg10[%c10, %c0_11] : memref<56x256xbf16, #tpu.memory_space<vmem>>, vector<2x256xbf16>
    %c2 = arith.constant 2 : index
    %c0_12 = arith.constant 0 : index
    %13 = vector.load %arg11[%c2, %c0_12] : memref<32x1024xbf16, #tpu.memory_space<vmem>>, vector<2x256xbf16>
    tpu.vector_store %arg11[%c2, %c0_12], %12 {strides = array<i32>} : memref<32x1024xbf16, #tpu.memory_space<vmem>>, vector<2x256xbf16>,
    %c25 = arith.constant 25 : index
    %c0_13 = arith.constant 0 : index
    %14 = vector.load %arg10[%c25, %c0_13] : memref<56x256xbf16, #tpu.memory_space<vmem>>, vector<2x256xbf16>
    %c4 = arith.constant 4 : index
    %c0_14 = arith.constant 0 : index
    %15 = vector.load %arg11[%c4, %c0_14] : memref<32x1024xbf16, #tpu.memory_space<vmem>>, vector<2x256xbf16>
    tpu.vector_store %arg11[%c4, %c0_14], %14 {strides = array<i32>} : memref<32x1024xbf16, #tpu.memory_space<vmem>>, vector<2x256xbf16>,
    %c35 = arith.constant 35 : index
    %c0_15 = arith.constant 0 : index
    %16 = vector.load %arg10[%c35, %c0_15] : memref<56x256xbf16, #tpu.memory_space<vmem>>, vector<2x256xbf16>
    %c6 = arith.constant 6 : index
    %c0_16 = arith.constant 0 : index
    %17 = vector.load %arg11[%c6, %c0_16] : memref<32x1024xbf16, #tpu.memory_space<vmem>>, vector<2x256xbf16>
    tpu.vector_store %arg11[%c6, %c0_16], %16 {strides = array<i32>} : memref<32x1024xbf16, #tpu.memory_space<vmem>>, vector<2x256xbf16>,
    %c3 = arith.constant 3 : index
    %c0_17 = arith.constant 0 : index
    %18 = vector.load %arg10[%c3, %c0_17] : memref<56x256xbf16, #tpu.memory_space<vmem>>, vector<2x256xbf16>
    %c0_18 = arith.constant 0 : index
    %c256 = arith.constant 256 : index
    %19 = vector.load %arg11[%c0_18, %c256] : memref<32x1024xbf16, #tpu.memory_space<vmem>>, vector<2x256xbf16>
    tpu.vector_store %arg11[%c0_18, %c256], %18 {strides = array<i32>} : memref<32x1024xbf16, #tpu.memory_space<vmem>>, vector<2x256xbf16>,
    %c13 = arith.constant 13 : index
    %c0_19 = arith.constant 0 : index
    %20 = vector.load %arg10[%c13, %c0_19] : memref<56x256xbf16, #tpu.memory_space<vmem>>, vector<2x256xbf16>
    %c2_20 = arith.constant 2 : index
    %c256_21 = arith.constant 256 : index
    %21 = vector.load %arg11[%c2_20, %c256_21] : memref<32x1024xbf16, #tpu.memory_space<vmem>>, vector<2x256xbf16>
    tpu.vector_store %arg11[%c2_20, %c256_21], %20 {strides = array<i32>} : memref<32x1024xbf16, #tpu.memory_space<vmem>>, vector<2x256xbf16>,
    %c28 = arith.constant 28 : index
    %c0_22 = arith.constant 0 : index
    %22 = vector.load %arg10[%c28, %c0_22] : memref<56x256xbf16, #tpu.memory_space<vmem>>, vector<2x256xbf16>
    %c4_23 = arith.constant 4 : index
    %c256_24 = arith.constant 256 : index
    %23 = vector.load %arg11[%c4_23, %c256_24] : memref<32x1024xbf16, #tpu.memory_space<vmem>>, vector<2x256xbf16>
    tpu.vector_store %arg11[%c4_23, %c256_24], %22 {strides = array<i32>} : memref<32x1024xbf16, #tpu.memory_space<vmem>>, vector<2x256xbf16>,
    %c38 = arith.constant 38 : index
    %c0_25 = arith.constant 0 : index
    %24 = vector.load %arg10[%c38, %c0_25] : memref<56x256xbf16, #tpu.memory_space<vmem>>, vector<2x256xbf16>
    %c6_26 = arith.constant 6 : index
    %c256_27 = arith.constant 256 : index
    %25 = vector.load %arg11[%c6_26, %c256_27] : memref<32x1024xbf16, #tpu.memory_space<vmem>>, vector<2x256xbf16>
    tpu.vector_store %arg11[%c6_26, %c256_27], %24 {strides = array<i32>} : memref<32x1024xbf16, #tpu.memory_space<vmem>>, vector<2x256xbf16>,
    %c5 = arith.constant 5 : index
    %c0_28 = arith.constant 0 : index
    %26 = vector.load %arg10[%c5, %c0_28] : memref<56x256xbf16, #tpu.memory_space<vmem>>, vector<2x256xbf16>
    %c0_29 = arith.constant 0 : index
    %c512 = arith.constant 512 : index
    %27 = vector.load %arg11[%c0_29, %c512] : memref<32x1024xbf16, #tpu.memory_space<vmem>>, vector<2x256xbf16>
    tpu.vector_store %arg11[%c0_29, %c512], %26 {strides = array<i32>} : memref<32x1024xbf16, #tpu.memory_space<vmem>>, vector<2x256xbf16>,
    %c15 = arith.constant 15 : index
    %c0_30 = arith.constant 0 : index
    %28 = vector.load %arg10[%c15, %c0_30] : memref<56x256xbf16, #tpu.memory_space<vmem>>, vector<2x256xbf16>
    %c2_31 = arith.constant 2 : index
    %c512_32 = arith.constant 512 : index
    %29 = vector.load %arg11[%c2_31, %c512_32] : memref<32x1024xbf16, #tpu.memory_space<vmem>>, vector<2x256xbf16>
    tpu.vector_store %arg11[%c2_31, %c512_32], %28 {strides = array<i32>} : memref<32x1024xbf16, #tpu.memory_space<vmem>>, vector<2x256xbf16>,
    %c30 = arith.constant 30 : index
    %c0_33 = arith.constant 0 : index
    %30 = vector.load %arg10[%c30, %c0_33] : memref<56x256xbf16, #tpu.memory_space<vmem>>, vector<2x256xbf16>
    %c4_34 = arith.constant 4 : index
    %c512_35 = arith.constant 512 : index
    %31 = vector.load %arg11[%c4_34, %c512_35] : memref<32x1024xbf16, #tpu.memory_space<vmem>>, vector<2x256xbf16>
    tpu.vector_store %arg11[%c4_34, %c512_35], %30 {strides = array<i32>} : memref<32x1024xbf16, #tpu.memory_space<vmem>>, vector<2x256xbf16>,
    %c40 = arith.constant 40 : index
    %c0_36 = arith.constant 0 : index
    %32 = vector.load %arg10[%c40, %c0_36] : memref<56x256xbf16, #tpu.memory_space<vmem>>, vector<2x256xbf16>
    %c6_37 = arith.constant 6 : index
    %c512_38 = arith.constant 512 : index
    %33 = vector.load %arg11[%c6_37, %c512_38] : memref<32x1024xbf16, #tpu.memory_space<vmem>>, vector<2x256xbf16>
    tpu.vector_store %arg11[%c6_37, %c512_38], %32 {strides = array<i32>} : memref<32x1024xbf16, #tpu.memory_space<vmem>>, vector<2x256xbf16>,
    %c8 = arith.constant 8 : index
    %c0_39 = arith.constant 0 : index
    %34 = vector.load %arg10[%c8, %c0_39] : memref<56x256xbf16, #tpu.memory_space<vmem>>, vector<2x256xbf16>
    %c0_40 = arith.constant 0 : index
    %c768 = arith.constant 768 : index
    %35 = vector.load %arg11[%c0_40, %c768] : memref<32x1024xbf16, #tpu.memory_space<vmem>>, vector<2x256xbf16>
    tpu.vector_store %arg11[%c0_40, %c768], %34 {strides = array<i32>} : memref<32x1024xbf16, #tpu.memory_space<vmem>>, vector<2x256xbf16>,
    %c18 = arith.constant 18 : index
    %c0_41 = arith.constant 0 : index
    %36 = vector.load %arg10[%c18, %c0_41] : memref<56x256xbf16, #tpu.memory_space<vmem>>, vector<2x256xbf16>
    %c2_42 = arith.constant 2 : index
    %c768_43 = arith.constant 768 : index
    %37 = vector.load %arg11[%c2_42, %c768_43] : memref<32x1024xbf16, #tpu.memory_space<vmem>>, vector<2x256xbf16>
    tpu.vector_store %arg11[%c2_42, %c768_43], %36 {strides = array<i32>} : memref<32x1024xbf16, #tpu.memory_space<vmem>>, vector<2x256xbf16>,
    %c33 = arith.constant 33 : index
    %c0_44 = arith.constant 0 : index
    %38 = vector.load %arg10[%c33, %c0_44] : memref<56x256xbf16, #tpu.memory_space<vmem>>, vector<2x256xbf16>
    %c4_45 = arith.constant 4 : index
    %c768_46 = arith.constant 768 : index
    %39 = vector.load %arg11[%c4_45, %c768_46] : memref<32x1024xbf16, #tpu.memory_space<vmem>>, vector<2x256xbf16>
    tpu.vector_store %arg11[%c4_45, %c768_46], %38 {strides = array<i32>} : memref<32x1024xbf16, #tpu.memory_space<vmem>>, vector<2x256xbf16>,
    %c43 = arith.constant 43 : index
    %c0_47 = arith.constant 0 : index
    %40 = vector.load %arg10[%c43, %c0_47] : memref<56x256xbf16, #tpu.memory_space<vmem>>, vector<2x256xbf16>
    %c6_48 = arith.constant 6 : index
    %c768_49 = arith.constant 768 : index
    %41 = vector.load %arg11[%c6_48, %c768_49] : memref<32x1024xbf16, #tpu.memory_space<vmem>>, vector<2x256xbf16>
    tpu.vector_store %arg11[%c6_48, %c768_49], %40 {strides = array<i32>} : memref<32x1024xbf16, #tpu.memory_space<vmem>>, vector<2x256xbf16>,
    %c3_50 = arith.constant 3 : index
    %c0_51 = arith.constant 0 : index
    %42 = vector.load %arg10[%c3_50, %c0_51] : memref<56x256xbf16, #tpu.memory_space<vmem>>, vector<2x256xbf16>
    %c8_52 = arith.constant 8 : index
    %c0_53 = arith.constant 0 : index
    %43 = vector.load %arg11[%c8_52, %c0_53] : memref<32x1024xbf16, #tpu.memory_space<vmem>>, vector<2x256xbf16>
    tpu.vector_store %arg11[%c8_52, %c0_53], %42 {strides = array<i32>} : memref<32x1024xbf16, #tpu.memory_space<vmem>>, vector<2x256xbf16>,
    %c13_54 = arith.constant 13 : index
    %c0_55 = arith.constant 0 : index
    %44 = vector.load %arg10[%c13_54, %c0_55] : memref<56x256xbf16, #tpu.memory_space<vmem>>, vector<2x256xbf16>
    %c10_56 = arith.constant 10 : index
    %c0_57 = arith.constant 0 : index
    %45 = vector.load %arg11[%c10_56, %c0_57] : memref<32x1024xbf16, #tpu.memory_space<vmem>>, vector<2x256xbf16>
    tpu.vector_store %arg11[%c10_56, %c0_57], %44 {strides = array<i32>} : memref<32x1024xbf16, #tpu.memory_space<vmem>>, vector<2x256xbf16>,
    %c28_58 = arith.constant 28 : index
    %c0_59 = arith.constant 0 : index
    %46 = vector.load %arg10[%c28_58, %c0_59] : memref<56x256xbf16, #tpu.memory_space<vmem>>, vector<2x256xbf16>
    %c12 = arith.constant 12 : index
    %c0_60 = arith.constant 0 : index
    %47 = vector.load %arg11[%c12, %c0_60] : memref<32x1024xbf16, #tpu.memory_space<vmem>>, vector<2x256xbf16>
    tpu.vector_store %arg11[%c12, %c0_60], %46 {strides = array<i32>} : memref<32x1024xbf16, #tpu.memory_space<vmem>>, vector<2x256xbf16>,
    %c38_61 = arith.constant 38 : index
    %c0_62 = arith.constant 0 : index
    %48 = vector.load %arg10[%c38_61, %c0_62] : memref<56x256xbf16, #tpu.memory_space<vmem>>, vector<2x256xbf16>
    %c14 = arith.constant 14 : index
    %c0_63 = arith.constant 0 : index
    %49 = vector.load %arg11[%c14, %c0_63] : memref<32x1024xbf16, #tpu.memory_space<vmem>>, vector<2x256xbf16>
    tpu.vector_store %arg11[%c14, %c0_63], %48 {strides = array<i32>} : memref<32x1024xbf16, #tpu.memory_space<vmem>>, vector<2x256xbf16>,
    %c1 = arith.constant 1 : index
    %c0_64 = arith.constant 0 : index
    %50 = vector.load %arg10[%c1, %c0_64] : memref<56x256xbf16, #tpu.memory_space<vmem>>, vector<2x256xbf16>
    %c8_65 = arith.constant 8 : index
    %c256_66 = arith.constant 256 : index
    %51 = vector.load %arg11[%c8_65, %c256_66] : memref<32x1024xbf16, #tpu.memory_space<vmem>>, vector<2x256xbf16>
    tpu.vector_store %arg11[%c8_65, %c256_66], %50 {strides = array<i32>} : memref<32x1024xbf16, #tpu.memory_space<vmem>>, vector<2x256xbf16>,
    %c11 = arith.constant 11 : index
    %c0_67 = arith.constant 0 : index
    %52 = vector.load %arg10[%c11, %c0_67] : memref<56x256xbf16, #tpu.memory_space<vmem>>, vector<2x256xbf16>
    %c10_68 = arith.constant 10 : index
    %c256_69 = arith.constant 256 : index
    %53 = vector.load %arg11[%c10_68, %c256_69] : memref<32x1024xbf16, #tpu.memory_space<vmem>>, vector<2x256xbf16>
    tpu.vector_store %arg11[%c10_68, %c256_69], %52 {strides = array<i32>} : memref<32x1024xbf16, #tpu.memory_space<vmem>>, vector<2x256xbf16>,
    %c26 = arith.constant 26 : index
    %c0_70 = arith.constant 0 : index
    %54 = vector.load %arg10[%c26, %c0_70] : memref<56x256xbf16, #tpu.memory_space<vmem>>, vector<2x256xbf16>
    %c12_71 = arith.constant 12 : index
    %c256_72 = arith.constant 256 : index
    %55 = vector.load %arg11[%c12_71, %c256_72] : memref<32x1024xbf16, #tpu.memory_space<vmem>>, vector<2x256xbf16>
    tpu.vector_store %arg11[%c12_71, %c256_72], %54 {strides = array<i32>} : memref<32x1024xbf16, #tpu.memory_space<vmem>>, vector<2x256xbf16>,
    %c36 = arith.constant 36 : index
    %c0_73 = arith.constant 0 : index
    %56 = vector.load %arg10[%c36, %c0_73] : memref<56x256xbf16, #tpu.memory_space<vmem>>, vector<2x256xbf16>
    %c14_74 = arith.constant 14 : index
    %c256_75 = arith.constant 256 : index
    %57 = vector.load %arg11[%c14_74, %c256_75] : memref<32x1024xbf16, #tpu.memory_space<vmem>>, vector<2x256xbf16>
    tpu.vector_store %arg11[%c14_74, %c256_75], %56 {strides = array<i32>} : memref<32x1024xbf16, #tpu.memory_space<vmem>>, vector<2x256xbf16>,
    %c8_76 = arith.constant 8 : index
    %c0_77 = arith.constant 0 : index
    %58 = vector.load %arg10[%c8_76, %c0_77] : memref<56x256xbf16, #tpu.memory_space<vmem>>, vector<2x256xbf16>
    %c8_78 = arith.constant 8 : index
    %c512_79 = arith.constant 512 : index
    %59 = vector.load %arg11[%c8_78, %c512_79] : memref<32x1024xbf16, #tpu.memory_space<vmem>>, vector<2x256xbf16>
    tpu.vector_store %arg11[%c8_78, %c512_79], %58 {strides = array<i32>} : memref<32x1024xbf16, #tpu.memory_space<vmem>>, vector<2x256xbf16>,
    %c18_80 = arith.constant 18 : index
    %c0_81 = arith.constant 0 : index
    %60 = vector.load %arg10[%c18_80, %c0_81] : memref<56x256xbf16, #tpu.memory_space<vmem>>, vector<2x256xbf16>
    %c10_82 = arith.constant 10 : index
    %c512_83 = arith.constant 512 : index
    %61 = vector.load %arg11[%c10_82, %c512_83] : memref<32x1024xbf16, #tpu.memory_space<vmem>>, vector<2x256xbf16>
    tpu.vector_store %arg11[%c10_82, %c512_83], %60 {strides = array<i32>} : memref<32x1024xbf16, #tpu.memory_space<vmem>>, vector<2x256xbf16>,
    %c33_84 = arith.constant 33 : index
    %c0_85 = arith.constant 0 : index
    %62 = vector.load %arg10[%c33_84, %c0_85] : memref<56x256xbf16, #tpu.memory_space<vmem>>, vector<2x256xbf16>
    %c12_86 = arith.constant 12 : index
    %c512_87 = arith.constant 512 : index
    %63 = vector.load %arg11[%c12_86, %c512_87] : memref<32x1024xbf16, #tpu.memory_space<vmem>>, vector<2x256xbf16>
    tpu.vector_store %arg11[%c12_86, %c512_87], %62 {strides = array<i32>} : memref<32x1024xbf16, #tpu.memory_space<vmem>>, vector<2x256xbf16>,
    %c43_88 = arith.constant 43 : index
    %c0_89 = arith.constant 0 : index
    %64 = vector.load %arg10[%c43_88, %c0_89] : memref<56x256xbf16, #tpu.memory_space<vmem>>, vector<2x256xbf16>
    %c14_90 = arith.constant 14 : index
    %c512_91 = arith.constant 512 : index
    %65 = vector.load %arg11[%c14_90, %c512_91] : memref<32x1024xbf16, #tpu.memory_space<vmem>>, vector<2x256xbf16>
    tpu.vector_store %arg11[%c14_90, %c512_91], %64 {strides = array<i32>} : memref<32x1024xbf16, #tpu.memory_space<vmem>>, vector<2x256xbf16>,
    %c6_92 = arith.constant 6 : index
    %c0_93 = arith.constant 0 : index
    %66 = vector.load %arg10[%c6_92, %c0_93] : memref<56x256xbf16, #tpu.memory_space<vmem>>, vector<2x256xbf16>
    %c8_94 = arith.constant 8 : index
    %c768_95 = arith.constant 768 : index
    %67 = vector.load %arg11[%c8_94, %c768_95] : memref<32x1024xbf16, #tpu.memory_space<vmem>>, vector<2x256xbf16>
    tpu.vector_store %arg11[%c8_94, %c768_95], %66 {strides = array<i32>} : memref<32x1024xbf16, #tpu.memory_space<vmem>>, vector<2x256xbf16>,
    %c16 = arith.constant 16 : index
    %c0_96 = arith.constant 0 : index
    %68 = vector.load %arg10[%c16, %c0_96] : memref<56x256xbf16, #tpu.memory_space<vmem>>, vector<2x256xbf16>
    %c10_97 = arith.constant 10 : index
    %c768_98 = arith.constant 768 : index
    %69 = vector.load %arg11[%c10_97, %c768_98] : memref<32x1024xbf16, #tpu.memory_space<vmem>>, vector<2x256xbf16>
    tpu.vector_store %arg11[%c10_97, %c768_98], %68 {strides = array<i32>} : memref<32x1024xbf16, #tpu.memory_space<vmem>>, vector<2x256xbf16>,
    %c31 = arith.constant 31 : index
    %c0_99 = arith.constant 0 : index
    %70 = vector.load %arg10[%c31, %c0_99] : memref<56x256xbf16, #tpu.memory_space<vmem>>, vector<2x256xbf16>
    %c12_100 = arith.constant 12 : index
    %c768_101 = arith.constant 768 : index
    %71 = vector.load %arg11[%c12_100, %c768_101] : memref<32x1024xbf16, #tpu.memory_space<vmem>>, vector<2x256xbf16>
    tpu.vector_store %arg11[%c12_100, %c768_101], %70 {strides = array<i32>} : memref<32x1024xbf16, #tpu.memory_space<vmem>>, vector<2x256xbf16>,
    %c41 = arith.constant 41 : index
    %c0_102 = arith.constant 0 : index
    %72 = vector.load %arg10[%c41, %c0_102] : memref<56x256xbf16, #tpu.memory_space<vmem>>, vector<2x256xbf16>
    %c14_103 = arith.constant 14 : index
    %c768_104 = arith.constant 768 : index
    %73 = vector.load %arg11[%c14_103, %c768_104] : memref<32x1024xbf16, #tpu.memory_space<vmem>>, vector<2x256xbf16>
    tpu.vector_store %arg11[%c14_103, %c768_104], %72 {strides = array<i32>} : memref<32x1024xbf16, #tpu.memory_space<vmem>>, vector<2x256xbf16>,
    %c5_105 = arith.constant 5 : index
    %c0_106 = arith.constant 0 : index
    %74 = vector.load %arg10[%c5_105, %c0_106] : memref<56x256xbf16, #tpu.memory_space<vmem>>, vector<2x256xbf16>
    %c16_107 = arith.constant 16 : index
    %c0_108 = arith.constant 0 : index
    %75 = vector.load %arg11[%c16_107, %c0_108] : memref<32x1024xbf16, #tpu.memory_space<vmem>>, vector<2x256xbf16>
    tpu.vector_store %arg11[%c16_107, %c0_108], %74 {strides = array<i32>} : memref<32x1024xbf16, #tpu.memory_space<vmem>>, vector<2x256xbf16>,
    %c15_109 = arith.constant 15 : index
    %c0_110 = arith.constant 0 : index
    %76 = vector.load %arg10[%c15_109, %c0_110] : memref<56x256xbf16, #tpu.memory_space<vmem>>, vector<2x256xbf16>
    %c18_111 = arith.constant 18 : index
    %c0_112 = arith.constant 0 : index
    %77 = vector.load %arg11[%c18_111, %c0_112] : memref<32x1024xbf16, #tpu.memory_space<vmem>>, vector<2x256xbf16>
    tpu.vector_store %arg11[%c18_111, %c0_112], %76 {strides = array<i32>} : memref<32x1024xbf16, #tpu.memory_space<vmem>>, vector<2x256xbf16>,
    %c30_113 = arith.constant 30 : index
    %c0_114 = arith.constant 0 : index
    %78 = vector.load %arg10[%c30_113, %c0_114] : memref<56x256xbf16, #tpu.memory_space<vmem>>, vector<2x256xbf16>
    %c20 = arith.constant 20 : index
    %c0_115 = arith.constant 0 : index
    %79 = vector.load %arg11[%c20, %c0_115] : memref<32x1024xbf16, #tpu.memory_space<vmem>>, vector<2x256xbf16>
    tpu.vector_store %arg11[%c20, %c0_115], %78 {strides = array<i32>} : memref<32x1024xbf16, #tpu.memory_space<vmem>>, vector<2x256xbf16>,
    %c40_116 = arith.constant 40 : index
    %c0_117 = arith.constant 0 : index
    %80 = vector.load %arg10[%c40_116, %c0_117] : memref<56x256xbf16, #tpu.memory_space<vmem>>, vector<2x256xbf16>
    %c22 = arith.constant 22 : index
    %c0_118 = arith.constant 0 : index
    %81 = vector.load %arg11[%c22, %c0_118] : memref<32x1024xbf16, #tpu.memory_space<vmem>>, vector<2x256xbf16>
    tpu.vector_store %arg11[%c22, %c0_118], %80 {strides = array<i32>} : memref<32x1024xbf16, #tpu.memory_space<vmem>>, vector<2x256xbf16>,
    %c8_119 = arith.constant 8 : index
    %c0_120 = arith.constant 0 : index
    %82 = vector.load %arg10[%c8_119, %c0_120] : memref<56x256xbf16, #tpu.memory_space<vmem>>, vector<2x256xbf16>
    %c16_121 = arith.constant 16 : index
    %c256_122 = arith.constant 256 : index
    %83 = vector.load %arg11[%c16_121, %c256_122] : memref<32x1024xbf16, #tpu.memory_space<vmem>>, vector<2x256xbf16>
    tpu.vector_store %arg11[%c16_121, %c256_122], %82 {strides = array<i32>} : memref<32x1024xbf16, #tpu.memory_space<vmem>>, vector<2x256xbf16>,
    %c18_123 = arith.constant 18 : index
    %c0_124 = arith.constant 0 : index
    %84 = vector.load %arg10[%c18_123, %c0_124] : memref<56x256xbf16, #tpu.memory_space<vmem>>, vector<2x256xbf16>
    %c18_125 = arith.constant 18 : index
    %c256_126 = arith.constant 256 : index
    %85 = vector.load %arg11[%c18_125, %c256_126] : memref<32x1024xbf16, #tpu.memory_space<vmem>>, vector<2x256xbf16>
    tpu.vector_store %arg11[%c18_125, %c256_126], %84 {strides = array<i32>} : memref<32x1024xbf16, #tpu.memory_space<vmem>>, vector<2x256xbf16>,
    %c33_127 = arith.constant 33 : index
    %c0_128 = arith.constant 0 : index
    %86 = vector.load %arg10[%c33_127, %c0_128] : memref<56x256xbf16, #tpu.memory_space<vmem>>, vector<2x256xbf16>
    %c20_129 = arith.constant 20 : index
    %c256_130 = arith.constant 256 : index
    %87 = vector.load %arg11[%c20_129, %c256_130] : memref<32x1024xbf16, #tpu.memory_space<vmem>>, vector<2x256xbf16>
    tpu.vector_store %arg11[%c20_129, %c256_130], %86 {strides = array<i32>} : memref<32x1024xbf16, #tpu.memory_space<vmem>>, vector<2x256xbf16>,
    %c43_131 = arith.constant 43 : index
    %c0_132 = arith.constant 0 : index
    %88 = vector.load %arg10[%c43_131, %c0_132] : memref<56x256xbf16, #tpu.memory_space<vmem>>, vector<2x256xbf16>
    %c22_133 = arith.constant 22 : index
    %c256_134 = arith.constant 256 : index
    %89 = vector.load %arg11[%c22_133, %c256_134] : memref<32x1024xbf16, #tpu.memory_space<vmem>>, vector<2x256xbf16>
    tpu.vector_store %arg11[%c22_133, %c256_134], %88 {strides = array<i32>} : memref<32x1024xbf16, #tpu.memory_space<vmem>>, vector<2x256xbf16>,
    %c10_135 = arith.constant 10 : index
    %c0_136 = arith.constant 0 : index
    %90 = vector.load %arg10[%c10_135, %c0_136] : memref<56x256xbf16, #tpu.memory_space<vmem>>, vector<2x256xbf16>
    %c16_137 = arith.constant 16 : index
    %c512_138 = arith.constant 512 : index
    %91 = vector.load %arg11[%c16_137, %c512_138] : memref<32x1024xbf16, #tpu.memory_space<vmem>>, vector<2x256xbf16>
    tpu.vector_store %arg11[%c16_137, %c512_138], %90 {strides = array<i32>} : memref<32x1024xbf16, #tpu.memory_space<vmem>>, vector<2x256xbf16>,
    %c20_139 = arith.constant 20 : index
    %c0_140 = arith.constant 0 : index
    %92 = vector.load %arg10[%c20_139, %c0_140] : memref<56x256xbf16, #tpu.memory_space<vmem>>, vector<2x256xbf16>
    %c18_141 = arith.constant 18 : index
    %c512_142 = arith.constant 512 : index
    %93 = vector.load %arg11[%c18_141, %c512_142] : memref<32x1024xbf16, #tpu.memory_space<vmem>>, vector<2x256xbf16>
    tpu.vector_store %arg11[%c18_141, %c512_142], %92 {strides = array<i32>} : memref<32x1024xbf16, #tpu.memory_space<vmem>>, vector<2x256xbf16>,
    %c35_143 = arith.constant 35 : index
    %c0_144 = arith.constant 0 : index
    %94 = vector.load %arg10[%c35_143, %c0_144] : memref<56x256xbf16, #tpu.memory_space<vmem>>, vector<2x256xbf16>
    %c20_145 = arith.constant 20 : index
    %c512_146 = arith.constant 512 : index
    %95 = vector.load %arg11[%c20_145, %c512_146] : memref<32x1024xbf16, #tpu.memory_space<vmem>>, vector<2x256xbf16>
    tpu.vector_store %arg11[%c20_145, %c512_146], %94 {strides = array<i32>} : memref<32x1024xbf16, #tpu.memory_space<vmem>>, vector<2x256xbf16>,
    %c45 = arith.constant 45 : index
    %c0_147 = arith.constant 0 : index
    %96 = vector.load %arg10[%c45, %c0_147] : memref<56x256xbf16, #tpu.memory_space<vmem>>, vector<2x256xbf16>
    %c22_148 = arith.constant 22 : index
    %c512_149 = arith.constant 512 : index
    %97 = vector.load %arg11[%c22_148, %c512_149] : memref<32x1024xbf16, #tpu.memory_space<vmem>>, vector<2x256xbf16>
    tpu.vector_store %arg11[%c22_148, %c512_149], %96 {strides = array<i32>} : memref<32x1024xbf16, #tpu.memory_space<vmem>>, vector<2x256xbf16>,
    %c13_150 = arith.constant 13 : index
    %c0_151 = arith.constant 0 : index
    %98 = vector.load %arg10[%c13_150, %c0_151] : memref<56x256xbf16, #tpu.memory_space<vmem>>, vector<2x256xbf16>
    %c16_152 = arith.constant 16 : index
    %c768_153 = arith.constant 768 : index
    %99 = vector.load %arg11[%c16_152, %c768_153] : memref<32x1024xbf16, #tpu.memory_space<vmem>>, vector<2x256xbf16>
    tpu.vector_store %arg11[%c16_152, %c768_153], %98 {strides = array<i32>} : memref<32x1024xbf16, #tpu.memory_space<vmem>>, vector<2x256xbf16>,
    %c23 = arith.constant 23 : index
    %c0_154 = arith.constant 0 : index
    %100 = vector.load %arg10[%c23, %c0_154] : memref<56x256xbf16, #tpu.memory_space<vmem>>, vector<2x256xbf16>
    %c18_155 = arith.constant 18 : index
    %c768_156 = arith.constant 768 : index
    %101 = vector.load %arg11[%c18_155, %c768_156] : memref<32x1024xbf16, #tpu.memory_space<vmem>>, vector<2x256xbf16>
    tpu.vector_store %arg11[%c18_155, %c768_156], %100 {strides = array<i32>} : memref<32x1024xbf16, #tpu.memory_space<vmem>>, vector<2x256xbf16>,
    %c38_157 = arith.constant 38 : index
    %c0_158 = arith.constant 0 : index
    %102 = vector.load %arg10[%c38_157, %c0_158] : memref<56x256xbf16, #tpu.memory_space<vmem>>, vector<2x256xbf16>
    %c20_159 = arith.constant 20 : index
    %c768_160 = arith.constant 768 : index
    %103 = vector.load %arg11[%c20_159, %c768_160] : memref<32x1024xbf16, #tpu.memory_space<vmem>>, vector<2x256xbf16>
    tpu.vector_store %arg11[%c20_159, %c768_160], %102 {strides = array<i32>} : memref<32x1024xbf16, #tpu.memory_space<vmem>>, vector<2x256xbf16>,
    %c48 = arith.constant 48 : index
    %c0_161 = arith.constant 0 : index
    %104 = vector.load %arg10[%c48, %c0_161] : memref<56x256xbf16, #tpu.memory_space<vmem>>, vector<2x256xbf16>
    %c22_162 = arith.constant 22 : index
    %c768_163 = arith.constant 768 : index
    %105 = vector.load %arg11[%c22_162, %c768_163] : memref<32x1024xbf16, #tpu.memory_space<vmem>>, vector<2x256xbf16>
    tpu.vector_store %arg11[%c22_162, %c768_163], %104 {strides = array<i32>} : memref<32x1024xbf16, #tpu.memory_space<vmem>>, vector<2x256xbf16>,
    %c8_164 = arith.constant 8 : index
    %c0_165 = arith.constant 0 : index
    %106 = vector.load %arg10[%c8_164, %c0_165] : memref<56x256xbf16, #tpu.memory_space<vmem>>, vector<2x256xbf16>
    %c24 = arith.constant 24 : index
    %c0_166 = arith.constant 0 : index
    %107 = vector.load %arg11[%c24, %c0_166] : memref<32x1024xbf16, #tpu.memory_space<vmem>>, vector<2x256xbf16>
    tpu.vector_store %arg11[%c24, %c0_166], %106 {strides = array<i32>} : memref<32x1024xbf16, #tpu.memory_space<vmem>>, vector<2x256xbf16>,
    %c18_167 = arith.constant 18 : index
    %c0_168 = arith.constant 0 : index
    %108 = vector.load %arg10[%c18_167, %c0_168] : memref<56x256xbf16, #tpu.memory_space<vmem>>, vector<2x256xbf16>
    %c26_169 = arith.constant 26 : index
    %c0_170 = arith.constant 0 : index
    %109 = vector.load %arg11[%c26_169, %c0_170] : memref<32x1024xbf16, #tpu.memory_space<vmem>>, vector<2x256xbf16>
    tpu.vector_store %arg11[%c26_169, %c0_170], %108 {strides = array<i32>} : memref<32x1024xbf16, #tpu.memory_space<vmem>>, vector<2x256xbf16>,
    %c33_171 = arith.constant 33 : index
    %c0_172 = arith.constant 0 : index
    %110 = vector.load %arg10[%c33_171, %c0_172] : memref<56x256xbf16, #tpu.memory_space<vmem>>, vector<2x256xbf16>
    %c28_173 = arith.constant 28 : index
    %c0_174 = arith.constant 0 : index
    %111 = vector.load %arg11[%c28_173, %c0_174] : memref<32x1024xbf16, #tpu.memory_space<vmem>>, vector<2x256xbf16>
    tpu.vector_store %arg11[%c28_173, %c0_174], %110 {strides = array<i32>} : memref<32x1024xbf16, #tpu.memory_space<vmem>>, vector<2x256xbf16>,
    %c43_175 = arith.constant 43 : index
    %c0_176 = arith.constant 0 : index
    %112 = vector.load %arg10[%c43_175, %c0_176] : memref<56x256xbf16, #tpu.memory_space<vmem>>, vector<2x256xbf16>
    %c30_177 = arith.constant 30 : index
    %c0_178 = arith.constant 0 : index
    %113 = vector.load %arg11[%c30_177, %c0_178] : memref<32x1024xbf16, #tpu.memory_space<vmem>>, vector<2x256xbf16>
    tpu.vector_store %arg11[%c30_177, %c0_178], %112 {strides = array<i32>} : memref<32x1024xbf16, #tpu.memory_space<vmem>>, vector<2x256xbf16>,
    %c6_179 = arith.constant 6 : index
    %c0_180 = arith.constant 0 : index
    %114 = vector.load %arg10[%c6_179, %c0_180] : memref<56x256xbf16, #tpu.memory_space<vmem>>, vector<2x256xbf16>
    %c24_181 = arith.constant 24 : index
    %c256_182 = arith.constant 256 : index
    %115 = vector.load %arg11[%c24_181, %c256_182] : memref<32x1024xbf16, #tpu.memory_space<vmem>>, vector<2x256xbf16>
    tpu.vector_store %arg11[%c24_181, %c256_182], %114 {strides = array<i32>} : memref<32x1024xbf16, #tpu.memory_space<vmem>>, vector<2x256xbf16>,
    %c16_183 = arith.constant 16 : index
    %c0_184 = arith.constant 0 : index
    %116 = vector.load %arg10[%c16_183, %c0_184] : memref<56x256xbf16, #tpu.memory_space<vmem>>, vector<2x256xbf16>
    %c26_185 = arith.constant 26 : index
    %c256_186 = arith.constant 256 : index
    %117 = vector.load %arg11[%c26_185, %c256_186] : memref<32x1024xbf16, #tpu.memory_space<vmem>>, vector<2x256xbf16>
    tpu.vector_store %arg11[%c26_185, %c256_186], %116 {strides = array<i32>} : memref<32x1024xbf16, #tpu.memory_space<vmem>>, vector<2x256xbf16>,
    %c31_187 = arith.constant 31 : index
    %c0_188 = arith.constant 0 : index
    %118 = vector.load %arg10[%c31_187, %c0_188] : memref<56x256xbf16, #tpu.memory_space<vmem>>, vector<2x256xbf16>
    %c28_189 = arith.constant 28 : index
    %c256_190 = arith.constant 256 : index
    %119 = vector.load %arg11[%c28_189, %c256_190] : memref<32x1024xbf16, #tpu.memory_space<vmem>>, vector<2x256xbf16>
    tpu.vector_store %arg11[%c28_189, %c256_190], %118 {strides = array<i32>} : memref<32x1024xbf16, #tpu.memory_space<vmem>>, vector<2x256xbf16>,
    %c41_191 = arith.constant 41 : index
    %c0_192 = arith.constant 0 : index
    %120 = vector.load %arg10[%c41_191, %c0_192] : memref<56x256xbf16, #tpu.memory_space<vmem>>, vector<2x256xbf16>
    %c30_193 = arith.constant 30 : index
    %c256_194 = arith.constant 256 : index
    %121 = vector.load %arg11[%c30_193, %c256_194] : memref<32x1024xbf16, #tpu.memory_space<vmem>>, vector<2x256xbf16>
    tpu.vector_store %arg11[%c30_193, %c256_194], %120 {strides = array<i32>} : memref<32x1024xbf16, #tpu.memory_space<vmem>>, vector<2x256xbf16>,
    %c13_195 = arith.constant 13 : index
    %c0_196 = arith.constant 0 : index
    %122 = vector.load %arg10[%c13_195, %c0_196] : memref<56x256xbf16, #tpu.memory_space<vmem>>, vector<2x256xbf16>
    %c24_197 = arith.constant 24 : index
    %c512_198 = arith.constant 512 : index
    %123 = vector.load %arg11[%c24_197, %c512_198] : memref<32x1024xbf16, #tpu.memory_space<vmem>>, vector<2x256xbf16>
    tpu.vector_store %arg11[%c24_197, %c512_198], %122 {strides = array<i32>} : memref<32x1024xbf16, #tpu.memory_space<vmem>>, vector<2x256xbf16>,
    %c23_199 = arith.constant 23 : index
    %c0_200 = arith.constant 0 : index
    %124 = vector.load %arg10[%c23_199, %c0_200] : memref<56x256xbf16, #tpu.memory_space<vmem>>, vector<2x256xbf16>
    %c26_201 = arith.constant 26 : index
    %c512_202 = arith.constant 512 : index
    %125 = vector.load %arg11[%c26_201, %c512_202] : memref<32x1024xbf16, #tpu.memory_space<vmem>>, vector<2x256xbf16>
    tpu.vector_store %arg11[%c26_201, %c512_202], %124 {strides = array<i32>} : memref<32x1024xbf16, #tpu.memory_space<vmem>>, vector<2x256xbf16>,
    %c38_203 = arith.constant 38 : index
    %c0_204 = arith.constant 0 : index
    %126 = vector.load %arg10[%c38_203, %c0_204] : memref<56x256xbf16, #tpu.memory_space<vmem>>, vector<2x256xbf16>
    %c28_205 = arith.constant 28 : index
    %c512_206 = arith.constant 512 : index
    %127 = vector.load %arg11[%c28_205, %c512_206] : memref<32x1024xbf16, #tpu.memory_space<vmem>>, vector<2x256xbf16>
    tpu.vector_store %arg11[%c28_205, %c512_206], %126 {strides = array<i32>} : memref<32x1024xbf16, #tpu.memory_space<vmem>>, vector<2x256xbf16>,
    %c48_207 = arith.constant 48 : index
    %c0_208 = arith.constant 0 : index
    %128 = vector.load %arg10[%c48_207, %c0_208] : memref<56x256xbf16, #tpu.memory_space<vmem>>, vector<2x256xbf16>
    %c30_209 = arith.constant 30 : index
    %c512_210 = arith.constant 512 : index
    %129 = vector.load %arg11[%c30_209, %c512_210] : memref<32x1024xbf16, #tpu.memory_space<vmem>>, vector<2x256xbf16>
    tpu.vector_store %arg11[%c30_209, %c512_210], %128 {strides = array<i32>} : memref<32x1024xbf16, #tpu.memory_space<vmem>>, vector<2x256xbf16>,
    %c11_211 = arith.constant 11 : index
    %c0_212 = arith.constant 0 : index
    %130 = vector.load %arg10[%c11_211, %c0_212] : memref<56x256xbf16, #tpu.memory_space<vmem>>, vector<2x256xbf16>
    %c24_213 = arith.constant 24 : index
    %c768_214 = arith.constant 768 : index
    %131 = vector.load %arg11[%c24_213, %c768_214] : memref<32x1024xbf16, #tpu.memory_space<vmem>>, vector<2x256xbf16>
    tpu.vector_store %arg11[%c24_213, %c768_214], %130 {strides = array<i32>} : memref<32x1024xbf16, #tpu.memory_space<vmem>>, vector<2x256xbf16>,
    %c21 = arith.constant 21 : index
    %c0_215 = arith.constant 0 : index
    %132 = vector.load %arg10[%c21, %c0_215] : memref<56x256xbf16, #tpu.memory_space<vmem>>, vector<2x256xbf16>
    %c26_216 = arith.constant 26 : index
    %c768_217 = arith.constant 768 : index
    %133 = vector.load %arg11[%c26_216, %c768_217] : memref<32x1024xbf16, #tpu.memory_space<vmem>>, vector<2x256xbf16>
    tpu.vector_store %arg11[%c26_216, %c768_217], %132 {strides = array<i32>} : memref<32x1024xbf16, #tpu.memory_space<vmem>>, vector<2x256xbf16>,
    %c36_218 = arith.constant 36 : index
    %c0_219 = arith.constant 0 : index
    %134 = vector.load %arg10[%c36_218, %c0_219] : memref<56x256xbf16, #tpu.memory_space<vmem>>, vector<2x256xbf16>
    %c28_220 = arith.constant 28 : index
    %c768_221 = arith.constant 768 : index
    %135 = vector.load %arg11[%c28_220, %c768_221] : memref<32x1024xbf16, #tpu.memory_space<vmem>>, vector<2x256xbf16>
    tpu.vector_store %arg11[%c28_220, %c768_221], %134 {strides = array<i32>} : memref<32x1024xbf16, #tpu.memory_space<vmem>>, vector<2x256xbf16>,
    %c46 = arith.constant 46 : index
    %c0_222 = arith.constant 0 : index
    %136 = vector.load %arg10[%c46, %c0_222] : memref<56x256xbf16, #tpu.memory_space<vmem>>, vector<2x256xbf16>
    %c30_223 = arith.constant 30 : index
    %c768_224 = arith.constant 768 : index
    %137 = vector.load %arg11[%c30_223, %c768_224] : memref<32x1024xbf16, #tpu.memory_space<vmem>>, vector<2x256xbf16>
    tpu.vector_store %arg11[%c30_223, %c768_224], %136 {strides = array<i32>} : memref<32x1024xbf16, #tpu.memory_space<vmem>>, vector<2x256xbf16>,
    %c0_225 = arith.constant 0 : index
    %c0_226 = arith.constant 0 : index
    %138 = vector.load %arg11[%c0_225, %c0_226] : memref<32x1024xbf16, #tpu.memory_space<vmem>>, vector<32x1024xbf16>
    %c0_227 = arith.constant 0 : index
    %c0_228 = arith.constant 0 : index
    %139 = vector.load %arg2[%c0_227, %c0_228] : memref<1024x256xbf16, #tpu.memory_space<vmem>>, vector<1024x256xbf16>
    %cst_229 = arith.constant dense<0.000000e+00> : vector<32x256xf32>
    %140 = tpu.matmul %138, %139, %cst_229 {dimension_numbers = #tpu.dot_dimension_numbers<[1], [0], [0], [1], [0, 0, 1, 1], [], []>} : vector<32x1024xbf16>, vector<1024x256xbf16>, vector<32x256xf32> -> vector<32x256xf32>
    %c0_230 = arith.constant 0 : index
    %c0_231 = arith.constant 0 : index
    %141 = vector.load %arg3[%c0_230, %c0_231] : memref<1x256xf32, #tpu.memory_space<vmem>>, vector<1x256xf32>
    %142 = vector.broadcast %141 : vector<1x256xf32> to vector<32x256xf32>
    %143 = arith.addf %140, %142 : vector<32x256xf32>
    %cst_232 = arith.constant dense<0.000000e+00> : vector<256xf32>
    %144 = vector.multi_reduction <add>, %143, %cst_232 [0] : vector<32x256xf32> to vector<256xf32>
    %145 = vector.shape_cast %144 : vector<256xf32> to vector<1x256xf32>
    %cst_233 = arith.constant 3.200000e+01 : f32
    %146 = vector.broadcast %cst_233 : f32 to vector<1x256xf32>
    %147 = arith.divf %145, %146 : vector<1x256xf32>
    %148 = vector.broadcast %147 : vector<1x256xf32> to vector<32x256xf32>
    %149 = arith.subf %143, %148 : vector<32x256xf32>
    %150 = arith.mulf %149, %149 : vector<32x256xf32>
    %cst_234 = arith.constant dense<0.000000e+00> : vector<256xf32>
    %151 = vector.multi_reduction <add>, %150, %cst_234 [0] : vector<32x256xf32> to vector<256xf32>
    %152 = vector.shape_cast %151 : vector<256xf32> to vector<1x256xf32>
    %cst_235 = arith.constant 3.200000e+01 : f32
    %153 = vector.broadcast %cst_235 : f32 to vector<1x256xf32>
    %154 = arith.divf %152, %153 : vector<1x256xf32>
    %155 = vector.broadcast %147 : vector<1x256xf32> to vector<32x256xf32>
    %156 = arith.subf %143, %155 : vector<32x256xf32>
    %cst_236 = arith.constant 9.99999974E-6 : f32
    %157 = vector.broadcast %cst_236 : f32 to vector<1x256xf32>
    %158 = arith.addf %154, %157 : vector<1x256xf32>
    %159 = math.rsqrt %158 : vector<1x256xf32>
    %160 = vector.broadcast %159 : vector<1x256xf32> to vector<32x256xf32>
    %161 = arith.mulf %156, %160 : vector<32x256xf32>
    %c0_237 = arith.constant 0 : index
    %c0_238 = arith.constant 0 : index
    %162 = vector.load %arg4[%c0_237, %c0_238] : memref<1x256xf32, #tpu.memory_space<vmem>>, vector<1x256xf32>
    %163 = vector.broadcast %162 : vector<1x256xf32> to vector<32x256xf32>
    %164 = arith.mulf %161, %163 : vector<32x256xf32>
    %c0_239 = arith.constant 0 : index
    %c0_240 = arith.constant 0 : index
    %165 = vector.load %arg5[%c0_239, %c0_240] : memref<1x256xf32, #tpu.memory_space<vmem>>, vector<1x256xf32>
    %166 = vector.broadcast %165 : vector<1x256xf32> to vector<32x256xf32>
    %167 = arith.addf %164, %166 : vector<32x256xf32>
    %cst_241 = arith.constant 0.000000e+00 : f32
    %168 = vector.broadcast %cst_241 : f32 to vector<32x256xf32>
    %169 = arith.cmpf ogt, %167, %168 : vector<32x256xf32>
    %cst_242 = arith.constant 2.000000e-01 : f32
    %170 = vector.broadcast %cst_242 : f32 to vector<32x256xf32>
    %171 = arith.mulf %170, %167 : vector<32x256xf32>
    %172 = arith.select %169, %167, %171 : vector<32x256xi1>, vector<32x256xf32>
    %173 = arith.truncf %172 : vector<32x256xf32> to vector<32x256xbf16>
    %c0_243 = arith.constant 0 : index
    %c0_244 = arith.constant 0 : index
    %174 = vector.load %arg12[%c0_243, %c0_244] : memref<32x256xbf16, #tpu.memory_space<vmem>>, vector<32x256xbf16>
    tpu.vector_store %arg12[%c0_243, %c0_244], %173 {strides = array<i32>} : memref<32x256xbf16, #tpu.memory_space<vmem>>, vector<32x256xbf16>,
    %cst_245 = arith.constant 0.000000e+00 : bf16
    %175 = vector.broadcast %cst_245 : bf16 to vector<8x4096xbf16>
    %c0_246 = arith.constant 0 : index
    %c0_247 = arith.constant 0 : index
    %176 = vector.load %arg13[%c0_246, %c0_247] : memref<8x4096xbf16, #tpu.memory_space<vmem>>, vector<8x4096xbf16>
    tpu.vector_store %arg13[%c0_246, %c0_247], %175 {strides = array<i32>} : memref<8x4096xbf16, #tpu.memory_space<vmem>>, vector<8x4096xbf16>,
    %c24_248 = arith.constant 24 : index
    %c0_249 = arith.constant 0 : index
    %177 = vector.load %arg12[%c24_248, %c0_249] : memref<32x256xbf16, #tpu.memory_space<vmem>>, vector<1x256xbf16>
    %c3_250 = arith.constant 3 : index
    %c0_251 = arith.constant 0 : index
    %178 = vector.load %arg13[%c3_250, %c0_251] : memref<8x4096xbf16, #tpu.memory_space<vmem>>, vector<1x256xbf16>
    tpu.vector_store %arg13[%c3_250, %c0_251], %177 {strides = array<i32>} : memref<8x4096xbf16, #tpu.memory_space<vmem>>, vector<1x256xbf16>,
    %c28_252 = arith.constant 28 : index
    %c0_253 = arith.constant 0 : index
    %179 = vector.load %arg12[%c28_252, %c0_253] : memref<32x256xbf16, #tpu.memory_space<vmem>>, vector<1x256xbf16>
    %c7 = arith.constant 7 : index
    %c0_254 = arith.constant 0 : index
    %180 = vector.load %arg13[%c7, %c0_254] : memref<8x4096xbf16, #tpu.memory_space<vmem>>, vector<1x256xbf16>
    tpu.vector_store %arg13[%c7, %c0_254], %179 {strides = array<i32>} : memref<8x4096xbf16, #tpu.memory_space<vmem>>, vector<1x256xbf16>,
    %c16_255 = arith.constant 16 : index
    %c0_256 = arith.constant 0 : index
    %181 = vector.load %arg12[%c16_255, %c0_256] : memref<32x256xbf16, #tpu.memory_space<vmem>>, vector<2x256xbf16>
    %c2_257 = arith.constant 2 : index
    %c256_258 = arith.constant 256 : index
    %182 = vector.load %arg13[%c2_257, %c256_258] : memref<8x4096xbf16, #tpu.memory_space<vmem>>, vector<2x256xbf16>
    tpu.vector_store %arg13[%c2_257, %c256_258], %181 {strides = array<i32>} : memref<8x4096xbf16, #tpu.memory_space<vmem>>, vector<2x256xbf16>,
    %c20_259 = arith.constant 20 : index
    %c0_260 = arith.constant 0 : index
    %183 = vector.load %arg12[%c20_259, %c0_260] : memref<32x256xbf16, #tpu.memory_space<vmem>>, vector<2x256xbf16>
    %c6_261 = arith.constant 6 : index
    %c256_262 = arith.constant 256 : index
    %184 = vector.load %arg13[%c6_261, %c256_262] : memref<8x4096xbf16, #tpu.memory_space<vmem>>, vector<2x256xbf16>
    tpu.vector_store %arg13[%c6_261, %c256_262], %183 {strides = array<i32>} : memref<8x4096xbf16, #tpu.memory_space<vmem>>, vector<2x256xbf16>,
    %c8_263 = arith.constant 8 : index
    %c0_264 = arith.constant 0 : index
    %185 = vector.load %arg12[%c8_263, %c0_264] : memref<32x256xbf16, #tpu.memory_space<vmem>>, vector<1x256xbf16>
    %c1_265 = arith.constant 1 : index
    %c512_266 = arith.constant 512 : index
    %186 = vector.load %arg13[%c1_265, %c512_266] : memref<8x4096xbf16, #tpu.memory_space<vmem>>, vector<1x256xbf16>
    tpu.vector_store %arg13[%c1_265, %c512_266], %185 {strides = array<i32>} : memref<8x4096xbf16, #tpu.memory_space<vmem>>, vector<1x256xbf16>,
    %c10_267 = arith.constant 10 : index
    %c0_268 = arith.constant 0 : index
    %187 = vector.load %arg12[%c10_267, %c0_268] : memref<32x256xbf16, #tpu.memory_space<vmem>>, vector<1x256xbf16>
    %c3_269 = arith.constant 3 : index
    %c512_270 = arith.constant 512 : index
    %188 = vector.load %arg13[%c3_269, %c512_270] : memref<8x4096xbf16, #tpu.memory_space<vmem>>, vector<1x256xbf16>
    tpu.vector_store %arg13[%c3_269, %c512_270], %187 {strides = array<i32>} : memref<8x4096xbf16, #tpu.memory_space<vmem>>, vector<1x256xbf16>,
    %c12_271 = arith.constant 12 : index
    %c0_272 = arith.constant 0 : index
    %189 = vector.load %arg12[%c12_271, %c0_272] : memref<32x256xbf16, #tpu.memory_space<vmem>>, vector<1x256xbf16>
    %c5_273 = arith.constant 5 : index
    %c512_274 = arith.constant 512 : index
    %190 = vector.load %arg13[%c5_273, %c512_274] : memref<8x4096xbf16, #tpu.memory_space<vmem>>, vector<1x256xbf16>
    tpu.vector_store %arg13[%c5_273, %c512_274], %189 {strides = array<i32>} : memref<8x4096xbf16, #tpu.memory_space<vmem>>, vector<1x256xbf16>,
    %c14_275 = arith.constant 14 : index
    %c0_276 = arith.constant 0 : index
    %191 = vector.load %arg12[%c14_275, %c0_276] : memref<32x256xbf16, #tpu.memory_space<vmem>>, vector<1x256xbf16>
    %c7_277 = arith.constant 7 : index
    %c512_278 = arith.constant 512 : index
    %192 = vector.load %arg13[%c7_277, %c512_278] : memref<8x4096xbf16, #tpu.memory_space<vmem>>, vector<1x256xbf16>
    tpu.vector_store %arg13[%c7_277, %c512_278], %191 {strides = array<i32>} : memref<8x4096xbf16, #tpu.memory_space<vmem>>, vector<1x256xbf16>,
    %c0_279 = arith.constant 0 : index
    %c0_280 = arith.constant 0 : index
    %193 = vector.load %arg12[%c0_279, %c0_280] : memref<32x256xbf16, #tpu.memory_space<vmem>>, vector<2x256xbf16>
    %c0_281 = arith.constant 0 : index
    %c768_282 = arith.constant 768 : index
    %194 = vector.load %arg13[%c0_281, %c768_282] : memref<8x4096xbf16, #tpu.memory_space<vmem>>, vector<2x256xbf16>
    tpu.vector_store %arg13[%c0_281, %c768_282], %193 {strides = array<i32>} : memref<8x4096xbf16, #tpu.memory_space<vmem>>, vector<2x256xbf16>,
    %c2_283 = arith.constant 2 : index
    %c0_284 = arith.constant 0 : index
    %195 = vector.load %arg12[%c2_283, %c0_284] : memref<32x256xbf16, #tpu.memory_space<vmem>>, vector<2x256xbf16>
    %c2_285 = arith.constant 2 : index
    %c768_286 = arith.constant 768 : index
    %196 = vector.load %arg13[%c2_285, %c768_286] : memref<8x4096xbf16, #tpu.memory_space<vmem>>, vector<2x256xbf16>
    tpu.vector_store %arg13[%c2_285, %c768_286], %195 {strides = array<i32>} : memref<8x4096xbf16, #tpu.memory_space<vmem>>, vector<2x256xbf16>,
    %c4_287 = arith.constant 4 : index
    %c0_288 = arith.constant 0 : index
    %197 = vector.load %arg12[%c4_287, %c0_288] : memref<32x256xbf16, #tpu.memory_space<vmem>>, vector<2x256xbf16>
    %c4_289 = arith.constant 4 : index
    %c768_290 = arith.constant 768 : index
    %198 = vector.load %arg13[%c4_289, %c768_290] : memref<8x4096xbf16, #tpu.memory_space<vmem>>, vector<2x256xbf16>
    tpu.vector_store %arg13[%c4_289, %c768_290], %197 {strides = array<i32>} : memref<8x4096xbf16, #tpu.memory_space<vmem>>, vector<2x256xbf16>,
    %c6_291 = arith.constant 6 : index
    %c0_292 = arith.constant 0 : index
    %199 = vector.load %arg12[%c6_291, %c0_292] : memref<32x256xbf16, #tpu.memory_space<vmem>>, vector<2x256xbf16>
    %c6_293 = arith.constant 6 : index
    %c768_294 = arith.constant 768 : index
    %200 = vector.load %arg13[%c6_293, %c768_294] : memref<8x4096xbf16, #tpu.memory_space<vmem>>, vector<2x256xbf16>
    tpu.vector_store %arg13[%c6_293, %c768_294], %199 {strides = array<i32>} : memref<8x4096xbf16, #tpu.memory_space<vmem>>, vector<2x256xbf16>,
    %c24_295 = arith.constant 24 : index
    %c0_296 = arith.constant 0 : index
    %201 = vector.load %arg12[%c24_295, %c0_296] : memref<32x256xbf16, #tpu.memory_space<vmem>>, vector<2x256xbf16>
    %c2_297 = arith.constant 2 : index
    %c1024 = arith.constant 1024 : index
    %202 = vector.load %arg13[%c2_297, %c1024] : memref<8x4096xbf16, #tpu.memory_space<vmem>>, vector<2x256xbf16>
    tpu.vector_store %arg13[%c2_297, %c1024], %201 {strides = array<i32>} : memref<8x4096xbf16, #tpu.memory_space<vmem>>, vector<2x256xbf16>,
    %c28_298 = arith.constant 28 : index
    %c0_299 = arith.constant 0 : index
    %203 = vector.load %arg12[%c28_298, %c0_299] : memref<32x256xbf16, #tpu.memory_space<vmem>>, vector<2x256xbf16>
    %c6_300 = arith.constant 6 : index
    %c1024_301 = arith.constant 1024 : index
    %204 = vector.load %arg13[%c6_300, %c1024_301] : memref<8x4096xbf16, #tpu.memory_space<vmem>>, vector<2x256xbf16>
    tpu.vector_store %arg13[%c6_300, %c1024_301], %203 {strides = array<i32>} : memref<8x4096xbf16, #tpu.memory_space<vmem>>, vector<2x256xbf16>,
    %c17 = arith.constant 17 : index
    %c0_302 = arith.constant 0 : index
    %205 = vector.load %arg12[%c17, %c0_302] : memref<32x256xbf16, #tpu.memory_space<vmem>>, vector<1x256xbf16>
    %c2_303 = arith.constant 2 : index
    %c1280 = arith.constant 1280 : index
    %206 = vector.load %arg13[%c2_303, %c1280] : memref<8x4096xbf16, #tpu.memory_space<vmem>>, vector<1x256xbf16>
    tpu.vector_store %arg13[%c2_303, %c1280], %205 {strides = array<i32>} : memref<8x4096xbf16, #tpu.memory_space<vmem>>, vector<1x256xbf16>,
    %c21_304 = arith.constant 21 : index
    %c0_305 = arith.constant 0 : index
    %207 = vector.load %arg12[%c21_304, %c0_305] : memref<32x256xbf16, #tpu.memory_space<vmem>>, vector<1x256xbf16>
    %c6_306 = arith.constant 6 : index
    %c1280_307 = arith.constant 1280 : index
    %208 = vector.load %arg13[%c6_306, %c1280_307] : memref<8x4096xbf16, #tpu.memory_space<vmem>>, vector<1x256xbf16>
    tpu.vector_store %arg13[%c6_306, %c1280_307], %207 {strides = array<i32>} : memref<8x4096xbf16, #tpu.memory_space<vmem>>, vector<1x256xbf16>,
    %c8_308 = arith.constant 8 : index
    %c0_309 = arith.constant 0 : index
    %209 = vector.load %arg12[%c8_308, %c0_309] : memref<32x256xbf16, #tpu.memory_space<vmem>>, vector<2x256xbf16>
    %c0_310 = arith.constant 0 : index
    %c1536 = arith.constant 1536 : index
    %210 = vector.load %arg13[%c0_310, %c1536] : memref<8x4096xbf16, #tpu.memory_space<vmem>>, vector<2x256xbf16>
    tpu.vector_store %arg13[%c0_310, %c1536], %209 {strides = array<i32>} : memref<8x4096xbf16, #tpu.memory_space<vmem>>, vector<2x256xbf16>,
    %c10_311 = arith.constant 10 : index
    %c0_312 = arith.constant 0 : index
    %211 = vector.load %arg12[%c10_311, %c0_312] : memref<32x256xbf16, #tpu.memory_space<vmem>>, vector<2x256xbf16>
    %c2_313 = arith.constant 2 : index
    %c1536_314 = arith.constant 1536 : index
    %212 = vector.load %arg13[%c2_313, %c1536_314] : memref<8x4096xbf16, #tpu.memory_space<vmem>>, vector<2x256xbf16>
    tpu.vector_store %arg13[%c2_313, %c1536_314], %211 {strides = array<i32>} : memref<8x4096xbf16, #tpu.memory_space<vmem>>, vector<2x256xbf16>,
    %c12_315 = arith.constant 12 : index
    %c0_316 = arith.constant 0 : index
    %213 = vector.load %arg12[%c12_315, %c0_316] : memref<32x256xbf16, #tpu.memory_space<vmem>>, vector<2x256xbf16>
    %c4_317 = arith.constant 4 : index
    %c1536_318 = arith.constant 1536 : index
    %214 = vector.load %arg13[%c4_317, %c1536_318] : memref<8x4096xbf16, #tpu.memory_space<vmem>>, vector<2x256xbf16>
    tpu.vector_store %arg13[%c4_317, %c1536_318], %213 {strides = array<i32>} : memref<8x4096xbf16, #tpu.memory_space<vmem>>, vector<2x256xbf16>,
    %c14_319 = arith.constant 14 : index
    %c0_320 = arith.constant 0 : index
    %215 = vector.load %arg12[%c14_319, %c0_320] : memref<32x256xbf16, #tpu.memory_space<vmem>>, vector<2x256xbf16>
    %c6_321 = arith.constant 6 : index
    %c1536_322 = arith.constant 1536 : index
    %216 = vector.load %arg13[%c6_321, %c1536_322] : memref<8x4096xbf16, #tpu.memory_space<vmem>>, vector<2x256xbf16>
    tpu.vector_store %arg13[%c6_321, %c1536_322], %215 {strides = array<i32>} : memref<8x4096xbf16, #tpu.memory_space<vmem>>, vector<2x256xbf16>,
    %c1_323 = arith.constant 1 : index
    %c0_324 = arith.constant 0 : index
    %217 = vector.load %arg12[%c1_323, %c0_324] : memref<32x256xbf16, #tpu.memory_space<vmem>>, vector<1x256xbf16>
    %c0_325 = arith.constant 0 : index
    %c1792 = arith.constant 1792 : index
    %218 = vector.load %arg13[%c0_325, %c1792] : memref<8x4096xbf16, #tpu.memory_space<vmem>>, vector<1x256xbf16>
    tpu.vector_store %arg13[%c0_325, %c1792], %217 {strides = array<i32>} : memref<8x4096xbf16, #tpu.memory_space<vmem>>, vector<1x256xbf16>,
    %c3_326 = arith.constant 3 : index
    %c0_327 = arith.constant 0 : index
    %219 = vector.load %arg12[%c3_326, %c0_327] : memref<32x256xbf16, #tpu.memory_space<vmem>>, vector<1x256xbf16>
    %c2_328 = arith.constant 2 : index
    %c1792_329 = arith.constant 1792 : index
    %220 = vector.load %arg13[%c2_328, %c1792_329] : memref<8x4096xbf16, #tpu.memory_space<vmem>>, vector<1x256xbf16>
    tpu.vector_store %arg13[%c2_328, %c1792_329], %219 {strides = array<i32>} : memref<8x4096xbf16, #tpu.memory_space<vmem>>, vector<1x256xbf16>,
    %c5_330 = arith.constant 5 : index
    %c0_331 = arith.constant 0 : index
    %221 = vector.load %arg12[%c5_330, %c0_331] : memref<32x256xbf16, #tpu.memory_space<vmem>>, vector<1x256xbf16>
    %c4_332 = arith.constant 4 : index
    %c1792_333 = arith.constant 1792 : index
    %222 = vector.load %arg13[%c4_332, %c1792_333] : memref<8x4096xbf16, #tpu.memory_space<vmem>>, vector<1x256xbf16>
    tpu.vector_store %arg13[%c4_332, %c1792_333], %221 {strides = array<i32>} : memref<8x4096xbf16, #tpu.memory_space<vmem>>, vector<1x256xbf16>,
    %c7_334 = arith.constant 7 : index
    %c0_335 = arith.constant 0 : index
    %223 = vector.load %arg12[%c7_334, %c0_335] : memref<32x256xbf16, #tpu.memory_space<vmem>>, vector<1x256xbf16>
    %c6_336 = arith.constant 6 : index
    %c1792_337 = arith.constant 1792 : index
    %224 = vector.load %arg13[%c6_336, %c1792_337] : memref<8x4096xbf16, #tpu.memory_space<vmem>>, vector<1x256xbf16>
    tpu.vector_store %arg13[%c6_336, %c1792_337], %223 {strides = array<i32>} : memref<8x4096xbf16, #tpu.memory_space<vmem>>, vector<1x256xbf16>,
    %c24_338 = arith.constant 24 : index
    %c0_339 = arith.constant 0 : index
    %225 = vector.load %arg12[%c24_338, %c0_339] : memref<32x256xbf16, #tpu.memory_space<vmem>>, vector<1x256xbf16>
    %c1_340 = arith.constant 1 : index
    %c2048 = arith.constant 2048 : index
    %226 = vector.load %arg13[%c1_340, %c2048] : memref<8x4096xbf16, #tpu.memory_space<vmem>>, vector<1x256xbf16>
    tpu.vector_store %arg13[%c1_340, %c2048], %225 {strides = array<i32>} : memref<8x4096xbf16, #tpu.memory_space<vmem>>, vector<1x256xbf16>,
    %c26_341 = arith.constant 26 : index
    %c0_342 = arith.constant 0 : index
    %227 = vector.load %arg12[%c26_341, %c0_342] : memref<32x256xbf16, #tpu.memory_space<vmem>>, vector<1x256xbf16>
    %c3_343 = arith.constant 3 : index
    %c2048_344 = arith.constant 2048 : index
    %228 = vector.load %arg13[%c3_343, %c2048_344] : memref<8x4096xbf16, #tpu.memory_space<vmem>>, vector<1x256xbf16>
    tpu.vector_store %arg13[%c3_343, %c2048_344], %227 {strides = array<i32>} : memref<8x4096xbf16, #tpu.memory_space<vmem>>, vector<1x256xbf16>,
    %c28_345 = arith.constant 28 : index
    %c0_346 = arith.constant 0 : index
    %229 = vector.load %arg12[%c28_345, %c0_346] : memref<32x256xbf16, #tpu.memory_space<vmem>>, vector<1x256xbf16>
    %c5_347 = arith.constant 5 : index
    %c2048_348 = arith.constant 2048 : index
    %230 = vector.load %arg13[%c5_347, %c2048_348] : memref<8x4096xbf16, #tpu.memory_space<vmem>>, vector<1x256xbf16>
    tpu.vector_store %arg13[%c5_347, %c2048_348], %229 {strides = array<i32>} : memref<8x4096xbf16, #tpu.memory_space<vmem>>, vector<1x256xbf16>,
    %c30_349 = arith.constant 30 : index
    %c0_350 = arith.constant 0 : index
    %231 = vector.load %arg12[%c30_349, %c0_350] : memref<32x256xbf16, #tpu.memory_space<vmem>>, vector<1x256xbf16>
    %c7_351 = arith.constant 7 : index
    %c2048_352 = arith.constant 2048 : index
    %232 = vector.load %arg13[%c7_351, %c2048_352] : memref<8x4096xbf16, #tpu.memory_space<vmem>>, vector<1x256xbf16>
    tpu.vector_store %arg13[%c7_351, %c2048_352], %231 {strides = array<i32>} : memref<8x4096xbf16, #tpu.memory_space<vmem>>, vector<1x256xbf16>,
    %c16_353 = arith.constant 16 : index
    %c0_354 = arith.constant 0 : index
    %233 = vector.load %arg12[%c16_353, %c0_354] : memref<32x256xbf16, #tpu.memory_space<vmem>>, vector<2x256xbf16>
    %c0_355 = arith.constant 0 : index
    %c2304 = arith.constant 2304 : index
    %234 = vector.load %arg13[%c0_355, %c2304] : memref<8x4096xbf16, #tpu.memory_space<vmem>>, vector<2x256xbf16>
    tpu.vector_store %arg13[%c0_355, %c2304], %233 {strides = array<i32>} : memref<8x4096xbf16, #tpu.memory_space<vmem>>, vector<2x256xbf16>,
    %c18_356 = arith.constant 18 : index
    %c0_357 = arith.constant 0 : index
    %235 = vector.load %arg12[%c18_356, %c0_357] : memref<32x256xbf16, #tpu.memory_space<vmem>>, vector<2x256xbf16>
    %c2_358 = arith.constant 2 : index
    %c2304_359 = arith.constant 2304 : index
    %236 = vector.load %arg13[%c2_358, %c2304_359] : memref<8x4096xbf16, #tpu.memory_space<vmem>>, vector<2x256xbf16>
    tpu.vector_store %arg13[%c2_358, %c2304_359], %235 {strides = array<i32>} : memref<8x4096xbf16, #tpu.memory_space<vmem>>, vector<2x256xbf16>,
    %c20_360 = arith.constant 20 : index
    %c0_361 = arith.constant 0 : index
    %237 = vector.load %arg12[%c20_360, %c0_361] : memref<32x256xbf16, #tpu.memory_space<vmem>>, vector<2x256xbf16>
    %c4_362 = arith.constant 4 : index
    %c2304_363 = arith.constant 2304 : index
    %238 = vector.load %arg13[%c4_362, %c2304_363] : memref<8x4096xbf16, #tpu.memory_space<vmem>>, vector<2x256xbf16>
    tpu.vector_store %arg13[%c4_362, %c2304_363], %237 {strides = array<i32>} : memref<8x4096xbf16, #tpu.memory_space<vmem>>, vector<2x256xbf16>,
    %c22_364 = arith.constant 22 : index
    %c0_365 = arith.constant 0 : index
    %239 = vector.load %arg12[%c22_364, %c0_365] : memref<32x256xbf16, #tpu.memory_space<vmem>>, vector<2x256xbf16>
    %c6_366 = arith.constant 6 : index
    %c2304_367 = arith.constant 2304 : index
    %240 = vector.load %arg13[%c6_366, %c2304_367] : memref<8x4096xbf16, #tpu.memory_space<vmem>>, vector<2x256xbf16>
    tpu.vector_store %arg13[%c6_366, %c2304_367], %239 {strides = array<i32>} : memref<8x4096xbf16, #tpu.memory_space<vmem>>, vector<2x256xbf16>,
    %c10_368 = arith.constant 10 : index
    %c0_369 = arith.constant 0 : index
    %241 = vector.load %arg12[%c10_368, %c0_369] : memref<32x256xbf16, #tpu.memory_space<vmem>>, vector<1x256xbf16>
    %c1_370 = arith.constant 1 : index
    %c2560 = arith.constant 2560 : index
    %242 = vector.load %arg13[%c1_370, %c2560] : memref<8x4096xbf16, #tpu.memory_space<vmem>>, vector<1x256xbf16>
    tpu.vector_store %arg13[%c1_370, %c2560], %241 {strides = array<i32>} : memref<8x4096xbf16, #tpu.memory_space<vmem>>, vector<1x256xbf16>,
    %c14_371 = arith.constant 14 : index
    %c0_372 = arith.constant 0 : index
    %243 = vector.load %arg12[%c14_371, %c0_372] : memref<32x256xbf16, #tpu.memory_space<vmem>>, vector<1x256xbf16>
    %c5_373 = arith.constant 5 : index
    %c2560_374 = arith.constant 2560 : index
    %244 = vector.load %arg13[%c5_373, %c2560_374] : memref<8x4096xbf16, #tpu.memory_space<vmem>>, vector<1x256xbf16>
    tpu.vector_store %arg13[%c5_373, %c2560_374], %243 {strides = array<i32>} : memref<8x4096xbf16, #tpu.memory_space<vmem>>, vector<1x256xbf16>,
    %c2_375 = arith.constant 2 : index
    %c0_376 = arith.constant 0 : index
    %245 = vector.load %arg12[%c2_375, %c0_376] : memref<32x256xbf16, #tpu.memory_space<vmem>>, vector<2x256xbf16>
    %c0_377 = arith.constant 0 : index
    %c2816 = arith.constant 2816 : index
    %246 = vector.load %arg13[%c0_377, %c2816] : memref<8x4096xbf16, #tpu.memory_space<vmem>>, vector<2x256xbf16>
    tpu.vector_store %arg13[%c0_377, %c2816], %245 {strides = array<i32>} : memref<8x4096xbf16, #tpu.memory_space<vmem>>, vector<2x256xbf16>,
    %c6_378 = arith.constant 6 : index
    %c0_379 = arith.constant 0 : index
    %247 = vector.load %arg12[%c6_378, %c0_379] : memref<32x256xbf16, #tpu.memory_space<vmem>>, vector<2x256xbf16>
    %c4_380 = arith.constant 4 : index
    %c2816_381 = arith.constant 2816 : index
    %248 = vector.load %arg13[%c4_380, %c2816_381] : memref<8x4096xbf16, #tpu.memory_space<vmem>>, vector<2x256xbf16>
    tpu.vector_store %arg13[%c4_380, %c2816_381], %247 {strides = array<i32>} : memref<8x4096xbf16, #tpu.memory_space<vmem>>, vector<2x256xbf16>,
    %c24_382 = arith.constant 24 : index
    %c0_383 = arith.constant 0 : index
    %249 = vector.load %arg12[%c24_382, %c0_383] : memref<32x256xbf16, #tpu.memory_space<vmem>>, vector<2x256xbf16>
    %c0_384 = arith.constant 0 : index
    %c3072 = arith.constant 3072 : index
    %250 = vector.load %arg13[%c0_384, %c3072] : memref<8x4096xbf16, #tpu.memory_space<vmem>>, vector<2x256xbf16>
    tpu.vector_store %arg13[%c0_384, %c3072], %249 {strides = array<i32>} : memref<8x4096xbf16, #tpu.memory_space<vmem>>, vector<2x256xbf16>,
    %c26_385 = arith.constant 26 : index
    %c0_386 = arith.constant 0 : index
    %251 = vector.load %arg12[%c26_385, %c0_386] : memref<32x256xbf16, #tpu.memory_space<vmem>>, vector<2x256xbf16>
    %c2_387 = arith.constant 2 : index
    %c3072_388 = arith.constant 3072 : index
    %252 = vector.load %arg13[%c2_387, %c3072_388] : memref<8x4096xbf16, #tpu.memory_space<vmem>>, vector<2x256xbf16>
    tpu.vector_store %arg13[%c2_387, %c3072_388], %251 {strides = array<i32>} : memref<8x4096xbf16, #tpu.memory_space<vmem>>, vector<2x256xbf16>,
    %c28_389 = arith.constant 28 : index
    %c0_390 = arith.constant 0 : index
    %253 = vector.load %arg12[%c28_389, %c0_390] : memref<32x256xbf16, #tpu.memory_space<vmem>>, vector<2x256xbf16>
    %c4_391 = arith.constant 4 : index
    %c3072_392 = arith.constant 3072 : index
    %254 = vector.load %arg13[%c4_391, %c3072_392] : memref<8x4096xbf16, #tpu.memory_space<vmem>>, vector<2x256xbf16>
    tpu.vector_store %arg13[%c4_391, %c3072_392], %253 {strides = array<i32>} : memref<8x4096xbf16, #tpu.memory_space<vmem>>, vector<2x256xbf16>,
    %c30_393 = arith.constant 30 : index
    %c0_394 = arith.constant 0 : index
    %255 = vector.load %arg12[%c30_393, %c0_394] : memref<32x256xbf16, #tpu.memory_space<vmem>>, vector<2x256xbf16>
    %c6_395 = arith.constant 6 : index
    %c3072_396 = arith.constant 3072 : index
    %256 = vector.load %arg13[%c6_395, %c3072_396] : memref<8x4096xbf16, #tpu.memory_space<vmem>>, vector<2x256xbf16>
    tpu.vector_store %arg13[%c6_395, %c3072_396], %255 {strides = array<i32>} : memref<8x4096xbf16, #tpu.memory_space<vmem>>, vector<2x256xbf16>,
    %c17_397 = arith.constant 17 : index
    %c0_398 = arith.constant 0 : index
    %257 = vector.load %arg12[%c17_397, %c0_398] : memref<32x256xbf16, #tpu.memory_space<vmem>>, vector<1x256xbf16>
    %c0_399 = arith.constant 0 : index
    %c3328 = arith.constant 3328 : index
    %258 = vector.load %arg13[%c0_399, %c3328] : memref<8x4096xbf16, #tpu.memory_space<vmem>>, vector<1x256xbf16>
    tpu.vector_store %arg13[%c0_399, %c3328], %257 {strides = array<i32>} : memref<8x4096xbf16, #tpu.memory_space<vmem>>, vector<1x256xbf16>,
    %c19 = arith.constant 19 : index
    %c0_400 = arith.constant 0 : index
    %259 = vector.load %arg12[%c19, %c0_400] : memref<32x256xbf16, #tpu.memory_space<vmem>>, vector<1x256xbf16>
    %c2_401 = arith.constant 2 : index
    %c3328_402 = arith.constant 3328 : index
    %260 = vector.load %arg13[%c2_401, %c3328_402] : memref<8x4096xbf16, #tpu.memory_space<vmem>>, vector<1x256xbf16>
    tpu.vector_store %arg13[%c2_401, %c3328_402], %259 {strides = array<i32>} : memref<8x4096xbf16, #tpu.memory_space<vmem>>, vector<1x256xbf16>,
    %c21_403 = arith.constant 21 : index
    %c0_404 = arith.constant 0 : index
    %261 = vector.load %arg12[%c21_403, %c0_404] : memref<32x256xbf16, #tpu.memory_space<vmem>>, vector<1x256xbf16>
    %c4_405 = arith.constant 4 : index
    %c3328_406 = arith.constant 3328 : index
    %262 = vector.load %arg13[%c4_405, %c3328_406] : memref<8x4096xbf16, #tpu.memory_space<vmem>>, vector<1x256xbf16>
    tpu.vector_store %arg13[%c4_405, %c3328_406], %261 {strides = array<i32>} : memref<8x4096xbf16, #tpu.memory_space<vmem>>, vector<1x256xbf16>,
    %c23_407 = arith.constant 23 : index
    %c0_408 = arith.constant 0 : index
    %263 = vector.load %arg12[%c23_407, %c0_408] : memref<32x256xbf16, #tpu.memory_space<vmem>>, vector<1x256xbf16>
    %c6_409 = arith.constant 6 : index
    %c3328_410 = arith.constant 3328 : index
    %264 = vector.load %arg13[%c6_409, %c3328_410] : memref<8x4096xbf16, #tpu.memory_space<vmem>>, vector<1x256xbf16>
    tpu.vector_store %arg13[%c6_409, %c3328_410], %263 {strides = array<i32>} : memref<8x4096xbf16, #tpu.memory_space<vmem>>, vector<1x256xbf16>,
    %c10_411 = arith.constant 10 : index
    %c0_412 = arith.constant 0 : index
    %265 = vector.load %arg12[%c10_411, %c0_412] : memref<32x256xbf16, #tpu.memory_space<vmem>>, vector<2x256xbf16>
    %c0_413 = arith.constant 0 : index
    %c3584 = arith.constant 3584 : index
    %266 = vector.load %arg13[%c0_413, %c3584] : memref<8x4096xbf16, #tpu.memory_space<vmem>>, vector<2x256xbf16>
    tpu.vector_store %arg13[%c0_413, %c3584], %265 {strides = array<i32>} : memref<8x4096xbf16, #tpu.memory_space<vmem>>, vector<2x256xbf16>,
    %c14_414 = arith.constant 14 : index
    %c0_415 = arith.constant 0 : index
    %267 = vector.load %arg12[%c14_414, %c0_415] : memref<32x256xbf16, #tpu.memory_space<vmem>>, vector<2x256xbf16>
    %c4_416 = arith.constant 4 : index
    %c3584_417 = arith.constant 3584 : index
    %268 = vector.load %arg13[%c4_416, %c3584_417] : memref<8x4096xbf16, #tpu.memory_space<vmem>>, vector<2x256xbf16>
    tpu.vector_store %arg13[%c4_416, %c3584_417], %267 {strides = array<i32>} : memref<8x4096xbf16, #tpu.memory_space<vmem>>, vector<2x256xbf16>,
    %c3_418 = arith.constant 3 : index
    %c0_419 = arith.constant 0 : index
    %269 = vector.load %arg12[%c3_418, %c0_419] : memref<32x256xbf16, #tpu.memory_space<vmem>>, vector<1x256xbf16>
    %c0_420 = arith.constant 0 : index
    %c3840 = arith.constant 3840 : index
    %270 = vector.load %arg13[%c0_420, %c3840] : memref<8x4096xbf16, #tpu.memory_space<vmem>>, vector<1x256xbf16>
    tpu.vector_store %arg13[%c0_420, %c3840], %269 {strides = array<i32>} : memref<8x4096xbf16, #tpu.memory_space<vmem>>, vector<1x256xbf16>,
    %c7_421 = arith.constant 7 : index
    %c0_422 = arith.constant 0 : index
    %271 = vector.load %arg12[%c7_421, %c0_422] : memref<32x256xbf16, #tpu.memory_space<vmem>>, vector<1x256xbf16>
    %c4_423 = arith.constant 4 : index
    %c3840_424 = arith.constant 3840 : index
    %272 = vector.load %arg13[%c4_423, %c3840_424] : memref<8x4096xbf16, #tpu.memory_space<vmem>>, vector<1x256xbf16>
    tpu.vector_store %arg13[%c4_423, %c3840_424], %271 {strides = array<i32>} : memref<8x4096xbf16, #tpu.memory_space<vmem>>, vector<1x256xbf16>,
    %c0_425 = arith.constant 0 : index
    %c0_426 = arith.constant 0 : index
    %273 = vector.load %arg13[%c0_425, %c0_426] : memref<8x4096xbf16, #tpu.memory_space<vmem>>, vector<8x4096xbf16>
    %c0_427 = arith.constant 0 : index
    %c0_428 = arith.constant 0 : index
    %274 = vector.load %arg6[%c0_427, %c0_428] : memref<4096x128xbf16, #tpu.memory_space<vmem>>, vector<4096x128xbf16>
    %cst_429 = arith.constant dense<0.000000e+00> : vector<8x128xf32>
    %275 = tpu.matmul %273, %274, %cst_429 {dimension_numbers = #tpu.dot_dimension_numbers<[1], [0], [0], [1], [0, 0, 1, 1], [], []>} : vector<8x4096xbf16>, vector<4096x128xbf16>, vector<8x128xf32> -> vector<8x128xf32>
    %c0_430 = arith.constant 0 : index
    %c0_431 = arith.constant 0 : index
    %276 = vector.load %arg7[%c0_430, %c0_431] : memref<1x1xf32, #tpu.memory_space<vmem>>, vector<1x1xf32>
    %277 = vector.broadcast %276 : vector<1x1xf32> to vector<8x128xf32>
    %278 = arith.addf %275, %277 : vector<8x128xf32>
    %279 = arith.negf %278 : vector<8x128xf32>
    %280 = math.exp %279 : vector<8x128xf32>
    %cst_432 = arith.constant 1.000000e+00 : f32
    %281 = vector.broadcast %cst_432 : f32 to vector<8x128xf32>
    %282 = arith.addf %281, %280 : vector<8x128xf32>
    %283 = arith.divf %281, %282 : vector<8x128xf32>
    %c0_433 = arith.constant 0 : index
    %c0_434 = arith.constant 0 : index
    %284 = vector.load %arg8[%c0_433, %c0_434] : memref<2x8xf32, #tpu.memory_space<vmem>>, vector<2x8xf32>
    %cst_435 = arith.constant dense<0.000000e+00> : vector<2x128xf32>
    %285 = tpu.matmul %284, %283, %cst_435 {dimension_numbers = #tpu.dot_dimension_numbers<[1], [0], [0], [1], [0, 0, 1, 1], [], []>} : vector<2x8xf32>, vector<8x128xf32>, vector<2x128xf32> -> vector<2x128xf32>
    %286 = vector.extract_strided_slice %285 {offsets = [0, 0], sizes = [2, 1], strides = [1, 1]} : vector<2x128xf32> to vector<2x1xf32>
    %c0_436 = arith.constant 0 : index
    %c0_437 = arith.constant 0 : index
    %287 = vector.load %arg9[%c0_436, %c0_437] : memref<2x1xf32, #tpu.memory_space<vmem>>, vector<2x1xf32>
    tpu.vector_store %arg9[%c0_436, %c0_437], %286 {strides = array<i32>} : memref<2x1xf32, #tpu.memory_space<vmem>>, vector<2x1xf32>,
    return
  }
}

</mosaic_0001>

<bundles_post_ra>
// kernel: patch_discriminator_forward.1
= control target key start
LH: loop header
LB: loop body
LE: loop exit
PB: predicated region body
PF: predicated region fallthrough
CT: control target
= control target key end

     0   :  { %v6754_v1 = vmov 0   ;;  %vm8568_vm7 = vsmask.f32 1280  ;;  %vm393_vm8 = vsmask.f32 5392  ;;  %s8557_s1 = inlined_call_operand.vmem [shape: bf16[128,256], index: 1, kind: input, shape index: {}]   ;;  %s8558_s0 = inlined_call_operand.vmem [shape: bf16[56,128], index: 0, kind: input, shape index: {}]   ;;  %s8559_s2 = inlined_call_operand.vmem [shape: bf16[1024,256], index: 2, kind: input, shape index: {}]   ;;  %s8560_s6 = inlined_call_operand.vmem [shape: bf16[4096,128], index: 6, kind: input, shape index: {}]   ;;  %s8561_s3 = inlined_call_operand.vmem [shape: f32[1,256], index: 3, kind: input, shape index: {}]   ;;  %s8562_s7 = inlined_call_operand.<no memory space> [shape: f32[1,1], index: 7, kind: input, shape index: {}]   ;;  %s8563_s4 = inlined_call_operand.vmem [shape: f32[1,256], index: 4, kind: input, shape index: {}]   ;;  %s8564_s5 = inlined_call_operand.vmem [shape: f32[1,256], index: 5, kind: input, shape index: {}]   ;;  %s8565_s8 = inlined_call_operand.vmem [shape: f32[2,8], index: 8, kind: input, shape index: {}]   ;;  %s8566_s9 = inlined_call_operand.vmem [shape: f32[2,1], index: 9, kind: output, shape index: {}]  }
   0x1   :  { %v6220_v0 = vld [vmem:[%s8557_s1 + $0x74] ss:$8 sps:$4 sm:$0xff]   ;;  %192 = vmatprep.mubr.bf16.mxu0 %v6754_v1  ;;  %2079 = vst [vmem:[#allocation5 + $0x8] sm:$0xff] %v6754_v1  ;;  %2080 = vst [vmem:[#allocation5 + $0x38] sm:$0xff] %v6754_v1  ;;  %6219 = vset.pattern.permute.xlu0 %v6754_v1  ;;  %v6222_v2 = vld [vmem:[%s8557_s1 + $0x70] ss:$8 sps:$4 sm:$0xff]  }
   0x2   :  { %2081 = vst [vmem:[#allocation5] sm:$0xff] %v6754_v1  ;;  %2082 = vst [vmem:[#allocation5 + $0x48] sm:$0xff] %v6754_v1  ;;  %160 = vmatprep.subr.bf16.mxu0 %v6220_v0  ;;  %v6223_v3 = vld [vmem:[%s8557_s1 + $0x64] ss:$8 sps:$4 sm:$0xff]   ;;  %v6225_v4 = vld [vmem:[%s8557_s1 + $0x60] ss:$8 sps:$4 sm:$0xff]  }
   0x3   :  { %2083 = vst [vmem:[#allocation5 + $0x60] sm:$0xff] %v6754_v1  ;;  %2084 = vst [vmem:[#allocation5 + $0x10] sm:$0xff] %v6754_v1  ;;  %161 = vmatpush1.bf16.msra.mxu0 %v6222_v2  ;;  %v6226_v5 = vld [vmem:[%s8557_s1 + $0x54] ss:$8 sps:$4 sm:$0xff]   ;;  %v6228_v6 = vld [vmem:[%s8557_s1 + $0x50] ss:$8 sps:$4 sm:$0xff]  }
   0x4   :  { %2085 = vst [vmem:[#allocation5 + $0x30] sm:$0xff] %v6754_v1  ;;  %2086 = vst [vmem:[#allocation5 + $0x40] sm:$0xff] %v6754_v1  ;;  %162 = vmatprep.subr.bf16.mxu0 %v6223_v3  ;;  %v6229_v7 = vld [vmem:[%s8557_s1 + $0x44] ss:$8 sps:$4 sm:$0xff]   ;;  %v6231_v8 = vld [vmem:[%s8557_s1 + $0x40] ss:$8 sps:$4 sm:$0xff]  }
   0x5   :  { %2087 = vst [vmem:[#allocation5 + $0x28] sm:$0xff] %v6754_v1  ;;  %2088 = vst [vmem:[#allocation5 + $0x50] sm:$0xff] %v6754_v1  ;;  %v6232_v9 = vld [vmem:[%s8557_s1 + $0x34] ss:$8 sps:$4 sm:$0xff]   ;;  %v6234_v10 = vld [vmem:[%s8557_s1 + $0x30] ss:$8 sps:$4 sm:$0xff]  }
   0x6   :  { %2089 = vst [vmem:[#allocation5 + $0x58] sm:$0xff] %v6754_v1  ;;  %2090 = vst [vmem:[#allocation5 + $0x70] sm:$0xff] %v6754_v1  ;;  %v6235_v11 = vld [vmem:[%s8557_s1 + $0x24] ss:$8 sps:$4 sm:$0xff]   ;;  %v6251_v12 = vld [vmem:[%s8559_s2 + $0x74] ss:$8 sps:$4 sm:$0xff]  }
   0x7   :  { %2091 = vst [vmem:[#allocation5 + $0x20] sm:$0xff] %v6754_v1  ;;  %2092 = vst [vmem:[#allocation5 + $0x78] sm:$0xff] %v6754_v1  ;;  %163 = vmatpush1.bf16.msra.mxu0 %v6225_v4  ;;  %v6237_v13 = vld [vmem:[%s8557_s1 + $0x20] ss:$8 sps:$4 sm:$0xff]   ;;  %1706 = vmatprep.subr.bf16.mxu1 %v6251_v12  ;;  %v6256_v14 = vld [vmem:[%s8559_s2 + $0x70] ss:$8 sps:$4 sm:$0xff]  }
   0x8   :  { %2093 = vst [vmem:[#allocation5 + $0x68] sm:$0xff] %v6754_v1  ;;  %2094 = vst [vmem:[#allocation5 + $0x18] sm:$0xff] %v6754_v1  ;;  %164 = vmatprep.subr.bf16.mxu0 %v6226_v5  ;;  %v6257_v15 = vld [vmem:[%s8559_s2 + $0x64] ss:$8 sps:$4 sm:$0xff]   ;;  %v6238_v16 = vld [vmem:[%s8557_s1 + $0x14] ss:$8 sps:$4 sm:$0xff]   ;;  %1707 = vmatpush1.bf16.msra.mxu1 %v6256_v14 }
   0x9   :  { %v6262_v17 = vld [vmem:[%s8559_s2 + $0x60] ss:$8 sps:$4 sm:$0xff]   ;;  %1708 = vmatprep.subr.bf16.mxu1 %v6257_v15  ;;  %v6263_v18 = vld [vmem:[%s8559_s2 + $0x54] ss:$8 sps:$4 sm:$0xff]   ;;  %v6240_v19 = vld [vmem:[%s8557_s1 + $0x10] ss:$8 sps:$4 sm:$0xff]  }
   0xa   :  { %v6241_v20 = vld [vmem:[%s8557_s1 + $0x4] ss:$8 sps:$4 sm:$0xff]   ;;  %v6268_v21 = vld [vmem:[%s8559_s2 + $0x50] ss:$8 sps:$4 sm:$0xff]   ;;  %v6243_v22 = vld [vmem:[%s8557_s1] ss:$8 sps:$4 sm:$0xff]  }
   0xb   :  { %165 = vmatpush1.bf16.msra.mxu0 %v6228_v6  ;;  %v6269_v23 = vld [vmem:[%s8559_s2 + $0x44] ss:$8 sps:$4 sm:$0xff]   ;;  %v6250_v24 = vld [vmem:[%s8559_s2 + $0x174] ss:$8 sps:$4 sm:$0xff]   ;;  %v6274_v25 = vld [vmem:[%s8559_s2 + $0x40] ss:$8 sps:$4 sm:$0xff]  }
   0xc   :  { %166 = vmatprep.subr.bf16.mxu0 %v6229_v7  ;;  %1709 = vmatpush1.bf16.msra.mxu1 %v6262_v17  ;;  %v6244_v26 = vld [vmem:[%s8558_s0] sm:$0xff]   ;;  %v6248_v27 = vld [vmem:[%s8559_s2 + $0x170] ss:$8 sps:$4 sm:$0xff]   ;;  %v6261_v30 = vld [vmem:[%s8559_s2 + $0x154] ss:$8 sps:$4 sm:$0xff]  }
   0xd   :  { %1710 = vmatprep.subr.bf16.mxu1 %v6263_v18  ;;  %v6255_v28 = vld [vmem:[%s8559_s2 + $0x164] ss:$8 sps:$4 sm:$0xff]   ;;  %v6253_v29 = vld [vmem:[%s8559_s2 + $0x160] ss:$8 sps:$4 sm:$0xff]   ;;  %v6259_v32 = vld [vmem:[%s8559_s2 + $0x150] ss:$8 sps:$4 sm:$0xff]  }
   0xe   :  { %v6245_v31 = vld [vmem:[%s8558_s0 + $0x8] sm:$0xff]   ;;  %v6273_v35 = vld [vmem:[%s8559_s2 + $0x134] ss:$8 sps:$4 sm:$0xff]   ;;  %v6271_v37 = vld [vmem:[%s8559_s2 + $0x130] ss:$8 sps:$4 sm:$0xff]  }
   0xf   :  { %167 = vmatpush1.bf16.msra.mxu0 %v6231_v8  ;;  %v6267_v33 = vld [vmem:[%s8559_s2 + $0x144] ss:$8 sps:$4 sm:$0xff]   ;;  %v6265_v34 = vld [vmem:[%s8559_s2 + $0x140] ss:$8 sps:$4 sm:$0xff]   ;;  %v6246_v36 = vld [vmem:[%s8558_s0 + $0x10] sm:$0xff]  }
  0x10   :  { %168 = vmatprep.subr.bf16.mxu0 %v6232_v9  ;;  %1711 = vmatpush1.bf16.msra.mxu1 %v6268_v21  ;;  %v6247_v38 = vld [vmem:[%s8558_s0 + $0x18] ss:$0 sps:$4 sm:$0xff]   ;;  %v6275_v39 = vld [vmem:[%s8559_s2 + $0x34] ss:$8 sps:$4 sm:$0xff]   ;;  %v6279_v40 = vld [vmem:[%s8559_s2 + $0x124] ss:$8 sps:$4 sm:$0xff]  }
  0x11   :  { %1712 = vmatprep.subr.bf16.mxu1 %v6269_v23  ;;  %v6277_v41 = vld [vmem:[%s8559_s2 + $0x120] ss:$8 sps:$4 sm:$0xff]   ;;  %v6280_v42 = vld [vmem:[%s8559_s2 + $0x30] ss:$8 sps:$4 sm:$0xff]   ;;  %v6281_v43 = vld [vmem:[%s8559_s2 + $0x24] ss:$8 sps:$4 sm:$0xff]  }
  0x12   :  { %v6285_v44 = vld [vmem:[%s8559_s2 + $0x114] ss:$8 sps:$4 sm:$0xff]   ;;  %v6283_v45 = vld [vmem:[%s8559_s2 + $0x110] ss:$8 sps:$4 sm:$0xff]   ;;  %v6286_v46 = vld [vmem:[%s8559_s2 + $0x20] ss:$8 sps:$4 sm:$0xff]  }
  0x13   :  { %169 = vmatpush1.bf16.msra.mxu0 %v6234_v10  ;;  %v6287_v47 = vld [vmem:[%s8559_s2 + $0x14] ss:$8 sps:$4 sm:$0xff]   ;;  %v6291_v48 = vld [vmem:[%s8559_s2 + $0x104] ss:$8 sps:$4 sm:$0xff]   ;;  %v6289_v49 = vld [vmem:[%s8559_s2 + $0x100] ss:$8 sps:$4 sm:$0xff]  }
  0x14   :  { %170 = vmatprep.subr.bf16.mxu0 %v6235_v11  ;;  %1713 = vmatpush1.bf16.msra.mxu1 %v6274_v25  ;;  %v6292_v50 = vld [vmem:[%s8559_s2 + $0x10] ss:$8 sps:$4 sm:$0xff]   ;;  %v6293_v51 = vld [vmem:[%s8559_s2 + $0x4] ss:$8 sps:$4 sm:$0xff]   ;;  %v6297_v52 = vld [vmem:[%s8559_s2 + $0x1f4] ss:$8 sps:$4 sm:$0xff]  }
  0x15   :  { %1714 = vmatprep.subr.bf16.mxu1 %v6275_v39  ;;  %v6295_v53 = vld [vmem:[%s8559_s2 + $0x1f0] ss:$8 sps:$4 sm:$0xff]   ;;  %v6298_v54 = vld [vmem:[%s8559_s2] ss:$8 sps:$4 sm:$0xff]   ;;  %v6299_v55 = vld [vmem:[%s8559_s2 + $0xf4] ss:$8 sps:$4 sm:$0xff]  }
  0x16   :  { %v6303_v56 = vld [vmem:[%s8559_s2 + $0x1e4] ss:$8 sps:$4 sm:$0xff]   ;;  %v6301_v57 = vld [vmem:[%s8559_s2 + $0x1e0] ss:$8 sps:$4 sm:$0xff]   ;;  %v6304_v58 = vld [vmem:[%s8559_s2 + $0xf0] ss:$8 sps:$4 sm:$0xff]  }
  0x17   :  { %171 = vmatpush1.bf16.msra.mxu0 %v6237_v13  ;;  %v6305_v59 = vld [vmem:[%s8559_s2 + $0xe4] ss:$8 sps:$4 sm:$0xff]   ;;  %v6309_v60 = vld [vmem:[%s8559_s2 + $0x1d4] ss:$8 sps:$4 sm:$0xff]   ;;  %v6307_v61 = vld [vmem:[%s8559_s2 + $0x1d0] ss:$8 sps:$4 sm:$0xff]  }
  0x18   :  { %172 = vmatprep.subr.bf16.mxu0 %v6238_v16  ;;  %1715 = vmatpush1.bf16.msra.mxu1 %v6280_v42  ;;  %v6310_v62 = vld [vmem:[%s8559_s2 + $0xe0] ss:$8 sps:$4 sm:$0xff]   ;;  %v6311_v63 = vld [vmem:[%s8559_s2 + $0xd4] ss:$8 sps:$4 sm:$0xff]   ;;  %v6315_v0 = vld [vmem:[%s8559_s2 + $0x1c4] ss:$8 sps:$4 sm:$0xff]  }
  0x19   :  { %1716 = vmatprep.subr.bf16.mxu1 %v6281_v43  ;;  %v6316_v2 = vld [vmem:[%s8559_s2 + $0xd0] ss:$8 sps:$4 sm:$0xff]   ;;  %v6317_v3 = vld [vmem:[%s8559_s2 + $0xc4] ss:$8 sps:$4 sm:$0xff]   ;;  %v6321_v4 = vld [vmem:[%s8559_s2 + $0x1b4] ss:$8 sps:$4 sm:$0xff]  }
  0x1a   :  { %v6319_v5 = vld [vmem:[%s8559_s2 + $0x1b0] ss:$8 sps:$4 sm:$0xff]   ;;  %v6322_v6 = vld [vmem:[%s8559_s2 + $0xc0] ss:$8 sps:$4 sm:$0xff]   ;;  %v6323_v7 = vld [vmem:[%s8559_s2 + $0xb4] ss:$8 sps:$4 sm:$0xff]  }
  0x1b   :  { %173 = vmatpush1.bf16.msra.mxu0 %v6240_v19  ;;  %v6327_v8 = vld [vmem:[%s8559_s2 + $0x1a4] ss:$8 sps:$4 sm:$0xff]   ;;  %v6325_v9 = vld [vmem:[%s8559_s2 + $0x1a0] ss:$8 sps:$4 sm:$0xff]   ;;  %v6328_v10 = vld [vmem:[%s8559_s2 + $0xb0] ss:$8 sps:$4 sm:$0xff]  }
  0x1c   :  { %174 = vmatprep.subr.bf16.mxu0 %v6241_v20  ;;  %1717 = vmatpush1.bf16.msra.mxu1 %v6286_v46  ;;  %v6329_v11 = vld [vmem:[%s8559_s2 + $0xa4] ss:$8 sps:$4 sm:$0xff]   ;;  %v6333_v12 = vld [vmem:[%s8559_s2 + $0x194] ss:$8 sps:$4 sm:$0xff]   ;;  %v6331_v13 = vld [vmem:[%s8559_s2 + $0x190] ss:$8 sps:$4 sm:$0xff]  }
  0x1d   :  { %1718 = vmatprep.subr.bf16.mxu1 %v6287_v47  ;;  %v6334_v14 = vld [vmem:[%s8559_s2 + $0xa0] ss:$8 sps:$4 sm:$0xff]   ;;  %v6335_v15 = vld [vmem:[%s8559_s2 + $0x94] ss:$8 sps:$4 sm:$0xff]   ;;  %v6339_v16 = vld [vmem:[%s8559_s2 + $0x184] ss:$8 sps:$4 sm:$0xff]  }
  0x1e   :  { %v6337_v17 = vld [vmem:[%s8559_s2 + $0x180] ss:$8 sps:$4 sm:$0xff]   ;;  %v6340_v18 = vld [vmem:[%s8559_s2 + $0x90] ss:$8 sps:$4 sm:$0xff]   ;;  %v6341_v19 = vld [vmem:[%s8559_s2 + $0x84] ss:$8 sps:$4 sm:$0xff]  }
  0x1f   :  { %175 = vmatpush1.bf16.msra.mxu0 %v6243_v22  ;;  %v6348_v20 = vld [vmem:[%s8559_s2 + $0x374] ss:$8 sps:$4 sm:$0xff]   ;;  %v6349_v21 = vld [vmem:[%s8559_s2 + $0x80] ss:$8 sps:$4 sm:$0xff]   ;;  %vm7156_vm11 = vmor %vm8568_vm7, %vm393_vm8  ;;  %vm2105_vm8 = vsmask.f32 7958 }
  0x20   :  { %1759 = vmatprep.subr.bf16.mxu0 %v6250_v24  ;;  %1719 = vmatpush1.bf16.msra.mxu1 %v6292_v50  ;;  %v6355_v22 = vld [vmem:[%s8559_s2 + $0x274] ss:$8 sps:$4 sm:$0xff]  }
  0x21   :  { %1720 = vmatprep.subr.bf16.mxu1 %v6293_v51 }
  0x22   :  { %193 = vmatmul.mubr.bf16.vlgmr.msra.gmra.mxu0 %v6244_v26 }
  0x23   :  { %202 = vmatprep.mubr.bf16.mxu0 %v6754_v1  ;;  %1760 = vmatpush1.bf16.msra.mxu0 %v6248_v27 }
  0x24   :  { %1761 = vmatprep.subr.bf16.mxu0 %v6255_v28  ;;  %1721 = vmatpush1.bf16.msra.mxu1 %v6298_v54 }
  0x25   :  { %1722 = vmatprep.subr.bf16.mxu1 %v6299_v55 }
  0x27   :  { %1762 = vmatpush1.bf16.msra.mxu0 %v6253_v29 }
  0x28   :  { %1763 = vmatprep.subr.bf16.mxu0 %v6261_v30  ;;  %1723 = vmatpush2.bf16.msra.mxu1 %v6304_v58 }
  0x29   :  { %1724 = vmatprep.subr.bf16.mxu1 %v6305_v59 }
  0x2a   :  { %203 = vmatmul.mubr.bf16.gmra.mxu0 %v6245_v31 }
  0x2b   :  { %212 = vmatprep.mubr.bf16.mxu0 %v6754_v1  ;;  %1764 = vmatpush1.bf16.msra.mxu0 %v6259_v32 }
  0x2c   :  { %1765 = vmatprep.subr.bf16.mxu0 %v6267_v33  ;;  %1725 = vmatpush2.bf16.msra.mxu1 %v6310_v62 }
  0x2d   :  { %1726 = vmatprep.subr.bf16.mxu1 %v6311_v63 }
  0x2f   :  { %1766 = vmatpush1.bf16.msra.mxu0 %v6265_v34 }
  0x30   :  { %1767 = vmatprep.subr.bf16.mxu0 %v6273_v35  ;;  %1727 = vmatpush2.bf16.msra.mxu1 %v6316_v2 }
  0x31   :  { %1728 = vmatprep.subr.bf16.mxu1 %v6317_v3 }
  0x32   :  { %213 = vmatmul.mubr.bf16.gmra.mxu0 %v6246_v36 }
  0x33   :  { %222 = vmatprep.mubr.bf16.mxu0 %v6754_v1  ;;  %1768 = vmatpush1.bf16.msra.mxu0 %v6271_v37  ;;  %v6313_v1 = vld [vmem:[%s8559_s2 + $0x1c0] ss:$8 sps:$4 sm:$0xff]  }
  0x34   :  { %1769 = vmatprep.subr.bf16.mxu0 %v6279_v40  ;;  %1729 = vmatpush2.bf16.msra.mxu1 %v6322_v6 }
  0x35   :  { %1730 = vmatprep.subr.bf16.mxu1 %v6323_v7 }
  0x37   :  { %1770 = vmatpush1.bf16.msra.mxu0 %v6277_v41 }
  0x38   :  { %1771 = vmatprep.subr.bf16.mxu0 %v6285_v44  ;;  %1731 = vmatpush2.bf16.msra.mxu1 %v6328_v10 }
  0x39   :  { %1732 = vmatprep.subr.bf16.mxu1 %v6329_v11 }
  0x3a   :  { %223 = vmatmul.mubr.bf16.gmra.mxu0 %v6247_v38 }
  0x3b   :  { %1772 = vmatpush1.bf16.msra.mxu0 %v6283_v45 }
  0x3c   :  { %1773 = vmatprep.subr.bf16.mxu0 %v6291_v48  ;;  %1733 = vmatpush2.bf16.msra.mxu1 %v6334_v14 }
  0x3d   :  { %1734 = vmatprep.subr.bf16.mxu1 %v6335_v15 }
  0x3f   :  { %1774 = vmatpush1.bf16.msra.mxu0 %v6289_v49 }
  0x40   :  { %1775 = vmatprep.subr.bf16.mxu0 %v6297_v52  ;;  %1735 = vmatpush2.bf16.msra.mxu1 %v6340_v18 }
  0x41   :  { %1736 = vmatprep.subr.bf16.mxu1 %v6341_v19 }
  0x43   :  { %1776 = vmatpush2.bf16.msra.mxu0 %v6295_v53 }
  0x44   :  { %1777 = vmatprep.subr.bf16.mxu0 %v6303_v56  ;;  %1737 = vmatpush2.bf16.msra.mxu1 %v6349_v21 }
  0x45   :  { %1812 = vmatprep.subr.bf16.mxu1 %v6355_v22 }
  0x47   :  { %1778 = vmatpush2.bf16.msra.mxu0 %v6301_v57 }
  0x48   :  { %1779 = vmatprep.subr.bf16.mxu0 %v6309_v60 }
  0x4b   :  { %1780 = vmatpush2.bf16.msra.mxu0 %v6307_v61 }
  0x4c   :  { %1781 = vmatprep.subr.bf16.mxu0 %v6315_v0 }
  0x4f   :  { %1782 = vmatpush2.bf16.msra.mxu0 %v6313_v1 }
  0x50   :  { %1783 = vmatprep.subr.bf16.mxu0 %v6321_v4 }
  0x53   :  { %1784 = vmatpush2.bf16.msra.mxu0 %v6319_v5 }
  0x54   :  { %1785 = vmatprep.subr.bf16.mxu0 %v6327_v8 }
  0x57   :  { %1786 = vmatpush2.bf16.msra.mxu0 %v6325_v9 }
  0x58   :  { %1787 = vmatprep.subr.bf16.mxu0 %v6333_v12 }
  0x5b   :  { %1788 = vmatpush2.bf16.msra.mxu0 %v6331_v13 }
  0x5c   :  { %1789 = vmatprep.subr.bf16.mxu0 %v6339_v16 }
  0x5f   :  { %1790 = vmatpush2.bf16.msra.mxu0 %v6337_v17 }
  0x60   :  { %1865 = vmatprep.subr.bf16.mxu0 %v6348_v20 }
  0xe2   :  { %v194_v23 = vpop.f32.mrf.mxu0 }
  0xe3   :  { %v245_v24 = vmul.f32 0.2, %v194_v23  ;;  %vm231_vm0 = vcmp.gt.f32.partialorder %v194_v23, 0.0 }
  0xe4   :  { %v196_v25 = vpop.f32.mrf.mxu0 }
  0xe5   :  { %vm232_vm1 = vcmp.gt.f32.partialorder %v196_v25, 0.0  ;;  %v246_v26 = vmul.f32 0.2, %v196_v25  ;;  %v259_v28 = vsel %vm231_vm0, %v194_v23, %v245_v24 }
  0xe6   :  { %v198_v27 = vpop.f32.mrf.mxu0 }
  0xe7   :  { %v260_v29 = vsel %vm232_vm1, %v196_v25, %v246_v26  ;;  %v247_v30 = vmul.f32 0.2, %v198_v27  ;;  %vm233_vm2 = vcmp.gt.f32.partialorder %v198_v27, 0.0  ;;  %vm8567_vm1 = vsmask.f32 2304 }
  0xe8   :  { %v5846_v31 = vpack.c.bf16 %v260_v29, %v259_v28  ;;  %v200_v32 = vpop.f32.mrf.mxu0 }
  0xe9   :  { %vm234_vm3 = vcmp.gt.f32.partialorder %v200_v32, 0.0  ;;  %v248_v33 = vmul.f32 0.2, %v200_v32  ;;  %v261_v35 = vsel %vm233_vm2, %v198_v27, %v247_v30  ;;  %vm546_vm2 = vsmask.f32 6416 }
  0xea   :  { %317 = vst [vmem:[#allocation2 + $0x30] sm:$0xff] %v5846_v31  ;;  %v204_v34 = vpop.f32.mrf.mxu0 }
  0xeb   :  { %v262_v36 = vsel %vm234_vm3, %v200_v32, %v248_v33  ;;  %v249_v37 = vmul.f32 0.2, %v204_v34  ;;  %vm235_vm4 = vcmp.gt.f32.partialorder %v204_v34, 0.0  ;;  %vm7243_vm3 = vmor %vm8567_vm1, %vm546_vm2 }
  0xec   :  { %v5847_v38 = vpack.c.bf16 %v262_v36, %v261_v35  ;;  %v206_v39 = vpop.f32.mrf.mxu0 }
  0xed   :  { %vm236_vm5 = vcmp.gt.f32.partialorder %v206_v39, 0.0  ;;  %v250_v40 = vmul.f32 0.2, %v206_v39  ;;  %v263_v42 = vsel %vm235_vm4, %v204_v34, %v249_v37  ;;  %vm8570_vm4 = vcmask 1041409  }
  0xee   :  { %318 = vst [vmem:[#allocation2] sm:$0xff] %v5847_v38  ;;  %v7086_v41 = vpop.f32.mrf.mxu0 }
  0xef   :  { %v264_v43 = vsel %vm236_vm5, %v206_v39, %v250_v40  ;;  %vm237_vm6 = vcmp.gt.f32.partialorder %v7086_v41, 0.0  ;;  %v7096_v63 = vmul.f32 0.2, %v7086_v41  ;;  %vm2102_vm5 = vsmask.f32 7942 }
  0xf0   :  { %v5848_v44 = vpack.c.bf16 %v264_v43, %v263_v42  ;;  %v7088_v45 = vpop.f32.mrf.mxu0  ;;  %vm7611_vm2 = vmand %vm8570_vm4, %vm2102_vm5  ;;  %vm8585_vm5 = vsmask.f32 7966 }
  0xf1   :  { %v350_v46 = vld [vmem:[#allocation2 + $0x30] sm:$0x66]  ;;  %v532_v53 = vld [vmem:[#allocation2 + $0x30] sm:$0x88]  ;;  %vm238_vm9 = vcmp.gt.f32.partialorder %v7088_v45, 0.0 }
  0xf2   :  { %v378_v47 = vld [vmem:[#allocation2 + $0x30] sm:$0xcc]  ;;  %v352_v48 = vshrl.u32 %v350_v46, 16  ;;  %v472_v49 = vld [vmem:[#allocation2 + $0x30] sm:$0x33]  ;;  %319 = vst [vmem:[#allocation2 + $0x18] sm:$0xff] %v5848_v44  ;;  %v7090_v50 = vpop.f32.mrf.mxu0 }
  0xf3   :  { %v355_v51 = vshll.u32 %v350_v46, 16  ;;  %v380_v52 = vshrl.u32 %v378_v47, 16  ;;  %v571_v54 = vld [vmem:[#allocation2 + $0x30] sm:$0xcc]  ;;  %v383_v55 = vshll.u32 %v378_v47, 16  ;;  %v474_v56 = vshrl.u32 %v472_v49, 16 }
  0xf4   :  { %v477_v57 = vshll.u32 %v472_v49, 16  ;;  %v729_v58 = vld [vmem:[#allocation2 + $0x30] sm:$0x88]  ;;  %v7092_v59 = vpop.f32.mrf.mxu0  ;;  %v5379_v60 = vrot.slane %v532_v53, 11  ;;  %v573_v61 = vshrl.u32 %v571_v54, 16  ;;  %v7098_v0 = vrot.slane %v352_v48, 5 }
  0xf5   :  { %v362_v62 = vld [vmem:[#allocation2] sm:$0xcc]  ;;  %v576_v1 = vshll.u32 %v571_v54, 16  ;;  %v5387_v2 = vrot.slane %v729_v58, 11  ;;  %v7102_v6 = vrot.slane %v355_v51, 6  ;;  %v7104_v7 = vrot.slane %v380_v52, 6 }
  0xf6   :  { %v364_v3 = vshrl.u32 %v362_v62, 16  ;;  %v390_v4 = vld [vmem:[#allocation2] sm:$0x88]  ;;  %v7100_v5 = vpop.f32.mrf.mxu0  ;;  %537 = vst [vmem:[#allocation3 + $0x78] sm:$0x11] %v5379_v60  ;;  %v367_v8 = vshll.u32 %v362_v62, 16  ;;  %v7152_v60 = vsel %vm237_vm6, %v7086_v41, %v7096_v63 }
  0xf7   :  { %v396_v9 = vshrl.u32 %v390_v4, 16  ;;  %v418_v10 = vld [vmem:[#allocation2] sm:$0x11]  ;;  %v7106_v11 = vrot.slane %v383_v55, 7  ;;  %v7108_v12 = vrot.slane %v474_v56, 4  ;;  %v7110_v13 = vrot.slane %v477_v57, 5 }
  0xf8   :  { %v7112_v14 = vrot.slane %v573_v61, 6  ;;  %734 = vst [vmem:[#allocation3 + $0x30] sm:$0x11] %v5387_v2  ;;  %v484_v15 = vld [vmem:[#allocation2] sm:$0x66]  ;;  %v7114_v16 = vpop.f32.mrf.mxu0  ;;  %v7116_v17 = vrot.slane %v576_v1, 7 }
  0xf9   :  { %419 = vst [vmem:[#allocation3 + $0x58] sm:$0x11] %v418_v10  ;;  %v7118_v18 = vrot.slane %v364_v3, 5  ;;  %v486_v19 = vshrl.u32 %v484_v15, 16  ;;  %v489_v20 = vshll.u32 %v484_v15, 16  ;;  %v7122_v26 = vrot.slane %v367_v8, 6 }
  0xfa   :  { %v506_v21 = vld [vmem:[#allocation2] sm:$0x11]  ;;  %v583_v22 = vld [vmem:[#allocation2] sm:$0x88]  ;;  %v634_v24 = vld [vmem:[#allocation2] sm:$0x22]  ;;  %v7120_v25 = vpop.f32.mrf.mxu0  ;;  %v358_v8 = vor.u32 %v7102_v6, %v7098_v0  ;;  %v386_v0 = vor.u32 %v7106_v11, %v7104_v7 }
  0xfb   :  { %v608_v23 = vld [vmem:[#allocation2] sm:$0x11]  ;;  %507 = vst [vmem:[#allocation3 + $0x28] sm:$0x11] %v506_v21  ;;  %v7124_v27 = vrot.slane %v396_v9, 10  ;;  %v586_v28 = vshrl.u32 %v583_v22, 16  ;;  %v480_v9 = vor.u32 %v7110_v13, %v7108_v12  ;;  %v370_v15 = vor.u32 %v7122_v26, %v7118_v18 }
  0xfc   :  { %v5383_v29 = vrot.slane %v634_v24, 9  ;;  %v666_v30 = vld [vmem:[#allocation2] sm:$0xcc]  ;;  %609 = vst [vmem:[#allocation3 + $0x60] sm:$0x11] %v608_v23  ;;  %v7126_v35 = vpop.f32.mrf.mxu0  ;;  %v7128_v36 = vrot.slane %v486_v19, 4  ;;  %v579_v19 = vor.u32 %v7116_v17, %v7112_v14 }
  0xfd   :  { %v668_v31 = vshrl.u32 %v666_v30, 16  ;;  %v671_v32 = vshll.u32 %v666_v30, 16  ;;  %v703_v33 = vld [vmem:[#allocation2] sm:$0x11]  ;;  %v765_v34 = vld [vmem:[#allocation2] sm:$0xcc] }
  0xfe   :  { %v7130_v37 = vrot.slane %v489_v20, 5  ;;  %v767_v38 = vshrl.u32 %v765_v34, 16  ;;  %v770_v39 = vshll.u32 %v765_v34, 16  ;;  %v802_v40 = vld [vmem:[#allocation2] sm:$0x66]  ;;  %vm239_vm10 = vcmp.gt.f32.partialorder %v7090_v50, 0.0  ;;  %v228_v48 = vpop.f32.mrf.mxu0 }
  0xff   :  { %639 = vst [vmem:[#allocation3 + $0x38] sm:$0x11] %v5383_v29  ;;  %704 = vst [vmem:[#allocation3 + $0x48] sm:$0x11] %v703_v33  ;;  %v7134_v42 = vrot.slane %v586_v28, 10  ;;  %v7136_v43 = vrot.slane %v668_v31, 6 }
 0x100   :  { %v804_v44 = vshrl.u32 %v802_v40, 16  ;;  %v807_v46 = vshll.u32 %v802_v40, 16  ;;  %v391_v47 = vld [vmem:[#allocation2 + $0x18] sm:$0x11]  ;;  %v7138_v49 = vrot.slane %v671_v32, 7  ;;  %v7140_v51 = vrot.slane %v767_v38, 6  ;;  %v229_v62 = vpop.f32.mrf.mxu0 }
 0x101   :  { %v7142_v52 = vrot.slane %v770_v39, 7  ;;  %v401_v53 = vshll.u32 %v391_v47, 16  ;;  %v420_v54 = vld [vmem:[#allocation2 + $0x18] sm:$0x22]  ;;  %v538_v58 = vld [vmem:[#allocation2 + $0x18] sm:$0x11]  ;;  %v492_v24 = vor.u32 %v7130_v37, %v7128_v36 }
 0x102   :  { %v7144_v55 = vrot.slane %v804_v44, 5  ;;  %v7146_v56 = vrot.slane %v807_v46, 6  ;;  %v508_v57 = vld [vmem:[#allocation2 + $0x18] sm:$0x22]  ;;  %421 = vst [vmem:[#allocation3 + $0x58] sm:$0x22] %v420_v54  ;;  %v674_v26 = vor.u32 %v7138_v49, %v7136_v43 }
 0x103   :  { %v403_v1 = vrot.slane %v401_v53, 7  ;;  %v540_v2 = vrot.slane %v538_v58, 7  ;;  %v584_v3 = vld [vmem:[#allocation2 + $0x18] sm:$0x11]  ;;  %v610_v4 = vld [vmem:[#allocation2 + $0x18] sm:$0x22]  ;;  %v773_v28 = vor.u32 %v7142_v52, %v7140_v51 }
 0x104   :  { %509 = vst [vmem:[#allocation3 + $0x28] sm:$0x22] %v508_v57  ;;  %v591_v41 = vshll.u32 %v584_v3, 16  ;;  %v640_v63 = vld [vmem:[#allocation2 + $0x18] sm:$0x44]  ;;  %vm240_vm12 = vcmp.gt.f32.partialorder %v7092_v59, 0.0 }
 0x105   :  { %v7164_v10 = vld [vmem:[#allocation2 + $0x18] sm:$0x88]  ;;  %611 = vst [vmem:[#allocation3 + $0x60] sm:$0x22] %v610_v4  ;;  %v5384_v20 = vrot.slane %v640_v63, 9  ;;  %vm241_vm13 = vcmp.gt.f32.partialorder %v7100_v5, 0.0  ;;  %v404_v6 = vsel %vm7156_vm11, %v7124_v27, %v403_v1  ;;  %v810_v27 = vor.u32 %v7146_v56, %v7144_v55 }
 0x106   :  { %v705_v21 = vld [vmem:[#allocation2 + $0x18] sm:$0x22]  ;;  %v735_v22 = vld [vmem:[#allocation2 + $0x18] sm:$0x11]  ;;  %542 = vst [vmem:[#allocation3 + $0x78] sm:$0x22] %v540_v2 }
 0x107   :  { %v593_v12 = vrot.slane %v591_v41, 7  ;;  %v737_v13 = vrot.slane %v735_v22, 7  ;;  %v7177_v23 = vld [vmem:[#allocation2 + $0x18] sm:$0x88]  ;;  %706 = vst [vmem:[#allocation3 + $0x48] sm:$0x22] %v705_v21 }
 0x108   :  { %v7179_v18 = vld [vmem:[#allocation2 + $0x18] sm:$0xcc]  ;;  %406 = vst [vmem:[#allocation3 + $0x20] sm:$0x22] %v404_v6  ;;  %v681_v7 = vshrl.u32 %v7164_v10, 16  ;;  %vm242_vm14 = vcmp.gt.f32.partialorder %v7114_v16, 0.0 }
 0x109   :  { %645 = vst [vmem:[#allocation3 + $0x38] sm:$0x22] %v5384_v20  ;;  %v324_v11 = vld [vmem:[#allocation2 + $0x30] sm:$0x11]  ;;  %739 = vst [vmem:[#allocation3 + $0x30] sm:$0x22] %v737_v13  ;;  %v594_v32 = vsel %vm7156_vm11, %v7134_v42, %v593_v12 }
 0x10a   :  { %v252_v29 = vmul.f32 0.2, %v7088_v45  ;;  %v253_v30 = vmul.f32 0.2, %v7090_v50  ;;  %v254_v31 = vmul.f32 0.2, %v7092_v59 }
 0x10b   :  { %325 = vst [vmem:[#allocation3 + $0x40] sm:$0x11] %v324_v11  ;;  %v780_v33 = vshrl.u32 %v7177_v23, 16  ;;  %v816_v34 = vshrl.u32 %v7179_v18, 16  ;;  %v819_v36 = vshll.u32 %v7179_v18, 16  ;;  %vm243_vm15 = vcmp.gt.f32.partialorder %v7120_v25, 0.0 }
 0x10c   :  { %v255_v37 = vmul.f32 0.2, %v7100_v5  ;;  %596 = vst [vmem:[#allocation3 + $0x10] sm:$0x22] %v594_v32  ;;  %v266_v38 = vsel %vm238_vm9, %v7088_v45, %v252_v29  ;;  %v267_v39 = vsel %vm239_vm10, %v7090_v50, %v253_v30  ;;  %v268_v40 = vsel %vm240_vm12, %v7092_v59, %v254_v31  ;;  %v326_v43 = vld [vmem:[#allocation2] sm:$0x22] }
 0x10d   :  { %v256_v42 = vmul.f32 0.2, %v7114_v16  ;;  %v444_v44 = vld [vmem:[#allocation2 + $0x30] sm:$0x66]  ;;  %v456_v46 = vld [vmem:[#allocation2] sm:$0xcc]  ;;  %v5849_v47 = vpack.c.bf16 %v266_v38, %v7152_v60  ;;  %v5850_v48 = vpack.c.bf16 %v268_v40, %v267_v39 }
 0x10e   :  { %v269_v45 = vsel %vm241_vm13, %v7100_v5, %v255_v37  ;;  %327 = vst [vmem:[#allocation3 + $0x40] sm:$0x22] %v326_v43  ;;  %v257_v59 = vmul.f32 0.2, %v7120_v25  ;;  %vm244_vm0 = vcmp.gt.f32.partialorder %v7126_v35, 0.0  ;;  %v359_v52 = vrot.slane %v358_v8, 4 }
 0x10f   :  { %v270_v50 = vsel %vm242_vm14, %v7114_v16, %v256_v42  ;;  %v258_v49 = vmul.f32 0.2, %v7126_v35  ;;  %320 = vst [vmem:[#allocation2 + $0x10] sm:$0xff] %v5849_v47  ;;  %321 = vst [vmem:[#allocation2 + $0x8] sm:$0xff] %v5850_v48  ;;  %v371_v53 = vrot.slane %v370_v15, 4  ;;  %v481_v54 = vrot.slane %v480_v9, 4 }
 0x110   :  { %v5851_v51 = vpack.c.bf16 %v270_v50, %v269_v45  ;;  %v271_v5 = vsel %vm243_vm15, %v7120_v25, %v257_v59  ;;  %v493_v56 = vrot.slane %v492_v24, 4  ;;  %v446_v57 = vshrl.u32 %v444_v44, 16  ;;  %361 = vst [vmem:[#allocation3 + $0x8] sm:$0x11] %v359_v52 }
 0x111   :  { %v272_v55 = vsel %vm244_vm0, %v7126_v35, %v258_v49  ;;  %373 = vst [vmem:[#allocation3 + $0x8] sm:$0x22] %v371_v53  ;;  %483 = vst [vmem:[#allocation3 + $0x70] sm:$0x11] %v481_v54  ;;  %v449_v58 = vshll.u32 %v444_v44, 16  ;;  %v458_v60 = vshrl.u32 %v456_v46, 16 }
 0x112   :  { %322 = vst [vmem:[#allocation2 + $0x20] sm:$0xff] %v5851_v51  ;;  %v5852_v16 = vpack.c.bf16 %v272_v55, %v271_v5  ;;  %v461_v62 = vshll.u32 %v456_v46, 16  ;;  %495 = vst [vmem:[#allocation3 + $0x70] sm:$0x22] %v493_v56  ;;  %v580_v1 = vrot.slane %v579_v19, 4  ;;  %v387_v2 = vrot.slane %v386_v0, 4 }
 0x113   :  { %v675_v3 = vrot.slane %v674_v26, 4  ;;  %v7227_v25 = vrot.slane %v681_v7, 10  ;;  %v811_v35 = vrot.slane %v810_v27, 4  ;;  %v7229_v4 = vrot.slane %v780_v33, 10 }
 0x114   :  { %323 = vst [vmem:[#allocation2 + $0x28] sm:$0xff] %v5852_v16  ;;  %v7231_v8 = vrot.slane %v816_v34, 5  ;;  %v7233_v9 = vrot.slane %v819_v36, 6  ;;  %582 = vst [vmem:[#allocation3 + $0x10] sm:$0x11] %v580_v1  ;;  %v774_v41 = vrot.slane %v773_v28, 4 }
 0x115   :  { %389 = vst [vmem:[#allocation3 + $0x20] sm:$0x11] %v387_v2  ;;  %677 = vst [vmem:[#allocation3 + $0x50] sm:$0x11] %v675_v3  ;;  %v448_v14 = vrot.slane %v446_v57, 5  ;;  %v451_v17 = vrot.slane %v449_v58, 6 }
 0x116   :  { %v460_v63 = vrot.slane %v458_v60, 5  ;;  %v463_v10 = vrot.slane %v461_v62, 6  ;;  %813 = vst [vmem:[#allocation3] sm:$0x11] %v811_v35  ;;  %v374_v15 = vld [vmem:[#allocation2 + $0x10] sm:$0x44]  ;;  %v822_v33 = vor.u32 %v7233_v9, %v7231_v8 }
 0x117   :  { %v407_v19 = vld [vmem:[#allocation2 + $0x10] sm:$0x88]  ;;  %v496_v20 = vld [vmem:[#allocation2 + $0x10] sm:$0x22]  ;;  %776 = vst [vmem:[#allocation3 + $0x18] sm:$0x11] %v774_v41  ;;  %v452_v27 = vor.u32 %v451_v17, %v448_v14 }
 0x118   :  { %v5378_v21 = vrot.slane %v407_v19, 9  ;;  %v498_v22 = vrot.slane %v496_v20, 7  ;;  %v543_v0 = vld [vmem:[#allocation2 + $0x10] sm:$0x88]  ;;  %375 = vst [vmem:[#allocation3 + $0x8] sm:$0x44] %v374_v15  ;;  %v464_v32 = vor.u32 %v463_v10, %v460_v63 }
 0x119   :  { %v597_v6 = vld [vmem:[#allocation2 + $0x10] sm:$0x88]  ;;  %v549_v12 = vshrl.u32 %v543_v0, 16  ;;  %v679_v23 = vld [vmem:[#allocation2 + $0x10] sm:$0x11]  ;;  %v453_v59 = vrot.slane %v452_v27, 4 }
 0x11a   :  { %v5382_v13 = vrot.slane %v597_v6, 9  ;;  %v740_v18 = vld [vmem:[#allocation2 + $0x10] sm:$0x88]  ;;  %v686_v24 = vshll.u32 %v679_v23, 16  ;;  %v778_v7 = vld [vmem:[#allocation2 + $0x10] sm:$0x11] }
 0x11b   :  { %v743_v26 = vshrl.u32 %v740_v18, 16  ;;  %412 = vst [vmem:[#allocation3 + $0x20] sm:$0x44] %v5378_v21  ;;  %500 = vst [vmem:[#allocation3 + $0x70] sm:$0x44] %v498_v22  ;;  %v5380_v28 = vrot.slane %v549_v12, 9 }
 0x11c   :  { %v376_v11 = vld [vmem:[#allocation2 + $0x8] sm:$0x88]  ;;  %v785_v29 = vshll.u32 %v778_v7, 16  ;;  %602 = vst [vmem:[#allocation3 + $0x10] sm:$0x44] %v5382_v13  ;;  %v688_v34 = vrot.slane %v686_v24, 7 }
 0x11d   :  { %v422_v30 = vld [vmem:[#allocation2 + $0x8] sm:$0x33]  ;;  %v501_v31 = vld [vmem:[#allocation2 + $0x8] sm:$0x44]  ;;  %377 = vst [vmem:[#allocation3 + $0x8] sm:$0x88] %v376_v11 }
 0x11e   :  { %v7237_v36 = vrot.slane %v743_v26, 9  ;;  %v424_v37 = vshrl.u32 %v422_v30, 16  ;;  %v427_v38 = vshll.u32 %v422_v30, 16  ;;  %v510_v39 = vld [vmem:[#allocation2 + $0x8] sm:$0x33]  ;;  %v7239_v40 = vrot.slane %v785_v29, 7 }
 0x11f   :  { %v503_v42 = vrot.slane %v501_v31, 7  ;;  %v512_v43 = vshrl.u32 %v510_v39, 16  ;;  %v515_v44 = vshll.u32 %v510_v39, 16  ;;  %v544_v46 = vld [vmem:[#allocation2 + $0x8] sm:$0x11]  ;;  %v465_v58 = vrot.slane %v464_v32, 4 }
 0x120   :  { %v426_v47 = vrot.slane %v424_v37, 6  ;;  %v429_v48 = vrot.slane %v427_v38, 7  ;;  %v554_v45 = vshll.u32 %v544_v46, 16  ;;  %v612_v50 = vld [vmem:[#allocation2 + $0x8] sm:$0x33]  ;;  %v689_v20 = vsel %vm7156_vm11, %v7227_v25, %v688_v34 }
 0x121   :  { %v514_v49 = vrot.slane %v512_v43, 6  ;;  %v517_v51 = vrot.slane %v515_v44, 7  ;;  %v614_v52 = vshrl.u32 %v612_v50, 16  ;;  %v617_v53 = vshll.u32 %v612_v50, 16  ;;  %v646_v54 = vld [vmem:[#allocation2 + $0x8] sm:$0x66] }
 0x122   :  { %505 = vst [vmem:[#allocation3 + $0x70] sm:$0x88] %v503_v42  ;;  %v556_v55 = vrot.slane %v554_v45, 6  ;;  %v648_v56 = vshrl.u32 %v646_v54, 16  ;;  %v651_v57 = vshll.u32 %v646_v54, 16  ;;  %v430_v3 = vor.u32 %v429_v48, %v426_v47 }
 0x123   :  { %v692_v16 = vld [vmem:[#allocation2 + $0x8] sm:$0x88]  ;;  %455 = vst [vmem:[#allocation3 + $0x68] sm:$0x11] %v453_v59  ;;  %v616_v60 = vrot.slane %v614_v52, 6  ;;  %v619_v62 = vrot.slane %v617_v53, 7  ;;  %v518_v19 = vor.u32 %v517_v51, %v514_v49  ;;  %v788_v7 = vsel %vm7156_vm11, %v7229_v4, %v7239_v40 }
 0x124   :  { %v5386_v1 = vrot.slane %v692_v16, 9  ;;  %v707_v2 = vld [vmem:[#allocation2 + $0x8] sm:$0x33]  ;;  %v650_v35 = vrot.slane %v648_v56, 7  ;;  %467 = vst [vmem:[#allocation3 + $0x68] sm:$0x22] %v465_v58  ;;  %v557_v14 = vsel %vm7243_vm3, %v5380_v28, %v556_v55 }
 0x125   :  { %v709_v8 = vshrl.u32 %v707_v2, 16  ;;  %v712_v9 = vshll.u32 %v707_v2, 16  ;;  %v741_v41 = vld [vmem:[#allocation2 + $0x8] sm:$0x11]  ;;  %v791_v63 = vld [vmem:[#allocation2 + $0x8] sm:$0x88]  ;;  %v620_v15 = vor.u32 %v619_v62, %v616_v60 }
 0x126   :  { %v748_v17 = vshll.u32 %v741_v41, 16  ;;  %v826_v10 = vld [vmem:[#allocation2 + $0x8] sm:$0x44]  ;;  %697 = vst [vmem:[#allocation3 + $0x50] sm:$0x44] %v5386_v1  ;;  %v5390_v0 = vrot.slane %v791_v63, 9  ;;  %v653_v26 = vor.u32 %v651_v57, %v650_v35 }
 0x127   :  { %432 = vst [vmem:[#allocation3 + $0x58] sm:$0x44] %v430_v3  ;;  %559 = vst [vmem:[#allocation3 + $0x78] sm:$0x44] %v557_v14  ;;  %v711_v21 = vrot.slane %v709_v8, 6  ;;  %v714_v22 = vrot.slane %v712_v9, 7 }
 0x128   :  { %827 = vst [vmem:[#allocation3] sm:$0x44] %v826_v10  ;;  %v413_v6 = vld [vmem:[#allocation2 + $0x20] sm:$0x11]  ;;  %691 = vst [vmem:[#allocation3 + $0x50] sm:$0x22] %v689_v20 }
 0x129   :  { %v823_v12 = vrot.slane %v822_v33, 4  ;;  %v750_v13 = vrot.slane %v748_v17, 6  ;;  %v415_v23 = vrot.slane %v413_v6, 5  ;;  %v433_v18 = vld [vmem:[#allocation2 + $0x20] sm:$0x66]  ;;  %v715_v34 = vor.u32 %v714_v22, %v711_v21 }
 0x12a   :  { %v521_v24 = vld [vmem:[#allocation2 + $0x20] sm:$0x66]  ;;  %622 = vst [vmem:[#allocation3 + $0x60] sm:$0x44] %v620_v15  ;;  %520 = vst [vmem:[#allocation3 + $0x28] sm:$0x44] %v518_v19 }
 0x12b   :  { %796 = vst [vmem:[#allocation3 + $0x18] sm:$0x44] %v5390_v0  ;;  %v435_v25 = vshrl.u32 %v433_v18, 16  ;;  %v438_v11 = vshll.u32 %v433_v18, 16  ;;  %v523_v27 = vshrl.u32 %v521_v24, 16  ;;  %v526_v28 = vshll.u32 %v521_v24, 16 }
 0x12c   :  { %v560_v29 = vld [vmem:[#allocation2 + $0x20] sm:$0x33]  ;;  %825 = vst [vmem:[#allocation3] sm:$0x22] %v823_v12  ;;  %790 = vst [vmem:[#allocation3 + $0x18] sm:$0x22] %v788_v7  ;;  %v751_v37 = vsel %vm7243_vm3, %v7237_v36, %v750_v13 }
 0x12d   :  { %v562_v30 = vshrl.u32 %v560_v29, 16  ;;  %v565_v31 = vshll.u32 %v560_v29, 16  ;;  %v603_v32 = vld [vmem:[#allocation2 + $0x20] sm:$0x11]  ;;  %v623_v33 = vld [vmem:[#allocation2 + $0x20] sm:$0x66] }
 0x12e   :  { %417 = vst [vmem:[#allocation3 + $0x20] sm:$0x88] %v415_v23  ;;  %655 = vst [vmem:[#allocation3 + $0x38] sm:$0x44] %v653_v26  ;;  %v437_v61 = vrot.slane %v435_v25, 6  ;;  %v440_v4 = vrot.slane %v438_v11, 7 }
 0x12f   :  { %v525_v38 = vrot.slane %v523_v27, 6  ;;  %v528_v39 = vrot.slane %v526_v28, 7  ;;  %v656_v40 = vld [vmem:[#allocation2 + $0x20] sm:$0xcc]  ;;  %753 = vst [vmem:[#allocation3 + $0x30] sm:$0x44] %v751_v37 }
 0x130   :  { %v564_v42 = vrot.slane %v562_v30, 5  ;;  %v567_v43 = vrot.slane %v565_v31, 6  ;;  %v605_v44 = vrot.slane %v603_v32, 5  ;;  %v625_v46 = vshrl.u32 %v623_v33, 16  ;;  %v718_v47 = vld [vmem:[#allocation2 + $0x20] sm:$0x66] }
 0x131   :  { %717 = vst [vmem:[#allocation3 + $0x48] sm:$0x44] %v715_v34  ;;  %v628_v48 = vshll.u32 %v623_v33, 16  ;;  %v658_v45 = vshrl.u32 %v656_v40, 16  ;;  %v661_v50 = vshll.u32 %v656_v40, 16  ;;  %v720_v59 = vshrl.u32 %v718_v47, 16 }
 0x132   :  { %v754_v49 = vld [vmem:[#allocation2 + $0x20] sm:$0x33]  ;;  %v627_v51 = vrot.slane %v625_v46, 6  ;;  %v723_v36 = vshll.u32 %v718_v47, 16  ;;  %v828_v54 = vld [vmem:[#allocation2 + $0x20] sm:$0x88]  ;;  %v441_v58 = vor.u32 %v440_v4, %v437_v61  ;;  %v568_v17 = vor.u32 %v567_v43, %v564_v42 }
 0x133   :  { %v756_v52 = vshrl.u32 %v754_v49, 16  ;;  %v759_v53 = vshll.u32 %v754_v49, 16  ;;  %607 = vst [vmem:[#allocation3 + $0x10] sm:$0x88] %v605_v44  ;;  %v630_v5 = vrot.slane %v628_v48, 7  ;;  %v660_v55 = vrot.slane %v658_v45, 7 }
 0x134   :  { %v722_v56 = vrot.slane %v720_v59, 6  ;;  %829 = vst [vmem:[#allocation3] sm:$0x88] %v828_v54  ;;  %v698_v57 = vld [vmem:[#allocation2 + $0x28] sm:$0x11]  ;;  %v725_v60 = vrot.slane %v723_v36, 7  ;;  %v529_v63 = vor.u32 %v528_v39, %v525_v38 }
 0x135   :  { %v6346_v16 = vld [vmem:[%s8559_s2 + $0x370] ss:$8 sps:$4 sm:$0xff]   ;;  %v758_v62 = vrot.slane %v756_v52, 5  ;;  %v761_v1 = vrot.slane %v759_v53, 6  ;;  %v700_v2 = vrot.slane %v698_v57, 5  ;;  %v631_v14 = vor.u32 %v630_v5, %v627_v51 }
 0x136   :  { %v797_v3 = vld [vmem:[#allocation2 + $0x28] sm:$0x11]  ;;  %443 = vst [vmem:[#allocation3 + $0x58] sm:$0x88] %v441_v58  ;;  %v328_v10 = vld [vmem:[#allocation2 + $0x10] sm:$0x33]  ;;  %v726_v20 = vor.u32 %v725_v60, %v722_v56  ;;  %v663_v22 = vor.u32 %v661_v50, %v660_v55 }
 0x137   :  { %v6358_v35 = vld [vmem:[%s8559_s2 + $0x364] ss:$8 sps:$4 sm:$0xff]   ;;  %v799_v8 = vrot.slane %v797_v3, 5  ;;  %v6343_v9 = vld [vmem:[#allocation3 + $0x8] ss:$104 sps:$4 sm:$0xff]   ;;  %v762_v21 = vor.u32 %v761_v1, %v758_v62  ;;  %v330_v0 = vshrl.u32 %v328_v10, 16 }
 0x138   :  { %v6345_v41 = vld [vmem:[#allocation3 + $0xc] ss:$104 sps:$4 sm:$0xff]   ;;  %702 = vst [vmem:[#allocation3 + $0x50] sm:$0x88] %v700_v2  ;;  %v468_v19 = vld [vmem:[#allocation2 + $0x10] sm:$0x44] }
 0x139   :  { %v339_v15 = vld [vmem:[#allocation2 + $0x8] sm:$0x66]  ;;  %801 = vst [vmem:[#allocation3 + $0x18] sm:$0x88] %v799_v8  ;;  %1791 = vmatprep.mubr.bf16.mxu0 %v6345_v41  ;;  %v333_v6 = vshll.u32 %v328_v10, 16  ;;  %v332_v24 = vrot.slane %v330_v0, 6 }
 0x13a   :  { %v341_v12 = vshrl.u32 %v339_v15, 16  ;;  %v344_v13 = vshll.u32 %v339_v15, 16  ;;  %469 = vst [vmem:[#allocation3 + $0x68] sm:$0x44] %v468_v19  ;;  %v470_v23 = vld [vmem:[#allocation2 + $0x8] sm:$0x88]  ;;  %1792 = vmatmul.mubr.bf16.vlgmr.msra.gmra.mxu0 %v6343_v9 }
 0x13b   :  { %633 = vst [vmem:[#allocation3 + $0x60] sm:$0x88] %v631_v14  ;;  %570 = vst [vmem:[#allocation3 + $0x78] sm:$0x88] %v568_v17  ;;  %v6356_v18 = vld [vmem:[%s8559_s2 + $0x360] ss:$8 sps:$4 sm:$0xff]   ;;  %1866 = vmatpush1.bf16.msra.mxu0 %v6346_v16 }
 0x13c   :  { %531 = vst [vmem:[#allocation3 + $0x28] sm:$0x88] %v529_v63  ;;  %471 = vst [vmem:[#allocation3 + $0x68] sm:$0x88] %v470_v23  ;;  %v335_v26 = vrot.slane %v333_v6, 7  ;;  %v343_v7 = vrot.slane %v341_v12, 6  ;;  %1867 = vmatprep.subr.bf16.mxu0 %v6358_v35 }
 0x13d   :  { %728 = vst [vmem:[#allocation3 + $0x48] sm:$0x88] %v726_v20  ;;  %764 = vst [vmem:[#allocation3 + $0x30] sm:$0x88] %v762_v21  ;;  %v346_v25 = vrot.slane %v344_v13, 7  ;;  %v7274_v30 = vld [vmem:[#allocation3 + $0x58] sm:$0xff] }
 0x13e   :  { %665 = vst [vmem:[#allocation3 + $0x38] sm:$0x88] %v663_v22  ;;  %v6368_v11 = vld [vmem:[%s8559_s2 + $0x354] ss:$8 sps:$4 sm:$0xff]   ;;  %v336_v27 = vor.u32 %v335_v26, %v332_v24  ;;  %v6366_v29 = vld [vmem:[%s8559_s2 + $0x350] ss:$8 sps:$4 sm:$0xff]  }
 0x13f   :  { %v347_v28 = vor.u32 %v346_v25, %v343_v7  ;;  %1868 = vmatpush1.bf16.msra.mxu0 %v6356_v18  ;;  %v6375_v31 = vld [vmem:[%s8559_s2 + $0x344] ss:$8 sps:$4 sm:$0xff]   ;;  %v6373_v61 = vld [vmem:[%s8559_s2 + $0x340] ss:$8 sps:$4 sm:$0xff]   ;;  %v6385_v4 = vld [vmem:[%s8559_s2 + $0x334] ss:$8 sps:$4 sm:$0xff]  }
 0x140   :  { %338 = vst [vmem:[#allocation3 + $0x40] sm:$0x44] %v336_v27  ;;  %1869 = vmatprep.subr.bf16.mxu0 %v6368_v11  ;;  %v6353_v38 = vld [vmem:[%s8559_s2 + $0x270] ss:$8 sps:$4 sm:$0xff]   ;;  %v6365_v43 = vld [vmem:[%s8559_s2 + $0x264] ss:$8 sps:$4 sm:$0xff]  }
 0x141   :  { %349 = vst [vmem:[#allocation3 + $0x40] sm:$0x88] %v347_v28  ;;  %v6383_v44 = vld [vmem:[%s8559_s2 + $0x330] ss:$8 sps:$4 sm:$0xff]   ;;  %v6391_v46 = vld [vmem:[%s8559_s2 + $0x324] ss:$8 sps:$4 sm:$0xff]  }
 0x142   :  { %v7279_v32 = vld [vmem:[#allocation3 + $0x78] sm:$0xff]  ;;  %v6363_v47 = vld [vmem:[%s8559_s2 + $0x260] ss:$8 sps:$4 sm:$0xff]   ;;  %v6382_v51 = vld [vmem:[%s8559_s2 + $0x244] ss:$8 sps:$4 sm:$0xff]   ;;  %vm8569_vm6 = vcmask 1045509  }
 0x143   :  { %v5398_v37 = vcombine.high %v7274_v30, %v7279_v32  ;;  %1870 = vmatpush1.bf16.msra.mxu0 %v6366_v29  ;;  %v6372_v48 = vld [vmem:[%s8559_s2 + $0x254] ss:$8 sps:$4 sm:$0xff]   ;;  %v6389_v45 = vld [vmem:[%s8559_s2 + $0x320] ss:$8 sps:$4 sm:$0xff]   ;;  %v6370_v59 = vld [vmem:[%s8559_s2 + $0x250] ss:$8 sps:$4 sm:$0xff]   ;;  %v5397_v28 = vcombine.low %v7274_v30, %v7279_v32 }
 0x144   :  { %v6361_v33 = vld [vmem:[#allocation3 + $0x64] ss:$-48 sps:$4 sm:$0xff]   ;;  %v6369_v34 = vld [vmem:[#allocation3 + $0x60] ss:$-48 sps:$4 sm:$0xff]   ;;  %1871 = vmatprep.subr.bf16.mxu0 %v6375_v31  ;;  %vm8571_vm9 = vcmask 1043459   ;;  %vm7617_vm11 = vmand %vm8569_vm6, %vm2105_vm8  ;;  %vm8586_vm8 = vcmask 1047559  }
 0x145   :  { %1801 = vmatprep.mubr.bf16.mxu0 %v6361_v33  ;;  %v6359_v39 = vld [vmem:[#allocation3 + $0x14] ss:$56 sps:$4 sm:$0xff]   ;;  %v6397_v50 = vld [vmem:[%s8559_s2 + $0x314] ss:$8 sps:$4 sm:$0xff]   ;;  %v6376_v49 = vld [vmem:[#allocation3 + $0x10] ss:$56 sps:$4 sm:$0xff]  }
 0x146   :  { %1802 = vmatmul.mubr.bf16.gmra.mxu0 %v6369_v34  ;;  %v6395_v36 = vld [vmem:[%s8559_s2 + $0x310] ss:$8 sps:$4 sm:$0xff]   ;;  %v6379_v52 = vld [vmem:[#allocation3 + $0x24] ss:$8 sps:$4 sm:$0xff]   ;;  %v6380_v54 = vld [vmem:[%s8559_s2 + $0x240] ss:$8 sps:$4 sm:$0xff]  }
 0x147   :  { %1897 = vmatprep.mubr.bf16.mxu0 %v5398_v37  ;;  %1872 = vmatpush1.bf16.msra.mxu0 %v6373_v61  ;;  %v6403_v53 = vld [vmem:[%s8559_s2 + $0x304] ss:$8 sps:$4 sm:$0xff]   ;;  %v6388_v5 = vld [vmem:[%s8559_s2 + $0x234] ss:$8 sps:$4 sm:$0xff]   ;;  %v6401_v55 = vld [vmem:[%s8559_s2 + $0x300] ss:$8 sps:$4 sm:$0xff]  }
 0x148   :  { %v6350_v40 = vld [vmem:[#allocation3 + $0x40] ss:$40 sps:$4 sm:$0xff]   ;;  %v6352_v42 = vld [vmem:[#allocation3 + $0x44] ss:$40 sps:$4 sm:$0xff]   ;;  %1873 = vmatprep.subr.bf16.mxu0 %v6385_v4  ;;  %v840_v61 = vld [vmem:[#allocation3 + $0x38] sm:$0xff] }
 0x149   :  { %1738 = vmatprep.mubr.bf16.mxu1 %v6352_v42  ;;  %v6409_v56 = vld [vmem:[%s8559_s2 + $0x3f4] ss:$8 sps:$4 sm:$0xff]   ;;  %v6386_v57 = vld [vmem:[%s8559_s2 + $0x230] ss:$8 sps:$4 sm:$0xff]   ;;  %v6394_v16 = vld [vmem:[%s8559_s2 + $0x224] ss:$8 sps:$4 sm:$0xff]  }
 0x14a   :  { %1739 = vmatmul.mubr.bf16.vlgmr.msra.gmra.mxu1 %v6350_v40  ;;  %v6407_v58 = vld [vmem:[%s8559_s2 + $0x3f0] ss:$8 sps:$4 sm:$0xff]   ;;  %v6415_v60 = vld [vmem:[%s8559_s2 + $0x3e4] ss:$8 sps:$4 sm:$0xff]   ;;  %v6392_v62 = vld [vmem:[%s8559_s2 + $0x220] ss:$8 sps:$4 sm:$0xff]  }
 0x14b   :  { %1813 = vmatpush1.bf16.msra.mxu1 %v6353_v38  ;;  %1748 = vmatprep.mubr.bf16.mxu1 %v6359_v39  ;;  %v6400_v1 = vld [vmem:[%s8559_s2 + $0x214] ss:$8 sps:$4 sm:$0xff]   ;;  %v6413_v2 = vld [vmem:[%s8559_s2 + $0x3e0] ss:$8 sps:$4 sm:$0xff]   ;;  %v6398_v35 = vld [vmem:[%s8559_s2 + $0x210] ss:$8 sps:$4 sm:$0xff]  }
 0x14c   :  { %1814 = vmatprep.subr.bf16.mxu1 %v6365_v43  ;;  %1874 = vmatpush1.bf16.msra.mxu0 %v6383_v44  ;;  %v6421_v3 = vld [vmem:[%s8559_s2 + $0x3d4] ss:$8 sps:$4 sm:$0xff]   ;;  %v6406_v8 = vld [vmem:[%s8559_s2 + $0x204] ss:$8 sps:$4 sm:$0xff]   ;;  %v6419_v9 = vld [vmem:[%s8559_s2 + $0x3d0] ss:$8 sps:$4 sm:$0xff]  }
 0x14d   :  { %1875 = vmatprep.subr.bf16.mxu0 %v6391_v46  ;;  %v6427_v41 = vld [vmem:[%s8559_s2 + $0x3c4] ss:$8 sps:$4 sm:$0xff]   ;;  %v6404_v14 = vld [vmem:[%s8559_s2 + $0x200] ss:$8 sps:$4 sm:$0xff]   ;;  %v6412_v17 = vld [vmem:[%s8559_s2 + $0x2f4] ss:$8 sps:$4 sm:$0xff]  }
 0x14e   :  { %v6425_v63 = vld [vmem:[%s8559_s2 + $0x3c0] ss:$8 sps:$4 sm:$0xff]   ;;  %v6433_v10 = vld [vmem:[%s8559_s2 + $0x3b4] ss:$8 sps:$4 sm:$0xff]   ;;  %v6410_v15 = vld [vmem:[%s8559_s2 + $0x2f0] ss:$8 sps:$4 sm:$0xff]  }
 0x14f   :  { %1815 = vmatpush1.bf16.msra.mxu1 %v6363_v47  ;;  %v6418_v19 = vld [vmem:[%s8559_s2 + $0x2e4] ss:$8 sps:$4 sm:$0xff]   ;;  %v6431_v20 = vld [vmem:[%s8559_s2 + $0x3b0] ss:$8 sps:$4 sm:$0xff]   ;;  %v6416_v22 = vld [vmem:[%s8559_s2 + $0x2e0] ss:$8 sps:$4 sm:$0xff]  }
 0x150   :  { %1816 = vmatprep.subr.bf16.mxu1 %v6372_v48  ;;  %1876 = vmatpush1.bf16.msra.mxu0 %v6389_v45  ;;  %v6439_v21 = vld [vmem:[%s8559_s2 + $0x3a4] ss:$8 sps:$4 sm:$0xff]   ;;  %v6424_v0 = vld [vmem:[%s8559_s2 + $0x2d4] ss:$8 sps:$4 sm:$0xff]   ;;  %v6437_v6 = vld [vmem:[%s8559_s2 + $0x3a0] ss:$8 sps:$4 sm:$0xff]  }
 0x151   :  { %1877 = vmatprep.subr.bf16.mxu0 %v6397_v50  ;;  %v6445_v12 = vld [vmem:[%s8559_s2 + $0x394] ss:$8 sps:$4 sm:$0xff]   ;;  %v6422_v13 = vld [vmem:[%s8559_s2 + $0x2d0] ss:$8 sps:$4 sm:$0xff]   ;;  %v6430_v23 = vld [vmem:[%s8559_s2 + $0x2c4] ss:$8 sps:$4 sm:$0xff]  }
 0x152   :  { %1749 = vmatmul.mubr.bf16.gmra.mxu1 %v6376_v49  ;;  %v6443_v18 = vld [vmem:[%s8559_s2 + $0x390] ss:$8 sps:$4 sm:$0xff]   ;;  %v6451_v24 = vld [vmem:[%s8559_s2 + $0x384] ss:$8 sps:$4 sm:$0xff]   ;;  %v6428_v26 = vld [vmem:[%s8559_s2 + $0x2c0] ss:$8 sps:$4 sm:$0xff]  }
 0x153   :  { %1817 = vmatpush1.bf16.msra.mxu1 %v6370_v59  ;;  %1844 = vmatprep.mubr.bf16.mxu1 %v6379_v52  ;;  %v6436_v7 = vld [vmem:[%s8559_s2 + $0x2b4] ss:$8 sps:$4 sm:$0xff]   ;;  %v6449_v25 = vld [vmem:[%s8559_s2 + $0x380] ss:$8 sps:$4 sm:$0xff]   ;;  %v6434_v11 = vld [vmem:[%s8559_s2 + $0x2b0] ss:$8 sps:$4 sm:$0xff]  }
 0x154   :  { %1818 = vmatprep.subr.bf16.mxu1 %v6382_v51  ;;  %1878 = vmatpush1.bf16.msra.mxu0 %v6395_v36  ;;  %v6442_v27 = vld [vmem:[%s8559_s2 + $0x2a4] ss:$8 sps:$4 sm:$0xff]   ;;  %v6440_v31 = vld [vmem:[%s8559_s2 + $0x2a0] ss:$8 sps:$4 sm:$0xff]   ;;  %v6448_v33 = vld [vmem:[%s8559_s2 + $0x294] ss:$8 sps:$4 sm:$0xff]  }
 0x155   :  { %1879 = vmatprep.subr.bf16.mxu0 %v6403_v53  ;;  %v6455_v29 = vld [vmem:[#allocation3 + $0x54] ss:$-80 sps:$4 sm:$0xff]   ;;  %v6446_v34 = vld [vmem:[%s8559_s2 + $0x290] ss:$8 sps:$4 sm:$0xff]   ;;  %v6452_v37 = vld [vmem:[%s8559_s2 + $0x280] ss:$8 sps:$4 sm:$0xff]  }
 0x156   :  { %v6454_v30 = vld [vmem:[%s8559_s2 + $0x284] ss:$8 sps:$4 sm:$0xff]   ;;  %v6457_v32 = vld [vmem:[#allocation3 + $0x50] ss:$-80 sps:$4 sm:$0xff]   ;;  %v844_v4 = vld [vmem:[#allocation3 + $0x18] sm:$0xff] }
 0x157   :  { %1819 = vmatpush1.bf16.msra.mxu1 %v6380_v54  ;;  %v6377_v38 = vld [vmem:[#allocation3 + $0x20] ss:$8 sps:$4 sm:$0xff]   ;;  %v5404_v39 = vcombine.high %v840_v61, %v844_v4  ;;  %v5403_v40 = vcombine.low %v840_v61, %v844_v4  ;;  %v6462_v47 = vld [vmem:[%s8560_s6 + $0xf0] sm:$0xff]   ;;  %v6466_v59 = vld [vmem:[%s8560_s6 + $0xe8] sm:$0xff]   ;;  %vm2118_vm10 = vsmask.f32 7950 }
 0x158   :  { %1820 = vmatprep.subr.bf16.mxu1 %v6388_v5  ;;  %1880 = vmatpush1.bf16.msra.mxu0 %v6401_v55  ;;  %v6458_v42 = vld [vmem:[%s8560_s6 + $0xf8] sm:$0xff]   ;;  %v6463_v48 = vld [vmem:[%s8560_s6 + $0xb0] sm:$0xff]   ;;  %v6467_v49 = vld [vmem:[%s8560_s6 + $0xa8] sm:$0xff]  }
 0x159   :  { %1881 = vmatprep.subr.bf16.mxu0 %v6409_v56  ;;  %v6459_v43 = vld [vmem:[%s8560_s6 + $0xb8] sm:$0xff]   ;;  %v6464_v45 = vld [vmem:[%s8560_s6 + $0x70] sm:$0xff]   ;;  %v6468_v36 = vld [vmem:[%s8560_s6 + $0x68] sm:$0xff]  }
 0x15a   :  { %v6460_v44 = vld [vmem:[%s8560_s6 + $0x78] sm:$0xff]   ;;  %v6465_v50 = vld [vmem:[%s8560_s6 + $0x30] sm:$0xff]   ;;  %v6469_v52 = vld [vmem:[%s8560_s6 + $0x28] sm:$0xff]  }
 0x15b   :  { %1821 = vmatpush1.bf16.msra.mxu1 %v6386_v57  ;;  %v6461_v46 = vld [vmem:[%s8560_s6 + $0x38] sm:$0xff]   ;;  %v6470_v53 = vld [vmem:[%s8560_s6 + $0xe0] sm:$0xff]   ;;  %vm7623_vm12 = vmand %vm8571_vm9, %vm2118_vm10  ;;  %vm8590_vm10 = vsmask.f32 7938  ;;  %vm8591_vm9 = vcmask 1040384  }
 0x15c   :  { %1822 = vmatprep.subr.bf16.mxu1 %v6394_v16  ;;  %1882 = vmatpush2.bf16.msra.mxu0 %v6407_v58  ;;  %v6471_v54 = vld [vmem:[%s8560_s6 + $0xa0] sm:$0xff]   ;;  %v6474_v57 = vld [vmem:[%s8560_s6 + $0xd8] sm:$0xff]   ;;  %vm7632_vm6 = vmand %vm8586_vm8, %vm8585_vm5  ;;  %vm8597_vm8 = vsmask.f32 7946 }
 0x15d   :  { %1883 = vmatprep.subr.bf16.mxu0 %v6415_v60  ;;  %v6472_v55 = vld [vmem:[%s8560_s6 + $0x60] sm:$0xff]   ;;  %v6475_v16 = vld [vmem:[%s8560_s6 + $0x98] sm:$0xff]   ;;  %vm7639_vm0 = vmand %vm8591_vm9, %vm8590_vm10  ;;  %vm8600_vm9 = vcmask 1046534   ;;  %vm8601_vm10 = vsmask.f32 1280 }
 0x15e   :  { %v6473_v56 = vld [vmem:[%s8560_s6 + $0x20] sm:$0xff]   ;;  %v6476_v60 = vld [vmem:[%s8560_s6 + $0x58] sm:$0xff]  }
 0x15f   :  { %1823 = vmatpush1.bf16.msra.mxu1 %v6392_v62  ;;  %v6477_v62 = vld [vmem:[%s8560_s6 + $0x18] sm:$0xff]  }
 0x160   :  { %1824 = vmatprep.subr.bf16.mxu1 %v6400_v1  ;;  %1884 = vmatpush2.bf16.msra.mxu0 %v6413_v2  ;;  %v6478_v1 = vld [vmem:[%s8560_s6 + $0xd0] sm:$0xff]  }
 0x161   :  { %1885 = vmatprep.subr.bf16.mxu0 %v6421_v3  ;;  %v6479_v2 = vld [vmem:[%s8560_s6 + $0x90] sm:$0xff]  }
 0x163   :  { %1825 = vmatpush1.bf16.msra.mxu1 %v6398_v35 }
 0x164   :  { %1826 = vmatprep.subr.bf16.mxu1 %v6406_v8  ;;  %1886 = vmatpush2.bf16.msra.mxu0 %v6419_v9  ;;  %v6480_v8 = vld [vmem:[%s8560_s6 + $0x50] sm:$0xff]  }
 0x165   :  { %1887 = vmatprep.subr.bf16.mxu0 %v6427_v41  ;;  %v6481_v9 = vld [vmem:[%s8560_s6 + $0x10] sm:$0xff]   ;;  %v6482_v41 = vld [vmem:[%s8560_s6 + $0xc8] sm:$0xff]  }
 0x167   :  { %1827 = vmatpush1.bf16.msra.mxu1 %v6404_v14  ;;  %v6483_v14 = vld [vmem:[%s8560_s6 + $0x88] sm:$0xff]  }
 0x168   :  { %1828 = vmatprep.subr.bf16.mxu1 %v6412_v17  ;;  %1888 = vmatpush2.bf16.msra.mxu0 %v6425_v63 }
 0x169   :  { %1889 = vmatprep.subr.bf16.mxu0 %v6433_v10  ;;  %v6484_v10 = vld [vmem:[%s8560_s6 + $0x48] sm:$0xff]  }
 0x16b   :  { %1829 = vmatpush2.bf16.msra.mxu1 %v6410_v15  ;;  %v6485_v15 = vld [vmem:[%s8560_s6 + $0x8] sm:$0xff]  }
 0x16c   :  { %1830 = vmatprep.subr.bf16.mxu1 %v6418_v19  ;;  %1890 = vmatpush2.bf16.msra.mxu0 %v6431_v20  ;;  %v6486_v19 = vld [vmem:[%s8560_s6 + $0xc0] sm:$0xff]  }
 0x16d   :  { %1891 = vmatprep.subr.bf16.mxu0 %v6439_v21  ;;  %v6487_v20 = vld [vmem:[%s8560_s6 + $0x80] sm:$0xff]  }
 0x16f   :  { %1831 = vmatpush2.bf16.msra.mxu1 %v6416_v22 }
 0x170   :  { %1832 = vmatprep.subr.bf16.mxu1 %v6424_v0  ;;  %1892 = vmatpush2.bf16.msra.mxu0 %v6437_v6  ;;  %v6488_v0 = vld [vmem:[%s8560_s6 + $0x40] sm:$0xff]  }
 0x171   :  { %1893 = vmatprep.subr.bf16.mxu0 %v6445_v12  ;;  %v6489_v6 = vld [vmem:[%s8560_s6] sm:$0xff]   ;;  %v6492_v12 = vld [vmem:[%s8560_s6 + $0x1f8] sm:$0xff]  }
 0x173   :  { %1833 = vmatpush2.bf16.msra.mxu1 %v6422_v13 }
 0x174   :  { %1834 = vmatprep.subr.bf16.mxu1 %v6430_v23  ;;  %1894 = vmatpush2.bf16.msra.mxu0 %v6443_v18  ;;  %v976_v18 = vlaneseq }
 0x175   :  { %1895 = vmatprep.subr.bf16.mxu0 %v6451_v24  ;;  %v6498_v24 = vld [vmem:[%s8560_s6 + $0x178] sm:$0xff]  }
 0x177   :  { %1835 = vmatpush2.bf16.msra.mxu1 %v6428_v26 }
 0x178   :  { %1836 = vmatprep.subr.bf16.mxu1 %v6436_v7  ;;  %1896 = vmatpush2.bf16.msra.mxu0 %v6449_v25 }
 0x179   :  { %5879 = vmatprep.subr.bf16.mxu0 %v6458_v42 }
 0x17b   :  { %1837 = vmatpush2.bf16.msra.mxu1 %v6434_v11  ;;  %1898 = vmatmul.mubr.bf16.vlgmr.msra.gmra.mxu0 %v5397_v28  ;;  %v977_v11 = vshrl.u32 %v976_v18, 7 }
 0x17c   :  { %1838 = vmatprep.subr.bf16.mxu1 %v6442_v27  ;;  %1907 = vmatprep.mubr.bf16.mxu0 %v6455_v29 }
 0x17d   :  { %5880 = vmatpush3.bf16.msra.mxu0 %v6459_v43  ;;  %v7563_v29 = vsub.s32 0, %v977_v11 }
 0x17e   :  { %5881 = vmatprep.subr.bf16.mxu0 %v6462_v47 }
 0x17f   :  { %1839 = vmatpush2.bf16.msra.mxu1 %v6440_v31  ;;  %v974_v31 = vld [vmem:[%s8561_s3] sm:$0x3] }
 0x180   :  { %1840 = vmatprep.subr.bf16.mxu1 %v6448_v33 }
 0x181   :  { %5882 = vmatpush3.bf16.msra.mxu0 %v6463_v48 }
 0x182   :  { %5883 = vmatprep.subr.bf16.mxu0 %v6466_v59 }
 0x183   :  { %1841 = vmatpush2.bf16.msra.mxu1 %v6446_v34  ;;  %1908 = vmatmul.mubr.bf16.gmra.mxu0 %v6457_v32  ;;  %v7568_v34 = vsub.s32 1, %v977_v11  ;;  %v979_v32 = vrot.slane %v974_v31, %v7563_v29 }
 0x184   :  { %1842 = vmatprep.subr.bf16.mxu1 %v6454_v30 }
 0x185   :  { %5884 = vmatpush3.bf16.msra.mxu0 %v6467_v49  ;;  %v983_v61 = vrot.slane %v974_v31, %v7568_v34 }
 0x186   :  { %5885 = vmatprep.subr.bf16.mxu0 %v6470_v53 }
 0x187   :  { %1843 = vmatpush2.bf16.msra.mxu1 %v6452_v37 }
 0x188   :  { %5857 = vmatprep.subr.bf16.mxu1 %v6460_v44 }
 0x189   :  { %5886 = vmatpush3.bf16.msra.mxu0 %v6471_v54 }
 0x18a   :  { %1845 = vmatmul.mubr.bf16.vlgmr.msra.gmra.mxu1 %v6377_v38  ;;  %5887 = vmatprep.subr.bf16.mxu0 %v6474_v57 }
 0x18b   :  { %1854 = vmatprep.mubr.bf16.mxu1 %v5404_v39  ;;  %5858 = vmatpush3.bf16.msra.mxu1 %v6461_v46 }
 0x18c   :  { %5859 = vmatprep.subr.bf16.mxu1 %v6464_v45 }
 0x18d   :  { %5888 = vmatpush3.bf16.msra.mxu0 %v6475_v16 }
 0x18e   :  { %5889 = vmatprep.subr.bf16.mxu0 %v6478_v1 }
 0x18f   :  { %5860 = vmatpush3.bf16.msra.mxu1 %v6465_v50 }
 0x190   :  { %5861 = vmatprep.subr.bf16.mxu1 %v6468_v36 }
 0x191   :  { %5890 = vmatpush3.bf16.msra.mxu0 %v6479_v2 }
 0x192   :  { %1855 = vmatmul.mubr.bf16.gmra.mxu1 %v5403_v40  ;;  %5891 = vmatprep.subr.bf16.mxu0 %v6482_v41 }
 0x193   :  { %5862 = vmatpush3.bf16.msra.mxu1 %v6469_v52 }
 0x194   :  { %5863 = vmatprep.subr.bf16.mxu1 %v6472_v55 }
 0x195   :  { %5892 = vmatpush3.bf16.msra.mxu0 %v6483_v14 }
 0x196   :  { %5893 = vmatprep.subr.bf16.mxu0 %v6486_v19 }
 0x197   :  { %5864 = vmatpush3.bf16.msra.mxu1 %v6473_v56 }
 0x198   :  { %5865 = vmatprep.subr.bf16.mxu1 %v6476_v60 }
 0x199   :  { %5894 = vmatpush3.bf16.msra.mxu0 %v6487_v20 }
 0x19a   :  { %5923 = vmatprep.subr.bf16.mxu0 %v6492_v12 }
 0x19b   :  { %5866 = vmatpush3.bf16.msra.mxu1 %v6477_v62 }
 0x19c   :  { %5867 = vmatprep.subr.bf16.mxu1 %v6480_v8 }
 0x19f   :  { %5868 = vmatpush3.bf16.msra.mxu1 %v6481_v9 }
 0x1a0   :  { %5869 = vmatprep.subr.bf16.mxu1 %v6484_v10 }
 0x1a3   :  { %5870 = vmatpush3.bf16.msra.mxu1 %v6485_v15 }
 0x1a4   :  { %5871 = vmatprep.subr.bf16.mxu1 %v6488_v0 }
 0x1a7   :  { %5872 = vmatpush3.bf16.msra.mxu1 %v6489_v6 }
 0x1a8   :  { %5901 = vmatprep.subr.bf16.mxu1 %v6498_v24 }
 0x1fa   :  { %v7483_v51 = vpop.f32.mrf.mxu0 }
 0x1fc   :  { %v7497_v5 = vpop.f32.mrf.mxu0 }
 0x1fe   :  { %v7511_v58 = vpop.f32.mrf.mxu0 }
 0x200   :  { %v7525_v35 = vpop.f32.mrf.mxu0 }
 0x206   :  { %v1803_v63 = vpop.f32.mrf.mxu0 }
 0x208   :  { %v1805_v22 = vpop.f32.mrf.mxu0 }
 0x20a   :  { %v1740_v3 = vpop.f32.mrf.mxu1  ;;  %v1807_v23 = vpop.f32.mrf.mxu0 }
 0x20b   :  { %v1741_v40 = vadd.f32 %v1740_v3, %v979_v32 }
 0x20c   :  { %v1742_v17 = vpop.f32.mrf.mxu1  ;;  %v1809_v7 = vpop.f32.mrf.mxu0 }
 0x20d   :  { %v1743_v44 = vadd.f32 %v1742_v17, %v983_v61  ;;  %v1794_v59 = vadd.f32 %v7483_v51, %v1741_v40 }
 0x20e   :  { %v1744_v21 = vpop.f32.mrf.mxu1 }
 0x20f   :  { %v1745_v4 = vadd.f32 %v1744_v21, %v979_v32  ;;  %v1796_v55 = vadd.f32 %v7497_v5, %v1743_v44 }
 0x210   :  { %v1746_v13 = vpop.f32.mrf.mxu1 }
 0x211   :  { %v1747_v42 = vadd.f32 %v1746_v13, %v983_v61  ;;  %v1798_v47 = vadd.f32 %v7511_v58, %v1745_v4 }
 0x212   :  { %v1750_v26 = vpop.f32.mrf.mxu1 }
 0x213   :  { %v1751_v46 = vadd.f32 %v1750_v26, %v979_v32  ;;  %v1800_v36 = vadd.f32 %v7525_v35, %v1747_v42 }
 0x214   :  { %v1752_v27 = vpop.f32.mrf.mxu1 }
 0x215   :  { %v1753_v50 = vadd.f32 %v1752_v27, %v983_v61  ;;  %v1804_v57 = vadd.f32 %v1803_v63, %v1751_v46 }
 0x216   :  { %v1754_v33 = vpop.f32.mrf.mxu1 }
 0x217   :  { %v1755_v52 = vadd.f32 %v1754_v33, %v979_v32  ;;  %v1806_v3 = vadd.f32 %v1805_v22, %v1753_v50 }
 0x218   :  { %v1756_v37 = vpop.f32.mrf.mxu1 }
 0x219   :  { %v1757_v16 = vadd.f32 %v1756_v37, %v983_v61  ;;  %v1808_v9 = vadd.f32 %v1807_v23, %v1755_v52 }
 0x21b   :  { %v1810_v15 = vadd.f32 %v1809_v7, %v1757_v16 }
 0x23b   :  { %v1899_v25 = vpop.f32.mrf.mxu0 }
 0x23d   :  { %v1901_v28 = vpop.f32.mrf.mxu0 }
 0x23f   :  { %v1903_v30 = vpop.f32.mrf.mxu0 }
 0x241   :  { %v1905_v39 = vpop.f32.mrf.mxu0 }
 0x243   :  { %v1909_v45 = vpop.f32.mrf.mxu0 }
 0x245   :  { %v1911_v60 = vpop.f32.mrf.mxu0 }
 0x247   :  { %v1913_v17 = vpop.f32.mrf.mxu0 }
 0x249   :  { %v1915_v18 = vpop.f32.mrf.mxu0 }
 0x24a   :  { %v1846_v38 = vpop.f32.mrf.mxu1 }
 0x24b   :  { %v1847_v54 = vadd.f32 %v1846_v38, %v1794_v59 }
 0x24c   :  { %v1848_v43 = vpop.f32.mrf.mxu1 }
 0x24d   :  { %v1849_v1 = vadd.f32 %v1848_v43, %v1796_v55  ;;  %v1900_v51 = vadd.f32 %v1899_v25, %v1847_v54 }
 0x24e   :  { %v1850_v48 = vpop.f32.mrf.mxu1 }
 0x24f   :  { %v1851_v49 = vadd.f32 %v1850_v48, %v1798_v47  ;;  %v1902_v19 = vadd.f32 %v1901_v28, %v1849_v1 }
 0x250   :  { %v1852_v53 = vpop.f32.mrf.mxu1 }
 0x251   :  { %v1853_v56 = vadd.f32 %v1852_v53, %v1800_v36  ;;  %v1904_v58 = vadd.f32 %v1903_v30, %v1851_v49 }
 0x252   :  { %v1856_v62 = vpop.f32.mrf.mxu1 }
 0x253   :  { %v1857_v2 = vadd.f32 %v1856_v62, %v1804_v57  ;;  %v1906_v41 = vadd.f32 %v1905_v39, %v1853_v56  ;;  %v1918_v5 = vadd.f32 %v1904_v58, %v1900_v51 }
 0x254   :  { %v1858_v8 = vpop.f32.mrf.mxu1 }
 0x255   :  { %v1910_v14 = vadd.f32 %v1909_v45, %v1857_v2  ;;  %v1859_v35 = vadd.f32 %v1858_v8, %v1806_v3  ;;  %v1927_v0 = vadd.f32 %v1906_v41, %v1902_v19 }
 0x256   :  { %v1860_v10 = vpop.f32.mrf.mxu1 }
 0x257   :  { %v1912_v20 = vadd.f32 %v1911_v60, %v1859_v35  ;;  %v1861_v63 = vadd.f32 %v1860_v10, %v1808_v9  ;;  %v1919_v6 = vadd.f32 %v1918_v5, %v1910_v14 }
 0x258   :  { %v1862_v21 = vpop.f32.mrf.mxu1 }
 0x259   :  { %v1914_v12 = vadd.f32 %v1913_v17, %v1861_v63  ;;  %v1863_v13 = vadd.f32 %v1862_v21, %v1810_v15  ;;  %v1928_v22 = vadd.f32 %v1927_v0, %v1912_v20  ;;  %v14_v21 = vstv %s8562_s7  ;;  %v1987_v0 = vld [vmem:[%s8563_s4] sm:$0x3] }
 0x25a   :  { %15 = vst [vmem:[#allocation6] sm:$0x1] %v14_v21 }
 0x25b   :  { %v1920_v24 = vadd.f32 %v1919_v6, %v1914_v12  ;;  %v1916_v23 = vadd.f32 %v1915_v18, %v1863_v13  ;;  %v2007_v6 = vld [vmem:[%s8564_s5] sm:$0x3]  ;;  %v1992_v13 = vrot.slane %v1987_v0, %v7563_v29 }
 0x25d   :  { %v1921_v26 = vrot.slane %v1920_v24, 4  ;;  %v1929_v25 = vadd.f32 %v1928_v22, %v1916_v23  ;;  %v2012_v22 = vrot.slane %v2007_v6, %v7563_v29 }
 0x25f   :  { %v1922_v11 = vadd.f32 %v1921_v26, %v1920_v24  ;;  %v1930_v27 = vrot.slane %v1929_v25, 4 }
 0x261   :  { %v1923_v31 = vrot.slane %v1922_v11, 2  ;;  %v1931_v33 = vadd.f32 %v1930_v27, %v1929_v25  ;;  %v1996_v27 = vrot.slane %v1987_v0, %v7568_v34 }
 0x263   :  { %v1924_v7 = vadd.f32 %v1923_v31, %v1922_v11  ;;  %v1932_v28 = vrot.slane %v1931_v33, 2  ;;  %v2016_v11 = vrot.slane %v2007_v6, %v7568_v34  ;;  %v2282_v6 = vld [vmem:[#allocation5 + $0x40] sm:$0x88] }
 0x265   :  { %v1925_v30 = vrot.slane %v1924_v7, 1  ;;  %v1933_v32 = vadd.f32 %v1932_v28, %v1931_v33 }
 0x267   :  { %v1926_v37 = vadd.f32 %v1925_v30, %v1924_v7  ;;  %v1934_v61 = vrot.slane %v1933_v32, 1 }
 0x269   :  { %v1937_v4 = vmul.f32 0.03125, %v1926_v37  ;;  %v1935_v38 = vadd.f32 %v1934_v61, %v1933_v32 }
 0x26b   :  { %v1939_v39 = vsub.f32 %v1900_v51, %v1937_v4  ;;  %v1941_v40 = vsub.f32 %v1904_v58, %v1937_v4  ;;  %v1943_v42 = vsub.f32 %v1910_v14, %v1937_v4  ;;  %v1938_v43 = vmul.f32 0.03125, %v1935_v38 }
 0x26c   :  { %v1945_v44 = vsub.f32 %v1914_v12, %v1937_v4  ;;  %v5555_v12 = vld [vmem:[#allocation6] ss:$0 sm:$0xff] }
 0x26d   :  { %v1947_v46 = vmul.f32 %v1939_v39, %v1939_v39  ;;  %v1949_v47 = vmul.f32 %v1941_v40, %v1941_v40  ;;  %v7576_v48 = vsub.f32 %v1902_v19, %v1938_v43  ;;  %v7578_v45 = vsub.f32 %v1906_v41, %v1938_v43  ;;  %2972 = vperm.xlu0 %6219, %v5555_v12   ;;  %v6493_v12 = vld [vmem:[%s8560_s6 + $0x1b8] sm:$0xff]  }
 0x26e   :  { %v7580_v50 = vsub.f32 %v1912_v20, %v1938_v43  ;;  %v1951_v59 = vmul.f32 %v1943_v42, %v1943_v42  ;;  %v7582_v36 = vsub.f32 %v1916_v23, %v1938_v43  ;;  %v1953_v54 = vmul.f32 %v1945_v44, %v1945_v44 }
 0x26f   :  { %v1955_v49 = vadd.f32 %v1949_v47, %v1947_v46  ;;  %v1948_v52 = vmul.f32 %v7576_v48, %v7576_v48  ;;  %v1950_v53 = vmul.f32 %v7578_v45, %v7578_v45 }
 0x270   :  { %v1952_v56 = vmul.f32 %v7580_v50, %v7580_v50  ;;  %v1954_v60 = vmul.f32 %v7582_v36, %v7582_v36 }
 0x271   :  { %v1956_v55 = vadd.f32 %v1955_v49, %v1951_v59  ;;  %v1964_v57 = vadd.f32 %v1950_v53, %v1948_v52 }
 0x273   :  { %v1957_v16 = vadd.f32 %v1956_v55, %v1953_v54  ;;  %v1965_v62 = vadd.f32 %v1964_v57, %v1952_v56  ;;  %v8583_v57 = vmov 0 }
 0x274   :  { %v8584_v57 = vsel %vm7623_vm12, 4294967295, %v8583_v57  ;;  %vm2208_vm12 = vsmask.f32 5376 }
 0x275   :  { %v1958_v1 = vrot.slane %v1957_v16, 4  ;;  %v1966_v58 = vadd.f32 %v1965_v62, %v1954_v60 }
 0x277   :  { %v1959_v2 = vadd.f32 %v1958_v1, %v1957_v16  ;;  %v1967_v3 = vrot.slane %v1966_v58, 4 }
 0x279   :  { %v1960_v8 = vrot.slane %v1959_v2, 2  ;;  %v1968_v9 = vadd.f32 %v1967_v3, %v1966_v58  ;;  %v8587_v58 = vmov 0 }
 0x27a   :  { %v8588_v58 = vsel %vm7632_vm6, 4294967295, %v8587_v58  ;;  %vm8602_vm6 = vcmask 1041409  }
 0x27b   :  { %v1961_v51 = vadd.f32 %v1960_v8, %v1959_v2  ;;  %v1969_v41 = vrot.slane %v1968_v9, 2 }
 0x27d   :  { %v1962_v14 = vrot.slane %v1961_v51, 1  ;;  %v1970_v35 = vadd.f32 %v1969_v41, %v1968_v9 }
 0x27f   :  { %v1963_v17 = vadd.f32 %v1962_v14, %v1961_v51  ;;  %v1971_v10 = vrot.slane %v1970_v35, 1  ;;  %v2258_v51 = vld [vmem:[#allocation5 + $0x40] sm:$0x22] }
 0x281   :  { %v1973_v15 = vmul.f32 0.03125, %v1963_v17  ;;  %v1972_v19 = vadd.f32 %v1971_v10, %v1970_v35 }
 0x283   :  { %v1975_v5 = vadd.f32 1e-05, %v1973_v15  ;;  %v1974_v20 = vmul.f32 0.03125, %v1972_v19  ;;  %v8605_v19 = vmov 0  ;;  %v6627_v15 = vld [vmem:[%s8560_s6 + $0x490] sm:$0xff]  }
 0x285   :  { %6746 = vrsqrt.f32 %v1975_v5  ;;  %v1976_v63 = vadd.f32 1e-05, %v1974_v20  ;;  %v8607_v5 = vmov 0  ;;  %v6511_v20 = vld [vmem:[%s8560_s6 + $0x1a0] sm:$0xff]  }
 0x287   :  { %6748 = vrsqrt.f32 %v1976_v63  ;;  %v8613_v63 = vmov 0 }
 0x292   :  { %v6747_v18 = vpop.eup %6746 }
 0x293   :  { %v1979_v24 = vmul.f32 %v6747_v18, %v1939_v39  ;;  %v1981_v23 = vmul.f32 %v6747_v18, %v1941_v40  ;;  %v1983_v26 = vmul.f32 %v6747_v18, %v1943_v42  ;;  %v1985_v25 = vmul.f32 %v6747_v18, %v1945_v44 }
 0x294   :  { %v6749_v31 = vpop.eup %6748 }
 0x295   :  { %v1999_v33 = vmul.f32 %v1992_v13, %v1979_v24  ;;  %v2001_v7 = vmul.f32 %v1992_v13, %v1981_v23  ;;  %v2003_v28 = vmul.f32 %v1992_v13, %v1983_v26  ;;  %v2005_v30 = vmul.f32 %v1992_v13, %v1985_v25 }
 0x296   :  { %v1980_v29 = vmul.f32 %v6749_v31, %v7576_v48  ;;  %v1982_v32 = vmul.f32 %v6749_v31, %v7578_v45  ;;  %v1984_v37 = vmul.f32 %v6749_v31, %v7580_v50  ;;  %v1986_v61 = vmul.f32 %v6749_v31, %v7582_v36 }
 0x297   :  { %v2019_v34 = vadd.f32 %v2012_v22, %v1999_v33  ;;  %v2021_v4 = vadd.f32 %v2012_v22, %v2001_v7  ;;  %v2023_v38 = vadd.f32 %v2012_v22, %v2003_v28  ;;  %v2025_v39 = vadd.f32 %v2012_v22, %v2005_v30  ;;  %v2108_v28 = vld [vmem:[#allocation5 + $0x8] sm:$0x22] }
 0x298   :  { %v2000_v40 = vmul.f32 %v1996_v27, %v1980_v29  ;;  %v2002_v42 = vmul.f32 %v1996_v27, %v1982_v32  ;;  %v2004_v43 = vmul.f32 %v1996_v27, %v1984_v37  ;;  %v2006_v44 = vmul.f32 %v1996_v27, %v1986_v61  ;;  %v2157_v27 = vld [vmem:[#allocation5] sm:$0x22]  ;;  %v2124_v29 = vld [vmem:[#allocation5 + $0x8] sm:$0x88]  ;;  %v2172_v32 = vld [vmem:[#allocation5] sm:$0x44] }
 0x299   :  { %vm2027_vm7 = vcmp.gt.f32.partialorder %v2019_v34, 0.0  ;;  %vm2029_vm13 = vcmp.gt.f32.partialorder %v2021_v4, 0.0  ;;  %vm2031_vm14 = vcmp.gt.f32.partialorder %v2023_v38, 0.0  ;;  %v2035_v46 = vmul.f32 0.2, %v2019_v34 }
 0x29a   :  { %v2037_v47 = vmul.f32 0.2, %v2021_v4  ;;  %v2020_v48 = vadd.f32 %v2016_v11, %v2000_v40  ;;  %v2039_v45 = vmul.f32 0.2, %v2023_v38  ;;  %v2022_v50 = vadd.f32 %v2016_v11, %v2002_v42  ;;  %v2180_v37 = vld [vmem:[#allocation5] sm:$0x88] }
 0x29b   :  { %v2024_v59 = vadd.f32 %v2016_v11, %v2004_v43  ;;  %v2026_v49 = vadd.f32 %v2016_v11, %v2006_v44  ;;  %v2041_v36 = vmul.f32 0.2, %v2025_v39  ;;  %v2043_v16 = vsel %vm2027_vm7, %v2019_v34, %v2035_v46  ;;  %v2149_v11 = vld [vmem:[#allocation5] sm:$0x11] }
 0x29c   :  { %vm2028_vm1 = vcmp.gt.f32.partialorder %v2020_v48, 0.0  ;;  %vm2030_vm3 = vcmp.gt.f32.partialorder %v2022_v50, 0.0  ;;  %v2036_v54 = vmul.f32 0.2, %v2020_v48  ;;  %v2038_v55 = vmul.f32 0.2, %v2022_v50 }
 0x29d   :  { %vm2032_vm15 = vcmp.gt.f32.partialorder %v2024_v59, 0.0  ;;  %v2040_v56 = vmul.f32 0.2, %v2024_v59  ;;  %v2045_v60 = vsel %vm2029_vm13, %v2021_v4, %v2037_v47  ;;  %v2047_v62 = vsel %vm2031_vm14, %v2023_v38, %v2039_v45 }
 0x29e   :  { %v2042_v1 = vmul.f32 0.2, %v2026_v49  ;;  %vm8589_vm4 = vcmp.gt.f32.partialorder %v2025_v39, 0.0  ;;  %v2044_v3 = vsel %vm2028_vm1, %v2020_v48, %v2036_v54  ;;  %v2046_v8 = vsel %vm2030_vm3, %v2022_v50, %v2038_v55 }
 0x29f   :  { %v2049_v2 = vsel %vm8589_vm4, %v2025_v39, %v2041_v36  ;;  %v2048_v9 = vsel %vm2032_vm15, %v2024_v59, %v2040_v56  ;;  %vm8594_vm7 = vcmp.gt.f32.partialorder %v2026_v49, 0.0  ;;  %v5853_v14 = vpack.c.bf16 %v2044_v3, %v2043_v16  ;;  %v6587_v39 = vld [vmem:[%s8560_s6 + $0x398] sm:$0xff]  }
 0x2a0   :  { %v2050_v41 = vsel %vm8594_vm7, %v2026_v49, %v2042_v1  ;;  %v5854_v35 = vpack.c.bf16 %v2046_v8, %v2045_v60  ;;  %v5855_v17 = vpack.c.bf16 %v2048_v9, %v2047_v62  ;;  %vm8595_vm13 = vsmask.f32 7954  ;;  %vm7652_vm7 = vmand %vm8602_vm6, %vm8601_vm10  ;;  %v2211_v49 = vld [vmem:[#allocation5 + $0x10] sm:$0x22]  ;;  %v2248_v8 = vld [vmem:[#allocation5 + $0x40] sm:$0x11] }
 0x2a1   :  { %vm8596_vm14 = vcmask 1044484   ;;  %v5856_v10 = vpack.c.bf16 %v2050_v41, %v2049_v2  ;;  %vm8598_vm4 = vcmask 1042434   ;;  %2075 = vst [vmem:[#allocation4 + $0x8] sm:$0xff] %v5853_v14  ;;  %vm8599_vm15 = vsmask.f32 7962 }
 0x2a2   :  { %vm2147_vm5 = vmand %vm8596_vm14, %vm8595_vm13  ;;  %2076 = vst [vmem:[#allocation4] sm:$0xff] %v5854_v35  ;;  %vm8609_vm6 = vnez %v8584_v57  ;;  %v2272_v41 = vld [vmem:[#allocation5 + $0x40] sm:$0x44] }
 0x2a3   :  { %vm2167_vm1 = vmand %vm8598_vm4, %vm8597_vm8  ;;  %2077 = vst [vmem:[#allocation4 + $0x10] sm:$0xff] %v5855_v17  ;;  %vm2220_vm8 = vsmask.f32 3328  ;;  %vm8610_vm4 = vnez %v8588_v58  ;;  %v2225_v58 = vld [vmem:[#allocation5 + $0x10] sm:$0x88] }
 0x2a4   :  { %vm2170_vm3 = vmand %vm8600_vm9, %vm8599_vm15  ;;  %2078 = vst [vmem:[#allocation4 + $0x18] sm:$0xff] %v5856_v10 }
 0x2a5   :  { %vm7660_vm13 = vmor %vm7617_vm11, %vm7611_vm2  ;;  %vm2222_vm11 = vsmask.f32 7424  ;;  %vm8615_vm2 = vcmask 1045509  }
 0x2a6   :  { %v8606_v19 = vsel %vm7660_vm13, 4294967295, %v8605_v19  ;;  %vm7666_vm14 = vmor %vm2147_vm5, %vm7639_vm0  ;;  %vm2243_vm0 = vsmask.f32 256  ;;  %vm8618_vm5 = vsmask.f32 2304  ;;  %vm8619_vm13 = vcmask 1042434  }
 0x2a7   :  { %v8608_v5 = vsel %vm7666_vm14, 4294967295, %v8607_v5  ;;  %vm7674_vm15 = vmor %vm8610_vm4, %vm8609_vm6  ;;  %vm8622_vm6 = vcmask 1043459  }
 0x2a8   :  { %vm7678_vm9 = vmor %vm2170_vm3, %vm2167_vm1  ;;  %vm2245_vm1 = vsmask.f32 4352  ;;  %vm8625_vm3 = vcmask 1047559   ;;  %v2183_v22 = vld [vmem:[#allocation4 + $0x8] sm:$0x11] }
 0x2a9   :  { %v8614_v63 = vsel %vm7678_vm9, 4294967295, %v8613_v63  ;;  %vm7683_vm10 = vmand %vm8615_vm2, %vm2208_vm12  ;;  %vm2269_vm12 = vsmask.f32 6400  ;;  %2184 = vst [vmem:[#allocation5 + $0x48] sm:$0x11] %v2183_v22 }
 0x2aa   :  { %vm7689_vm14 = vmand %vm8619_vm13, %vm8618_vm5  ;;  %v2127_v13 = vld [vmem:[#allocation4 + $0x10] sm:$0x11]  ;;  %v2132_v18 = vld [vmem:[#allocation4 + $0x10] sm:$0x44]  ;;  %vm8640_vm5 = vcmask 1046534  }
 0x2ab   :  { %vm7694_vm4 = vmand %vm8622_vm6, %vm2220_vm8  ;;  %v2129_v24 = vrot.slane %v2127_v13, 7  ;;  %v2134_v23 = vrot.slane %v2132_v18, 7  ;;  %v2185_v26 = vld [vmem:[#allocation4 + $0x8] sm:$0x22]  ;;  %v2187_v25 = vld [vmem:[#allocation4 + $0x8] sm:$0x44] }
 0x2ac   :  { %vm7699_vm9 = vmand %vm8625_vm3, %vm2222_vm11  ;;  %2186 = vst [vmem:[#allocation5 + $0x48] sm:$0x22] %v2185_v26  ;;  %v2189_v33 = vld [vmem:[#allocation4 + $0x8] sm:$0x88]  ;;  %v2095_v7 = vld [vmem:[#allocation4 + $0x18] sm:$0x11] }
 0x2ad   :  { %vm7707_vm13 = vmor %vm7683_vm10, %vm7652_vm7  ;;  %2188 = vst [vmem:[#allocation5 + $0x48] sm:$0x44] %v2187_v25  ;;  %v2111_v30 = vld [vmem:[#allocation4 + $0x18] sm:$0x44]  ;;  %v2097_v61 = vshll.u32 %v2095_v7, 16  ;;  %vm8632_vm8 = vcmask 1040384   ;;  %vm8638_vm10 = vnez %v8608_v5 }
 0x2ae   :  { %2131 = vst [vmem:[#allocation5 + $0x38] sm:$0x22] %v2129_v24  ;;  %2136 = vst [vmem:[#allocation5 + $0x38] sm:$0x88] %v2134_v23  ;;  %v2113_v34 = vshll.u32 %v2111_v30, 16  ;;  %v6549_v5 = vld [vmem:[%s8560_s6 + $0x220] sm:$0xff]  }
 0x2af   :  { %2190 = vst [vmem:[#allocation5 + $0x48] sm:$0x88] %v2189_v33  ;;  %v2137_v4 = vld [vmem:[#allocation4] sm:$0x11]  ;;  %v2152_v38 = vld [vmem:[#allocation4] sm:$0x22]  ;;  %vm7715_vm7 = vmor %vm7699_vm9, %vm7694_vm4  ;;  %vm8643_vm4 = vnez %v8614_v63 }
 0x2b0   :  { %v2139_v40 = vshll.u32 %v2137_v4, 16  ;;  %v2154_v42 = vshll.u32 %v2152_v38, 16  ;;  %v2160_v43 = vld [vmem:[#allocation4] sm:$0x44]  ;;  %v2175_v44 = vld [vmem:[#allocation4] sm:$0x88]  ;;  %vm7721_vm11 = vmand %vm8632_vm8, %vm2243_vm0  ;;  %vm8639_vm0 = vnez %v8606_v19 }
 0x2b1   :  { %v2099_v47 = vrot.slane %v2097_v61, 7  ;;  %v2115_v48 = vrot.slane %v2113_v34, 7  ;;  %v2162_v45 = vshll.u32 %v2160_v43, 16  ;;  %v2177_v50 = vshll.u32 %v2175_v44, 16  ;;  %v2201_v59 = vld [vmem:[#allocation4 + $0x10] sm:$0x11]  ;;  %vm7737_vm6 = vmand %vm8640_vm5, %vm2269_vm12 }
 0x2b2   :  { %vm8635_vm9 = vcmask 1044484   ;;  %v2150_v52 = vsel %vm8638_vm10, %v2139_v40, %v2149_v11  ;;  %v2158_v53 = vsel %vm8639_vm0, %v2154_v42, %v2157_v27  ;;  %v2203_v54 = vshrl.u32 %v2201_v59, 16  ;;  %v2214_v55 = vld [vmem:[#allocation4 + $0x10] sm:$0x44]  ;;  %v2191_v56 = vld [vmem:[#allocation4 + $0x18] sm:$0x11]  ;;  %vm7764_vm3 = vmor %vm7737_vm6, %vm7689_vm14 }
 0x2b3   :  { %vm7727_vm2 = vmand %vm8635_vm9, %vm2245_vm1  ;;  %v2109_v16 = vsel %vm8639_vm0, %v2099_v47, %v2108_v28  ;;  %v2125_v60 = vsel %vm7674_vm15, %v2115_v48, %v2124_v29  ;;  %2151 = vst [vmem:[#allocation5] sm:$0x11] %v2150_v52  ;;  %v2173_v62 = vsel %vm8643_vm4, %v2162_v45, %v2172_v32  ;;  %v2181_v1 = vsel %vm7674_vm15, %v2177_v50, %v2180_v37  ;;  %v2196_v2 = vld [vmem:[#allocation4 + $0x18] sm:$0x44]  ;;  %v2236_v3 = vld [vmem:[#allocation4 + $0x8] sm:$0x11] }
 0x2b4   :  { %2159 = vst [vmem:[#allocation5] sm:$0x22] %v2158_v53  ;;  %v2251_v9 = vld [vmem:[#allocation4 + $0x8] sm:$0x22]  ;;  %2110 = vst [vmem:[#allocation5 + $0x8] sm:$0x22] %v2109_v16 }
 0x2b5   :  { %2126 = vst [vmem:[#allocation5 + $0x8] sm:$0x88] %v2125_v60  ;;  %2174 = vst [vmem:[#allocation5] sm:$0x44] %v2173_v62  ;;  %v2205_v14 = vrot.slane %v2203_v54, 7  ;;  %v2216_v35 = vshrl.u32 %v2214_v55, 16 }
 0x2b6   :  { %2182 = vst [vmem:[#allocation5] sm:$0x88] %v2181_v1  ;;  %v2193_v17 = vrot.slane %v2191_v56, 7  ;;  %v2198_v10 = vrot.slane %v2196_v2, 7  ;;  %vm7753_vm1 = vmor %vm7727_vm2, %vm7721_vm11  ;;  %v2261_v21 = vld [vmem:[#allocation4 + $0x8] sm:$0x44] }
 0x2b7   :  { %v2238_v13 = vshrl.u32 %v2236_v3, 16  ;;  %v2253_v18 = vshrl.u32 %v2251_v9, 16  ;;  %v2263_v22 = vshrl.u32 %v2261_v21, 16  ;;  %v2275_v23 = vld [vmem:[#allocation4 + $0x8] sm:$0x88]  ;;  %v2438_v26 = vld [vmem:[#allocation5 + $0x38] sm:$0xff]  ;;  %v2212_v27 = vsel %vm7707_vm13, %v2205_v14, %v2211_v49 }
 0x2b8   :  { %v7768_v25 = vld [vmem:[#allocation5 + $0x48] sm:$0xff]  ;;  %v6500_v11 = vld [vmem:[%s8560_s6 + $0x1f0] sm:$0xff]   ;;  %v2218_v33 = vrot.slane %v2216_v35, 7  ;;  %2195 = vst [vmem:[#allocation5 + $0x60] sm:$0x22] %v2193_v17  ;;  %v2277_v0 = vshrl.u32 %v2275_v23, 16  ;;  %v5558_v28 = vcombine.low %v2438_v26, %v2438_v26  ;;  %v5559_v30 = vcombine.high %v2438_v26, %v2438_v26 }
 0x2b9   :  { %2200 = vst [vmem:[#allocation5 + $0x60] sm:$0x88] %v2198_v10  ;;  %v2228_v7 = vld [vmem:[#allocation4] sm:$0x11]  ;;  %2213 = vst [vmem:[#allocation5 + $0x10] sm:$0x22] %v2212_v27  ;;  %v2249_v34 = vsel %vm7753_vm1, %v2238_v13, %v2248_v8  ;;  %v2259_v4 = vsel %vm7707_vm13, %v2253_v18, %v2258_v51  ;;  %v2273_v38 = vsel %vm7764_vm3, %v2263_v22, %v2272_v41 }
 0x2ba   :  { %2229 = vst [vmem:[#allocation5 + $0x30] sm:$0x11] %v2228_v7  ;;  %v2230_v29 = vld [vmem:[#allocation4] sm:$0x22]  ;;  %v2232_v32 = vld [vmem:[#allocation4] sm:$0x44]  ;;  %v2226_v61 = vsel %vm7715_vm7, %v2218_v33, %v2225_v58  ;;  %4695 = vmatprep.mubr.bf16.mxu0 %v5559_v30  ;;  %v5563_v44 = vcombine.high %v7768_v25, %v7768_v25  ;;  %v2283_v46 = vsel %vm7715_vm7, %v2277_v0, %v2282_v6 }
 0x2bb   :  { %v2234_v37 = vld [vmem:[#allocation4] sm:$0x88]  ;;  %2231 = vst [vmem:[#allocation5 + $0x30] sm:$0x22] %v2230_v29  ;;  %2233 = vst [vmem:[#allocation5 + $0x30] sm:$0x44] %v2232_v32  ;;  %4696 = vmatmul.mubr.bf16.vlgmr.msra.gmra.mxu0 %v5558_v28 }
 0x2bc   :  { %2235 = vst [vmem:[#allocation5 + $0x30] sm:$0x88] %v2234_v37  ;;  %v2317_v40 = vld [vmem:[#allocation4 + $0x10] sm:$0x11]  ;;  %v2319_v42 = vld [vmem:[#allocation4 + $0x10] sm:$0x22]  ;;  %5924 = vmatpush3.bf16.msra.mxu0 %v6493_v12  ;;  %4775 = vmatprep.mubr.bf16.mxu0 %v5563_v44 }
 0x2bd   :  { %v2321_v43 = vld [vmem:[#allocation4 + $0x10] sm:$0x44]  ;;  %2227 = vst [vmem:[#allocation5 + $0x10] sm:$0x88] %v2226_v61  ;;  %2250 = vst [vmem:[#allocation5 + $0x40] sm:$0x11] %v2249_v34  ;;  %5925 = vmatprep.subr.bf16.mxu0 %v6500_v11 }
 0x2be   :  { %2260 = vst [vmem:[#allocation5 + $0x40] sm:$0x22] %v2259_v4  ;;  %2274 = vst [vmem:[#allocation5 + $0x40] sm:$0x44] %v2273_v38  ;;  %v2323_v47 = vld [vmem:[#allocation4 + $0x10] sm:$0x88] }
 0x2bf   :  { %2318 = vst [vmem:[#allocation5 + $0x50] sm:$0x11] %v2317_v40  ;;  %2320 = vst [vmem:[#allocation5 + $0x50] sm:$0x22] %v2319_v42  ;;  %v2285_v48 = vld [vmem:[#allocation4 + $0x18] sm:$0x11]  ;;  %v5562_v42 = vcombine.low %v7768_v25, %v7768_v25 }
 0x2c0   :  { %2322 = vst [vmem:[#allocation5 + $0x50] sm:$0x44] %v2321_v43  ;;  %v2290_v45 = vld [vmem:[#allocation5 + $0x28] sm:$0x11]  ;;  %v6499_v50 = vld [vmem:[%s8560_s6 + $0x138] sm:$0xff]   ;;  %v6503_v59 = vld [vmem:[%s8560_s6 + $0x1b0] sm:$0xff]  }
 0x2c1   :  { %2284 = vst [vmem:[#allocation5 + $0x40] sm:$0x88] %v2283_v46  ;;  %2324 = vst [vmem:[#allocation5 + $0x50] sm:$0x88] %v2323_v47  ;;  %v2287_v49 = vshll.u32 %v2285_v48, 16  ;;  %v2437_v53 = vld [vmem:[#allocation5 + $0x8] sm:$0xff]  ;;  %5926 = vmatpush3.bf16.msra.mxu0 %v6503_v59 }
 0x2c2   :  { %v2293_v36 = vld [vmem:[#allocation4 + $0x18] sm:$0x22]  ;;  %v2298_v52 = vld [vmem:[#allocation5 + $0x28] sm:$0x22]  ;;  %v7793_v54 = vld [vmem:[#allocation5] sm:$0xff]  ;;  %v5556_v57 = vcombine.low %v2437_v53, %v2437_v53  ;;  %v5557_v16 = vcombine.high %v2437_v53, %v2437_v53  ;;  %vm6756_vm14 = vmmov 0  }
 0x2c3   :  { %v2295_v55 = vshll.u32 %v2293_v36, 16  ;;  %v2301_v56 = vld [vmem:[#allocation4 + $0x18] sm:$0x44]  ;;  %v2306_v60 = vld [vmem:[#allocation5 + $0x28] sm:$0x44]  ;;  %v6506_v2 = vld [vmem:[%s8560_s6 + $0x1e8] sm:$0xff]   ;;  %v2291_v3 = vsel %vm8638_vm10, %v2287_v49, %v2290_v45  ;;  %v5561_v41 = vcombine.high %v7793_v54, %v7793_v54  ;;  %v5560_v59 = vcombine.low %v7793_v54, %v7793_v54 }
 0x2c4   :  { %v2309_v62 = vld [vmem:[#allocation4 + $0x18] sm:$0x88]  ;;  %v2314_v1 = vld [vmem:[#allocation5 + $0x28] sm:$0x88]  ;;  %v2303_v9 = vshll.u32 %v2301_v56, 16  ;;  %4655 = vmatprep.mubr.bf16.mxu1 %v5557_v16  ;;  %v6507_v35 = vld [vmem:[%s8560_s6 + $0x1a8] sm:$0xff]   ;;  %5927 = vmatprep.subr.bf16.mxu0 %v6506_v2 }
 0x2c5   :  { %v6504_v58 = vld [vmem:[%s8560_s6 + $0x170] sm:$0xff]   ;;  %v2299_v8 = vsel %vm8639_vm0, %v2295_v55, %v2298_v52  ;;  %v2311_v51 = vshll.u32 %v2309_v62, 16  ;;  %2292 = vst [vmem:[#allocation5 + $0x28] sm:$0x11] %v2291_v3  ;;  %4656 = vmatmul.mubr.bf16.vlgmr.msra.gmra.mxu1 %v5556_v57  ;;  %v6510_v10 = vld [vmem:[%s8560_s6 + $0x1e0] sm:$0xff]   ;;  %v6508_v21 = vld [vmem:[%s8560_s6 + $0x168] sm:$0xff]   ;;  %5928 = vmatpush3.bf16.msra.mxu0 %v6507_v35 }
 0x2c6   :  { %v6505_v14 = vld [vmem:[%s8560_s6 + $0x130] sm:$0xff]   ;;  %2300 = vst [vmem:[#allocation5 + $0x28] sm:$0x22] %v2299_v8  ;;  %v2307_v19 = vsel %vm8643_vm4, %v2303_v9, %v2306_v60  ;;  %5902 = vmatpush3.bf16.msra.mxu1 %v6499_v50  ;;  %4735 = vmatprep.mubr.bf16.mxu1 %v5561_v41  ;;  %v6509_v6 = vld [vmem:[%s8560_s6 + $0x128] sm:$0xff]   ;;  %v6514_v12 = vld [vmem:[%s8560_s6 + $0x1d8] sm:$0xff]   ;;  %vm5344_vm12 = vcmask 1024  }
 0x2c7   :  { %v2315_v17 = vsel %vm7674_vm15, %v2311_v51, %v2314_v1  ;;  %2308 = vst [vmem:[#allocation5 + $0x28] sm:$0x44] %v2307_v19  ;;  %5903 = vmatprep.subr.bf16.mxu1 %v6504_v58  ;;  %5929 = vmatprep.subr.bf16.mxu0 %v6510_v10  ;;  %v6512_v13 = vld [vmem:[%s8560_s6 + $0x160] sm:$0xff]   ;;  %v6515_v22 = vld [vmem:[%s8560_s6 + $0x198] sm:$0xff]   ;;  %v6518_v23 = vld [vmem:[%s8560_s6 + $0x1d0] sm:$0xff]   ;;  %vm5270_vm15 = vcmask 64512  }
 0x2c8   :  { %2316 = vst [vmem:[#allocation5 + $0x28] sm:$0x88] %v2315_v17  ;;  %v6513_v18 = vld [vmem:[%s8560_s6 + $0x120] sm:$0xff]   ;;  %v6516_v26 = vld [vmem:[%s8560_s6 + $0x158] sm:$0xff]   ;;  %v6519_v27 = vld [vmem:[%s8560_s6 + $0x190] sm:$0xff]  }
 0x2c9   :  { %5930 = vmatpush3.bf16.msra.mxu0 %v6511_v20  ;;  %v6517_v11 = vld [vmem:[%s8560_s6 + $0x118] sm:$0xff]   ;;  %v6522_v33 = vld [vmem:[%s8560_s6 + $0x1c8] sm:$0xff]   ;;  %v6520_v0 = vld [vmem:[%s8560_s6 + $0x150] sm:$0xff]  }
 0x2ca   :  { %5904 = vmatpush3.bf16.msra.mxu1 %v6505_v14  ;;  %5931 = vmatprep.subr.bf16.mxu0 %v6514_v12  ;;  %v6521_v7 = vld [vmem:[%s8560_s6 + $0x110] sm:$0xff]   ;;  %v6523_v28 = vld [vmem:[%s8560_s6 + $0x188] sm:$0xff]   ;;  %v6526_v30 = vld [vmem:[%s8560_s6 + $0x1c0] sm:$0xff]  }
 0x2cb   :  { %5905 = vmatprep.subr.bf16.mxu1 %v6508_v21  ;;  %v6524_v29 = vld [vmem:[%s8560_s6 + $0x148] sm:$0xff]   ;;  %v6527_v37 = vld [vmem:[%s8560_s6 + $0x180] sm:$0xff]   ;;  %v6530_v61 = vld [vmem:[%s8560_s6 + $0x2f8] sm:$0xff]  }
 0x2cc   :  { %v6525_v32 = vld [vmem:[%s8560_s6 + $0x108] sm:$0xff]   ;;  %v6528_v34 = vld [vmem:[%s8560_s6 + $0x140] sm:$0xff]   ;;  %v6531_v40 = vld [vmem:[%s8560_s6 + $0x2b8] sm:$0xff]  }
 0x2cd   :  { %5932 = vmatpush3.bf16.msra.mxu0 %v6515_v22  ;;  %v6529_v4 = vld [vmem:[%s8560_s6 + $0x100] sm:$0xff]   ;;  %v7886_v38 = vld [vmem:[#allocation5 + $0x10] sm:$0xff]  ;;  %v6538_v43 = vld [vmem:[%s8560_s6 + $0x2f0] sm:$0xff]  }
 0x2ce   :  { %5906 = vmatpush3.bf16.msra.mxu1 %v6509_v6  ;;  %5933 = vmatprep.subr.bf16.mxu0 %v6518_v23  ;;  %v5567_v44 = vcombine.high %v7886_v38, %v7886_v38  ;;  %v6534_v46 = vld [vmem:[%s8560_s6 + $0x278] sm:$0xff]   ;;  %v6539_v25 = vld [vmem:[%s8560_s6 + $0x2b0] sm:$0xff]   ;;  %v2345_v45 = vld [vmem:[#allocation4 + $0x8] sm:$0x22] }
 0x2cf   :  { %5907 = vmatprep.subr.bf16.mxu1 %v6512_v13  ;;  %v6535_v47 = vld [vmem:[%s8560_s6 + $0x238] sm:$0xff]   ;;  %v2351_v50 = vld [vmem:[#allocation4 + $0x8] sm:$0x88]  ;;  %v6540_v49 = vld [vmem:[%s8560_s6 + $0x270] sm:$0xff]   ;;  %v5545_v52 = vrot.slane %v2345_v45, 9 }
 0x2d0   :  { %v7907_v48 = vld [vmem:[#allocation5 + $0x60] sm:$0xff]  ;;  %v6542_v36 = vld [vmem:[%s8560_s6 + $0x2e8] sm:$0xff]   ;;  %v5546_v53 = vrot.slane %v2351_v50, 9  ;;  %v6541_v56 = vld [vmem:[%s8560_s6 + $0x230] sm:$0xff]  }
 0x2d1   :  { %5934 = vmatpush3.bf16.msra.mxu0 %v6519_v27  ;;  %v5565_v55 = vcombine.high %v7907_v48, %v7907_v48  ;;  %v2325_v57 = vld [vmem:[#allocation4] sm:$0x22]  ;;  %v6543_v54 = vld [vmem:[%s8560_s6 + $0x2a8] sm:$0xff]   ;;  %2350 = vst [vmem:[#allocation5 + $0x70] sm:$0x11] %v5545_v52  ;;  %v6546_v1 = vld [vmem:[%s8560_s6 + $0x2e0] sm:$0xff]  }
 0x2d2   :  { %5908 = vmatpush3.bf16.msra.mxu1 %v6513_v18  ;;  %5935 = vmatprep.subr.bf16.mxu0 %v6522_v33  ;;  %2356 = vst [vmem:[#allocation5 + $0x70] sm:$0x44] %v5546_v53  ;;  %v2327_v16 = vshll.u32 %v2325_v57, 16  ;;  %v2332_v60 = vld [vmem:[#allocation5 + $0x58] sm:$0x11]  ;;  %v6544_v3 = vld [vmem:[%s8560_s6 + $0x268] sm:$0xff]  }
 0x2d3   :  { %5909 = vmatprep.subr.bf16.mxu1 %v6516_v26  ;;  %v2335_v62 = vld [vmem:[#allocation4] sm:$0x88]  ;;  %v2342_v2 = vld [vmem:[#allocation5 + $0x58] sm:$0x44]  ;;  %v6545_v9 = vld [vmem:[%s8560_s6 + $0x228] sm:$0xff]  }
 0x2d4   :  { %v2337_v58 = vshll.u32 %v2335_v62, 16  ;;  %v5543_v8 = vrot.slane %v2327_v16, 9  ;;  %v6547_v51 = vld [vmem:[%s8560_s6 + $0x2a0] sm:$0xff]   ;;  %v6550_v35 = vld [vmem:[%s8560_s6 + $0x2d8] sm:$0xff]   ;;  %v6554_v63 = vld [vmem:[%s8560_s6 + $0x2d0] sm:$0xff]  }
 0x2d5   :  { %5936 = vmatpush3.bf16.msra.mxu0 %v6523_v28  ;;  %v6548_v17 = vld [vmem:[%s8560_s6 + $0x260] sm:$0xff]   ;;  %v6551_v10 = vld [vmem:[%s8560_s6 + $0x298] sm:$0xff]   ;;  %v6555_v6 = vld [vmem:[%s8560_s6 + $0x290] sm:$0xff]  }
 0x2d6   :  { %5910 = vmatpush3.bf16.msra.mxu1 %v6517_v11  ;;  %5937 = vmatprep.subr.bf16.mxu0 %v6526_v30  ;;  %v5544_v41 = vrot.slane %v2337_v58, 9  ;;  %v2333_v14 = vsel %vm8638_vm10, %v5543_v8, %v2332_v60  ;;  %v6552_v21 = vld [vmem:[%s8560_s6 + $0x258] sm:$0xff]   ;;  %v6558_v12 = vld [vmem:[%s8560_s6 + $0x2c8] sm:$0xff]   ;;  %v6556_v13 = vld [vmem:[%s8560_s6 + $0x250] sm:$0xff]  }
 0x2d7   :  { %5911 = vmatprep.subr.bf16.mxu1 %v6520_v0  ;;  %2334 = vst [vmem:[#allocation5 + $0x58] sm:$0x11] %v2333_v14  ;;  %v6553_v20 = vld [vmem:[%s8560_s6 + $0x218] sm:$0xff]   ;;  %v6557_v18 = vld [vmem:[%s8560_s6 + $0x210] sm:$0xff]   ;;  %v6559_v22 = vld [vmem:[%s8560_s6 + $0x288] sm:$0xff]  }
 0x2d8   :  { %v2343_v19 = vsel %vm8643_vm4, %v5544_v41, %v2342_v2  ;;  %v6562_v23 = vld [vmem:[%s8560_s6 + $0x2c0] sm:$0xff]   ;;  %v6560_v26 = vld [vmem:[%s8560_s6 + $0x248] sm:$0xff]   ;;  %v6566_v33 = vld [vmem:[%s8560_s6 + $0x3f8] sm:$0xff]  }
 0x2d9   :  { %5938 = vmatpush3.bf16.msra.mxu0 %v6527_v37  ;;  %2344 = vst [vmem:[#allocation5 + $0x58] sm:$0x44] %v2343_v19  ;;  %v6561_v11 = vld [vmem:[%s8560_s6 + $0x208] sm:$0xff]   ;;  %v6563_v27 = vld [vmem:[%s8560_s6 + $0x280] sm:$0xff]   ;;  %v7998_v28 = vld [vmem:[#allocation5 + $0x40] sm:$0xff] }
 0x2da   :  { %5912 = vmatpush3.bf16.msra.mxu1 %v6521_v7  ;;  %5967 = vmatprep.subr.bf16.mxu0 %v6530_v61  ;;  %v6564_v0 = vld [vmem:[%s8560_s6 + $0x240] sm:$0xff]   ;;  %v6567_v30 = vld [vmem:[%s8560_s6 + $0x3b8] sm:$0xff]   ;;  %v5571_v37 = vcombine.high %v7998_v28, %v7998_v28  ;;  %v2372_v50 = vld [vmem:[#allocation5 + $0x78] sm:$0x11] }
 0x2db   :  { %5913 = vmatprep.subr.bf16.mxu1 %v6524_v29  ;;  %v6565_v7 = vld [vmem:[%s8560_s6 + $0x200] sm:$0xff]   ;;  %v5566_v29 = vcombine.low %v7886_v38, %v7886_v38  ;;  %v6570_v61 = vld [vmem:[%s8560_s6 + $0x378] sm:$0xff]   ;;  %v8019_v38 = vld [vmem:[#allocation5 + $0x30] sm:$0xff] }
 0x2dc   :  { %4776 = vmatmul.mubr.bf16.vlgmr.msra.gmra.mxu0 %v5562_v42  ;;  %v5564_v42 = vcombine.low %v7907_v48, %v7907_v48  ;;  %v6580_v48 = vld [vmem:[%s8560_s6 + $0x368] sm:$0xff]   ;;  %v2382_v52 = vld [vmem:[#allocation5 + $0x78] sm:$0x22]  ;;  %v6586_v62 = vld [vmem:[%s8560_s6 + $0x3d8] sm:$0xff]  }
 0x2dd   :  { %5968 = vmatpush3.bf16.msra.mxu0 %v6531_v40  ;;  %4855 = vmatprep.mubr.bf16.mxu0 %v5567_v44  ;;  %v6576_v40 = vld [vmem:[%s8560_s6 + $0x370] sm:$0xff]   ;;  %v5569_v44 = vcombine.high %v8019_v38, %v8019_v38  ;;  %v2385_v53 = vld [vmem:[#allocation4 + $0x10] sm:$0x44]  ;;  %v2395_v16 = vld [vmem:[#allocation4 + $0x10] sm:$0x88] }
 0x2de   :  { %5914 = vmatpush3.bf16.msra.mxu1 %v6525_v32  ;;  %5969 = vmatprep.subr.bf16.mxu0 %v6538_v43  ;;  %v6574_v32 = vld [vmem:[%s8560_s6 + $0x3f0] sm:$0xff]   ;;  %v6578_v43 = vld [vmem:[%s8560_s6 + $0x3e8] sm:$0xff]   ;;  %v2387_v57 = vshrl.u32 %v2385_v53, 16  ;;  %v2397_v58 = vshrl.u32 %v2395_v16, 16  ;;  %v6621_v53 = vld [vmem:[%s8560_s6 + $0x420] sm:$0xff]  }
 0x2df   :  { %5915 = vmatprep.subr.bf16.mxu1 %v6528_v34  ;;  %v6571_v34 = vld [vmem:[%s8560_s6 + $0x338] sm:$0xff]   ;;  %v6581_v60 = vld [vmem:[%s8560_s6 + $0x328] sm:$0xff]   ;;  %v2402_v2 = vld [vmem:[#allocation5 + $0x78] sm:$0x88] }
 0x2e0   :  { %v2359_v31 = vld [vmem:[#allocation4 + $0x18] sm:$0x22]  ;;  %v2361_v41 = vld [vmem:[#allocation4 + $0x18] sm:$0x44]  ;;  %v2363_v14 = vld [vmem:[#allocation4 + $0x18] sm:$0x88] }
 0x2e1   :  { %5970 = vmatpush3.bf16.msra.mxu0 %v6539_v25  ;;  %v2365_v25 = vld [vmem:[#allocation4 + $0x10] sm:$0x11]  ;;  %2360 = vst [vmem:[#allocation5 + $0x20] sm:$0x22] %v2359_v31  ;;  %2362 = vst [vmem:[#allocation5 + $0x20] sm:$0x44] %v2361_v41 }
 0x2e2   :  { %5916 = vmatpush3.bf16.msra.mxu1 %v6529_v4  ;;  %5971 = vmatprep.subr.bf16.mxu0 %v6542_v36  ;;  %v6575_v4 = vld [vmem:[%s8560_s6 + $0x3b0] sm:$0xff]   ;;  %v2367_v45 = vshrl.u32 %v2365_v25, 16  ;;  %2364 = vst [vmem:[#allocation5 + $0x20] sm:$0x88] %v2363_v14  ;;  %v2417_v25 = vld [vmem:[#allocation4 + $0x8] sm:$0x22] }
 0x2e3   :  { %5945 = vmatprep.subr.bf16.mxu1 %v6534_v46  ;;  %v6577_v46 = vld [vmem:[%s8560_s6 + $0x330] sm:$0xff]   ;;  %v6631_v31 = vld [vmem:[%s8560_s6 + $0x488] sm:$0xff]   ;;  %v6634_v41 = vld [vmem:[%s8560_s6 + $0x4c0] sm:$0xff]  }
 0x2e4   :  { %v6590_v19 = vld [vmem:[%s8560_s6 + $0x3d0] sm:$0xff]   ;;  %v6632_v14 = vld [vmem:[%s8560_s6 + $0x448] sm:$0xff]  }
 0x2e5   :  { %4736 = vmatmul.mubr.bf16.vlgmr.msra.gmra.mxu1 %v5560_v59  ;;  %5972 = vmatpush3.bf16.msra.mxu0 %v6543_v54  ;;  %v2375_v59 = vld [vmem:[#allocation4 + $0x10] sm:$0x22]  ;;  %v2392_v54 = vld [vmem:[#allocation5 + $0x78] sm:$0x44] }
 0x2e6   :  { %5946 = vmatpush3.bf16.msra.mxu1 %v6535_v47  ;;  %4815 = vmatprep.mubr.bf16.mxu1 %v5565_v55  ;;  %v6579_v47 = vld [vmem:[%s8560_s6 + $0x3a8] sm:$0xff]   ;;  %v2377_v36 = vshrl.u32 %v2375_v59, 16  ;;  %v6583_v55 = vld [vmem:[%s8560_s6 + $0x3a0] sm:$0xff]   ;;  %v2393_v8 = vsel %vm7764_vm3, %v2387_v57, %v2392_v54  ;;  %v6624_v57 = vld [vmem:[%s8560_s6 + $0x458] sm:$0xff]  }
 0x2e7   :  { %5947 = vmatprep.subr.bf16.mxu1 %v6540_v49  ;;  %5973 = vmatprep.subr.bf16.mxu0 %v6546_v1  ;;  %v6582_v49 = vld [vmem:[%s8560_s6 + $0x3e0] sm:$0xff]   ;;  %2394 = vst [vmem:[#allocation5 + $0x78] sm:$0x44] %v2393_v8  ;;  %v6626_v54 = vld [vmem:[%s8560_s6 + $0x4d0] sm:$0xff]   ;;  %v6625_v8 = vld [vmem:[%s8560_s6 + $0x418] sm:$0xff]  }
 0x2e8   :  { %v2383_v1 = vsel %vm7707_vm13, %v2377_v36, %v2382_v52  ;;  %v2427_v59 = vld [vmem:[#allocation4 + $0x8] sm:$0x88]  ;;  %v6628_v24 = vld [vmem:[%s8560_s6 + $0x450] sm:$0xff]  }
 0x2e9   :  { %5974 = vmatpush3.bf16.msra.mxu0 %v6547_v51  ;;  %2384 = vst [vmem:[#allocation5 + $0x78] sm:$0x22] %v2383_v1  ;;  %v2357_v51 = vld [vmem:[#allocation4 + $0x18] sm:$0x11]  ;;  %v6620_v36 = vld [vmem:[%s8560_s6 + $0x460] sm:$0xff]   ;;  %v2429_v52 = vshrl.u32 %v2427_v59, 16 }
 0x2ea   :  { %5948 = vmatpush3.bf16.msra.mxu1 %v6541_v56  ;;  %5975 = vmatprep.subr.bf16.mxu0 %v6550_v35  ;;  %v2373_v56 = vsel %vm7753_vm1, %v2367_v45, %v2372_v50  ;;  %2358 = vst [vmem:[#allocation5 + $0x20] sm:$0x11] %v2357_v51  ;;  %v6585_v35 = vld [vmem:[%s8560_s6 + $0x320] sm:$0xff]   ;;  %v6622_v45 = vld [vmem:[%s8560_s6 + $0x4d8] sm:$0xff]   ;;  %v2419_v50 = vshrl.u32 %v2417_v25, 16  ;;  %v6629_v51 = vld [vmem:[%s8560_s6 + $0x410] sm:$0xff]  }
 0x2eb   :  { %5949 = vmatprep.subr.bf16.mxu1 %v6544_v3  ;;  %2374 = vst [vmem:[#allocation5 + $0x78] sm:$0x11] %v2373_v56  ;;  %v6584_v3 = vld [vmem:[%s8560_s6 + $0x360] sm:$0xff]   ;;  %v5554_v16 = vrot.slane %v2429_v52, 9  ;;  %v6674_v59 = vld [vmem:[%s8560_s6 + $0x6f8] sm:$0xff]  }
 0x2ec   :  { %v5553_v56 = vrot.slane %v2419_v50, 9  ;;  %v6670_v25 = vld [vmem:[%s8560_s6 + $0x5c0] sm:$0xff]   ;;  %v6669_v50 = vld [vmem:[%s8560_s6 + $0x508] sm:$0xff]   ;;  %v6675_v52 = vld [vmem:[%s8560_s6 + $0x6b8] sm:$0xff]  }
 0x2ed   :  { %5976 = vmatpush3.bf16.msra.mxu0 %v6551_v10  ;;  %v6589_v10 = vld [vmem:[%s8560_s6 + $0x318] sm:$0xff]  }
 0x2ee   :  { %5950 = vmatpush3.bf16.msra.mxu1 %v6545_v9  ;;  %5977 = vmatprep.subr.bf16.mxu0 %v6554_v63  ;;  %v2403_v9 = vsel %vm7715_vm7, %v2397_v58, %v2402_v2  ;;  %v6594_v63 = vld [vmem:[%s8560_s6 + $0x3c8] sm:$0xff]  }
 0x2ef   :  { %5951 = vmatprep.subr.bf16.mxu1 %v6548_v17  ;;  %2404 = vst [vmem:[#allocation5 + $0x78] sm:$0x88] %v2403_v9  ;;  %v6588_v17 = vld [vmem:[%s8560_s6 + $0x358] sm:$0xff]   ;;  %v6630_v9 = vld [vmem:[%s8560_s6 + $0x4c8] sm:$0xff]  }
 0x2f1   :  { %5978 = vmatpush3.bf16.msra.mxu0 %v6555_v6  ;;  %v6593_v6 = vld [vmem:[%s8560_s6 + $0x310] sm:$0xff]  }
 0x2f2   :  { %5952 = vmatpush3.bf16.msra.mxu1 %v6549_v5  ;;  %5979 = vmatprep.subr.bf16.mxu0 %v6558_v12  ;;  %v6591_v5 = vld [vmem:[%s8560_s6 + $0x390] sm:$0xff]   ;;  %v6598_v12 = vld [vmem:[%s8560_s6 + $0x3c0] sm:$0xff]  }
 0x2f3   :  { %5953 = vmatprep.subr.bf16.mxu1 %v6552_v21  ;;  %v6592_v21 = vld [vmem:[%s8560_s6 + $0x350] sm:$0xff]  }
 0x2f5   :  { %5980 = vmatpush3.bf16.msra.mxu0 %v6559_v22  ;;  %v6599_v22 = vld [vmem:[%s8560_s6 + $0x380] sm:$0xff]  }
 0x2f6   :  { %5954 = vmatpush3.bf16.msra.mxu1 %v6553_v20  ;;  %5981 = vmatprep.subr.bf16.mxu0 %v6562_v23  ;;  %v6595_v20 = vld [vmem:[%s8560_s6 + $0x388] sm:$0xff]   ;;  %v6602_v23 = vld [vmem:[%s8560_s6 + $0x4f8] sm:$0xff]  }
 0x2f7   :  { %5955 = vmatprep.subr.bf16.mxu1 %v6556_v13  ;;  %v6596_v13 = vld [vmem:[%s8560_s6 + $0x348] sm:$0xff]  }
 0x2f9   :  { %5982 = vmatpush3.bf16.msra.mxu0 %v6563_v27  ;;  %v8114_v27 = vld [vmem:[#allocation5 + $0x50] sm:$0xff] }
 0x2fa   :  { %5956 = vmatpush3.bf16.msra.mxu1 %v6557_v18  ;;  %6011 = vmatprep.subr.bf16.mxu0 %v6566_v33  ;;  %v6597_v18 = vld [vmem:[%s8560_s6 + $0x308] sm:$0xff]   ;;  %v6603_v33 = vld [vmem:[%s8560_s6 + $0x4b8] sm:$0xff]  }
 0x2fb   :  { %5957 = vmatprep.subr.bf16.mxu1 %v6560_v26  ;;  %v6600_v26 = vld [vmem:[%s8560_s6 + $0x340] sm:$0xff]  }
 0x2fc   :  { %4856 = vmatmul.mubr.bf16.vlgmr.msra.gmra.mxu0 %v5566_v29  ;;  %v6606_v29 = vld [vmem:[%s8560_s6 + $0x478] sm:$0xff]  }
 0x2fd   :  { %6012 = vmatpush3.bf16.msra.mxu0 %v6567_v30  ;;  %4935 = vmatprep.mubr.bf16.mxu0 %v5571_v37  ;;  %v5575_v30 = vcombine.high %v8114_v27, %v8114_v27  ;;  %v8135_v37 = vld [vmem:[#allocation5 + $0x28] sm:$0xff] }
 0x2fe   :  { %5958 = vmatpush3.bf16.msra.mxu1 %v6561_v11  ;;  %6013 = vmatprep.subr.bf16.mxu0 %v6574_v32  ;;  %v6601_v11 = vld [vmem:[%s8560_s6 + $0x300] sm:$0xff]   ;;  %v6607_v32 = vld [vmem:[%s8560_s6 + $0x438] sm:$0xff]  }
 0x2ff   :  { %5959 = vmatprep.subr.bf16.mxu1 %v6564_v0  ;;  %v5570_v0 = vcombine.low %v7998_v28, %v7998_v28  ;;  %v6611_v28 = vld [vmem:[%s8560_s6 + $0x4b0] sm:$0xff]  }
 0x301   :  { %6014 = vmatpush3.bf16.msra.mxu0 %v6575_v4  ;;  %v6614_v4 = vld [vmem:[%s8560_s6 + $0x4e8] sm:$0xff]  }
 0x302   :  { %5960 = vmatpush3.bf16.msra.mxu1 %v6565_v7  ;;  %6015 = vmatprep.subr.bf16.mxu0 %v6578_v43  ;;  %v6610_v7 = vld [vmem:[%s8560_s6 + $0x4f0] sm:$0xff]   ;;  %v6615_v43 = vld [vmem:[%s8560_s6 + $0x4a8] sm:$0xff]  }
 0x303   :  { %5989 = vmatprep.subr.bf16.mxu1 %v6570_v61  ;;  %v6612_v61 = vld [vmem:[%s8560_s6 + $0x470] sm:$0xff]  }
 0x305   :  { %4816 = vmatmul.mubr.bf16.vlgmr.msra.gmra.mxu1 %v5564_v42  ;;  %6016 = vmatpush3.bf16.msra.mxu0 %v6579_v47  ;;  %v6613_v42 = vld [vmem:[%s8560_s6 + $0x430] sm:$0xff]   ;;  %v6619_v47 = vld [vmem:[%s8560_s6 + $0x4a0] sm:$0xff]  }
 0x306   :  { %5990 = vmatpush3.bf16.msra.mxu1 %v6571_v34  ;;  %4895 = vmatprep.mubr.bf16.mxu1 %v5569_v44  ;;  %v5568_v34 = vcombine.low %v8019_v38, %v8019_v38  ;;  %v6618_v38 = vld [vmem:[%s8560_s6 + $0x4e0] sm:$0xff]   ;;  %v6616_v44 = vld [vmem:[%s8560_s6 + $0x468] sm:$0xff]  }
 0x307   :  { %5991 = vmatprep.subr.bf16.mxu1 %v6576_v40  ;;  %6017 = vmatprep.subr.bf16.mxu0 %v6582_v49  ;;  %v5573_v40 = vcombine.high %v8135_v37, %v8135_v37  ;;  %v2434_v49 = vld [vmem:[#allocation5 + $0x18] sm:$0x44] }
 0x309   :  { %6018 = vmatpush3.bf16.msra.mxu0 %v6583_v55  ;;  %v6623_v55 = vld [vmem:[%s8560_s6 + $0x498] sm:$0xff]  }
 0x30a   :  { %5992 = vmatpush3.bf16.msra.mxu1 %v6577_v46  ;;  %6019 = vmatprep.subr.bf16.mxu0 %v6586_v62  ;;  %v6617_v46 = vld [vmem:[%s8560_s6 + $0x428] sm:$0xff]   ;;  %v2411_v62 = vld [vmem:[#allocation4] sm:$0x88] }
 0x30b   :  { %5993 = vmatprep.subr.bf16.mxu1 %v6580_v48  ;;  %v2424_v48 = vld [vmem:[#allocation5 + $0x18] sm:$0x11]  ;;  %v5552_v2 = vrot.slane %v2411_v62, 9  ;;  %v6679_v62 = vld [vmem:[%s8560_s6 + $0x638] sm:$0xff]  }
 0x30c   :  { %v2425_v1 = vsel %vm7753_vm1, %v5553_v56, %v2424_v48  ;;  %v6668_v48 = vld [vmem:[%s8560_s6 + $0x548] sm:$0xff]   ;;  %v6682_v56 = vld [vmem:[%s8560_s6 + $0x6f0] sm:$0xff]  }
 0x30d   :  { %6020 = vmatpush3.bf16.msra.mxu0 %v6587_v39  ;;  %2426 = vst [vmem:[#allocation5 + $0x18] sm:$0x11] %v2425_v1  ;;  %2416 = vst [vmem:[#allocation5 + $0x68] sm:$0x44] %v5552_v2  ;;  %v6635_v39 = vld [vmem:[%s8560_s6 + $0x480] sm:$0xff]   ;;  %v6686_v2 = vld [vmem:[%s8560_s6 + $0x6e8] sm:$0xff]  }
 0x30e   :  { %5994 = vmatpush3.bf16.msra.mxu1 %v6581_v60  ;;  %6021 = vmatprep.subr.bf16.mxu0 %v6590_v19  ;;  %v2405_v60 = vld [vmem:[#allocation4] sm:$0x22] }
 0x30f   :  { %5995 = vmatprep.subr.bf16.mxu1 %v6584_v3  ;;  %v5551_v58 = vrot.slane %v2405_v60, 9  ;;  %v2435_v3 = vsel %vm7764_vm3, %v5554_v16, %v2434_v49  ;;  %v6638_v19 = vld [vmem:[%s8560_s6 + $0x5f8] sm:$0xff]   ;;  %v6672_v49 = vld [vmem:[%s8560_s6 + $0x540] sm:$0xff]   ;;  %v6683_v60 = vld [vmem:[%s8560_s6 + $0x6b0] sm:$0xff]  }
 0x310   :  { %2436 = vst [vmem:[#allocation5 + $0x18] sm:$0x44] %v2435_v3  ;;  %v8349_v16 = vld [vmem:[#allocation5 + $0x20] sm:$0xff] }
 0x311   :  { %6022 = vmatpush3.bf16.msra.mxu0 %v6591_v5  ;;  %2410 = vst [vmem:[#allocation5 + $0x68] sm:$0x11] %v5551_v58  ;;  %v6637_v5 = vld [vmem:[%s8560_s6 + $0x400] sm:$0xff]   ;;  %v6684_v58 = vld [vmem:[%s8560_s6 + $0x670] sm:$0xff]   ;;  %v5581_v3 = vcombine.high %v8349_v16, %v8349_v16 }
 0x312   :  { %5996 = vmatpush3.bf16.msra.mxu1 %v6585_v35  ;;  %6023 = vmatprep.subr.bf16.mxu0 %v6594_v63  ;;  %v6633_v35 = vld [vmem:[%s8560_s6 + $0x408] sm:$0xff]   ;;  %v6639_v63 = vld [vmem:[%s8560_s6 + $0x5b8] sm:$0xff]  }
 0x313   :  { %5997 = vmatprep.subr.bf16.mxu1 %v6588_v17  ;;  %v6636_v17 = vld [vmem:[%s8560_s6 + $0x440] sm:$0xff]  }
 0x315   :  { %6024 = vmatpush3.bf16.msra.mxu0 %v6595_v20 }
 0x316   :  { %5998 = vmatpush3.bf16.msra.mxu1 %v6589_v10  ;;  %6025 = vmatprep.subr.bf16.mxu0 %v6598_v12  ;;  %v8226_v10 = vld [vmem:[#allocation5 + $0x70] sm:$0xff]  ;;  %v6642_v12 = vld [vmem:[%s8560_s6 + $0x578] sm:$0xff]  }
 0x317   :  { %5999 = vmatprep.subr.bf16.mxu1 %v6592_v21  ;;  %v5574_v21 = vcombine.low %v8114_v27, %v8114_v27  ;;  %v5579_v20 = vcombine.high %v8226_v10, %v8226_v10 }
 0x319   :  { %6026 = vmatpush3.bf16.msra.mxu0 %v6599_v22  ;;  %v8247_v22 = vld [vmem:[#allocation5 + $0x58] sm:$0xff] }
 0x31a   :  { %6000 = vmatpush3.bf16.msra.mxu1 %v6593_v6  ;;  %6055 = vmatprep.subr.bf16.mxu0 %v6602_v23  ;;  %v6646_v6 = vld [vmem:[%s8560_s6 + $0x5f0] sm:$0xff]   ;;  %v5577_v27 = vcombine.high %v8247_v22, %v8247_v22  ;;  %v5576_v1 = vcombine.low %v8247_v22, %v8247_v22  ;;  %v6705_v22 = vld [vmem:[%s8560_s6 + $0x608] sm:$0xff]  }
 0x31b   :  { %6001 = vmatprep.subr.bf16.mxu1 %v6596_v13  ;;  %v6643_v13 = vld [vmem:[%s8560_s6 + $0x538] sm:$0xff]   ;;  %v6648_v23 = vld [vmem:[%s8560_s6 + $0x570] sm:$0xff]  }
 0x31c   :  { %4936 = vmatmul.mubr.bf16.vlgmr.msra.gmra.mxu0 %v5570_v0  ;;  %v6651_v0 = vld [vmem:[%s8560_s6 + $0x5a8] sm:$0xff]  }
 0x31d   :  { %6056 = vmatpush3.bf16.msra.mxu0 %v6603_v33  ;;  %5015 = vmatprep.mubr.bf16.mxu0 %v5575_v30  ;;  %v6649_v33 = vld [vmem:[%s8560_s6 + $0x530] sm:$0xff]   ;;  %v6652_v30 = vld [vmem:[%s8560_s6 + $0x568] sm:$0xff]  }
 0x31e   :  { %6002 = vmatpush3.bf16.msra.mxu1 %v6597_v18  ;;  %6057 = vmatprep.subr.bf16.mxu0 %v6610_v7  ;;  %v6647_v18 = vld [vmem:[%s8560_s6 + $0x5b0] sm:$0xff]   ;;  %v6654_v7 = vld [vmem:[%s8560_s6 + $0x5e0] sm:$0xff]  }
 0x31f   :  { %6003 = vmatprep.subr.bf16.mxu1 %v6600_v26  ;;  %v5572_v26 = vcombine.low %v8135_v37, %v8135_v37  ;;  %v6656_v37 = vld [vmem:[%s8560_s6 + $0x560] sm:$0xff]  }
 0x321   :  { %6058 = vmatpush3.bf16.msra.mxu0 %v6611_v28  ;;  %v6658_v28 = vld [vmem:[%s8560_s6 + $0x5d8] sm:$0xff]  }
 0x322   :  { %6004 = vmatpush3.bf16.msra.mxu1 %v6601_v11  ;;  %6059 = vmatprep.subr.bf16.mxu0 %v6614_v4  ;;  %v6650_v11 = vld [vmem:[%s8560_s6 + $0x5e8] sm:$0xff]   ;;  %v6662_v4 = vld [vmem:[%s8560_s6 + $0x5d0] sm:$0xff]  }
 0x323   :  { %6033 = vmatprep.subr.bf16.mxu1 %v6606_v29  ;;  %v6655_v29 = vld [vmem:[%s8560_s6 + $0x5a0] sm:$0xff]  }
 0x325   :  { %4896 = vmatmul.mubr.bf16.vlgmr.msra.gmra.mxu1 %v5568_v34  ;;  %6060 = vmatpush3.bf16.msra.mxu0 %v6615_v43  ;;  %v6657_v34 = vld [vmem:[%s8560_s6 + $0x520] sm:$0xff]   ;;  %v6661_v43 = vld [vmem:[%s8560_s6 + $0x518] sm:$0xff]  }
 0x326   :  { %6034 = vmatpush3.bf16.msra.mxu1 %v6607_v32  ;;  %4975 = vmatprep.mubr.bf16.mxu1 %v5573_v40  ;;  %v6653_v32 = vld [vmem:[%s8560_s6 + $0x528] sm:$0xff]   ;;  %v6660_v40 = vld [vmem:[%s8560_s6 + $0x558] sm:$0xff]  }
 0x327   :  { %6035 = vmatprep.subr.bf16.mxu1 %v6612_v61  ;;  %6061 = vmatprep.subr.bf16.mxu0 %v6618_v38  ;;  %v6659_v61 = vld [vmem:[%s8560_s6 + $0x598] sm:$0xff]   ;;  %v6666_v38 = vld [vmem:[%s8560_s6 + $0x5c8] sm:$0xff]  }
 0x329   :  { %6062 = vmatpush3.bf16.msra.mxu0 %v6619_v47  ;;  %v6665_v47 = vld [vmem:[%s8560_s6 + $0x510] sm:$0xff]  }
 0x32a   :  { %6036 = vmatpush3.bf16.msra.mxu1 %v6613_v42  ;;  %6063 = vmatprep.subr.bf16.mxu0 %v6622_v45  ;;  %v6663_v42 = vld [vmem:[%s8560_s6 + $0x590] sm:$0xff]   ;;  %v6671_v45 = vld [vmem:[%s8560_s6 + $0x580] sm:$0xff]  }
 0x32b   :  { %6037 = vmatprep.subr.bf16.mxu1 %v6616_v44  ;;  %v6664_v44 = vld [vmem:[%s8560_s6 + $0x550] sm:$0xff]  }
 0x32d   :  { %6064 = vmatpush3.bf16.msra.mxu0 %v6623_v55  ;;  %v6673_v55 = vld [vmem:[%s8560_s6 + $0x500] sm:$0xff]  }
 0x32e   :  { %6038 = vmatpush3.bf16.msra.mxu1 %v6617_v46  ;;  %6065 = vmatprep.subr.bf16.mxu0 %v6626_v54  ;;  %v6667_v46 = vld [vmem:[%s8560_s6 + $0x588] sm:$0xff]   ;;  %v6678_v54 = vld [vmem:[%s8560_s6 + $0x678] sm:$0xff]  }
 0x32f   :  { %6039 = vmatprep.subr.bf16.mxu1 %v6620_v36  ;;  %v8331_v36 = vld [vmem:[#allocation5 + $0x78] sm:$0xff] }
 0x331   :  { %6066 = vmatpush3.bf16.msra.mxu0 %v6627_v15  ;;  %v6685_v15 = vld [vmem:[%s8560_s6 + $0x630] sm:$0xff]  }
 0x332   :  { %6040 = vmatpush3.bf16.msra.mxu1 %v6621_v53  ;;  %6067 = vmatprep.subr.bf16.mxu0 %v6630_v9  ;;  %v5578_v53 = vcombine.low %v8226_v10, %v8226_v10  ;;  %v6690_v9 = vld [vmem:[%s8560_s6 + $0x6e0] sm:$0xff]   ;;  %v6697_v10 = vld [vmem:[%s8560_s6 + $0x618] sm:$0xff]  }
 0x333   :  { %6041 = vmatprep.subr.bf16.mxu1 %v6624_v57  ;;  %v5583_v57 = vcombine.high %v8331_v36, %v8331_v36 }
 0x335   :  { %6068 = vmatpush3.bf16.msra.mxu0 %v6631_v31  ;;  %v6689_v31 = vld [vmem:[%s8560_s6 + $0x628] sm:$0xff]  }
 0x336   :  { %6042 = vmatpush3.bf16.msra.mxu1 %v6625_v8  ;;  %6069 = vmatprep.subr.bf16.mxu0 %v6634_v41  ;;  %v6687_v8 = vld [vmem:[%s8560_s6 + $0x6a8] sm:$0xff]   ;;  %v6694_v41 = vld [vmem:[%s8560_s6 + $0x6d8] sm:$0xff]  }
 0x337   :  { %6043 = vmatprep.subr.bf16.mxu1 %v6628_v24  ;;  %v6688_v24 = vld [vmem:[%s8560_s6 + $0x668] sm:$0xff]  }
 0x339   :  { %6070 = vmatpush3.bf16.msra.mxu0 %v6635_v39  ;;  %v6693_v39 = vld [vmem:[%s8560_s6 + $0x620] sm:$0xff]  }
 0x33a   :  { %6044 = vmatpush3.bf16.msra.mxu1 %v6629_v51  ;;  %6099 = vmatprep.subr.bf16.mxu0 %v6638_v19  ;;  %v6691_v51 = vld [vmem:[%s8560_s6 + $0x6a0] sm:$0xff]   ;;  %v6698_v19 = vld [vmem:[%s8560_s6 + $0x6d0] sm:$0xff]  }
 0x33b   :  { %6045 = vmatprep.subr.bf16.mxu1 %v6632_v14  ;;  %v6692_v14 = vld [vmem:[%s8560_s6 + $0x660] sm:$0xff]  }
 0x33c   :  { %5016 = vmatmul.mubr.bf16.vlgmr.msra.gmra.mxu0 %v5574_v21  ;;  %v6700_v21 = vld [vmem:[%s8560_s6 + $0x650] sm:$0xff]  }
 0x33d   :  { %6100 = vmatpush3.bf16.msra.mxu0 %v6639_v63  ;;  %5095 = vmatprep.mubr.bf16.mxu0 %v5579_v20  ;;  %v6702_v63 = vld [vmem:[%s8560_s6 + $0x6c8] sm:$0xff]   ;;  %v6701_v20 = vld [vmem:[%s8560_s6 + $0x610] sm:$0xff]  }
 0x33e   :  { %6046 = vmatpush3.bf16.msra.mxu1 %v6633_v35  ;;  %6101 = vmatprep.subr.bf16.mxu0 %v6646_v6  ;;  %v6695_v35 = vld [vmem:[%s8560_s6 + $0x698] sm:$0xff]   ;;  %v6703_v6 = vld [vmem:[%s8560_s6 + $0x688] sm:$0xff]  }
 0x33f   :  { %6047 = vmatprep.subr.bf16.mxu1 %v6636_v17  ;;  %v6696_v17 = vld [vmem:[%s8560_s6 + $0x658] sm:$0xff]  }
 0x341   :  { %6102 = vmatpush3.bf16.msra.mxu0 %v6647_v18  ;;  %v6707_v18 = vld [vmem:[%s8560_s6 + $0x680] sm:$0xff]  }
 0x342   :  { %6048 = vmatpush3.bf16.msra.mxu1 %v6637_v5  ;;  %6103 = vmatprep.subr.bf16.mxu0 %v6650_v11  ;;  %v6699_v5 = vld [vmem:[%s8560_s6 + $0x690] sm:$0xff]  }
 0x343   :  { %6077 = vmatprep.subr.bf16.mxu1 %v6642_v12  ;;  %v6706_v12 = vld [vmem:[%s8560_s6 + $0x6c0] sm:$0xff]   ;;  %v8439_v11 = vld [vmem:[#allocation5 + $0x18] sm:$0xff] }
 0x345   :  { %4976 = vmatmul.mubr.bf16.vlgmr.msra.gmra.mxu1 %v5572_v26  ;;  %6104 = vmatpush3.bf16.msra.mxu0 %v6651_v0  ;;  %v6708_v26 = vld [vmem:[%s8560_s6 + $0x640] sm:$0xff]  }
 0x346   :  { %6078 = vmatpush3.bf16.msra.mxu1 %v6643_v13  ;;  %5055 = vmatprep.mubr.bf16.mxu1 %v5577_v27  ;;  %v6704_v13 = vld [vmem:[%s8560_s6 + $0x648] sm:$0xff]   ;;  %v6711_v27 = vld [vmem:[%s8560_s6 + $0x7b8] sm:$0xff]   ;;  %v6709_v0 = vld [vmem:[%s8560_s6 + $0x600] sm:$0xff]  }
 0x347   :  { %6079 = vmatprep.subr.bf16.mxu1 %v6648_v23  ;;  %6105 = vmatprep.subr.bf16.mxu0 %v6654_v7  ;;  %v6710_v23 = vld [vmem:[%s8560_s6 + $0x7f8] sm:$0xff]   ;;  %v6718_v7 = vld [vmem:[%s8560_s6 + $0x7f0] sm:$0xff]  }
 0x349   :  { %6106 = vmatpush3.bf16.msra.mxu0 %v6655_v29  ;;  %v6714_v29 = vld [vmem:[%s8560_s6 + $0x778] sm:$0xff]  }
 0x34a   :  { %6080 = vmatpush3.bf16.msra.mxu1 %v6649_v33  ;;  %6107 = vmatprep.subr.bf16.mxu0 %v6658_v28  ;;  %v5582_v33 = vcombine.low %v8331_v36, %v8331_v36  ;;  %v8457_v28 = vld [vmem:[#allocation5 + $0x68] sm:$0xff] }
 0x34b   :  { %6081 = vmatprep.subr.bf16.mxu1 %v6652_v30  ;;  %v5587_v30 = vcombine.high %v8439_v11, %v8439_v11 }
 0x34d   :  { %6108 = vmatpush3.bf16.msra.mxu0 %v6659_v61 }
 0x34e   :  { %6082 = vmatpush3.bf16.msra.mxu1 %v6653_v32  ;;  %6109 = vmatprep.subr.bf16.mxu0 %v6662_v4  ;;  %v5580_v4 = vcombine.low %v8349_v16, %v8349_v16  ;;  %v6728_v16 = vld [vmem:[%s8560_s6 + $0x760] sm:$0xff]  }
 0x34f   :  { %6083 = vmatprep.subr.bf16.mxu1 %v6656_v37  ;;  %v6719_v37 = vld [vmem:[%s8560_s6 + $0x7b0] sm:$0xff]  }
 0x351   :  { %6110 = vmatpush3.bf16.msra.mxu0 %v6663_v42  ;;  %v6720_v42 = vld [vmem:[%s8560_s6 + $0x770] sm:$0xff]  }
 0x352   :  { %6084 = vmatpush3.bf16.msra.mxu1 %v6657_v34  ;;  %6111 = vmatprep.subr.bf16.mxu0 %v6666_v38  ;;  %v6715_v34 = vld [vmem:[%s8560_s6 + $0x738] sm:$0xff]   ;;  %v5585_v38 = vcombine.high %v8457_v28, %v8457_v28 }
 0x353   :  { %6085 = vmatprep.subr.bf16.mxu1 %v6660_v40 }
 0x355   :  { %6112 = vmatpush3.bf16.msra.mxu0 %v6667_v46 }
 0x356   :  { %6086 = vmatpush3.bf16.msra.mxu1 %v6661_v43  ;;  %6113 = vmatprep.subr.bf16.mxu0 %v6670_v25  ;;  %v6722_v43 = vld [vmem:[%s8560_s6 + $0x7e8] sm:$0xff]  }
 0x357   :  { %6087 = vmatprep.subr.bf16.mxu1 %v6664_v44 }
 0x359   :  { %6114 = vmatpush3.bf16.msra.mxu0 %v6671_v45  ;;  %v6726_v45 = vld [vmem:[%s8560_s6 + $0x7e0] sm:$0xff]  }
 0x35a   :  { %6088 = vmatpush3.bf16.msra.mxu1 %v6665_v47  ;;  %6143 = vmatprep.subr.bf16.mxu0 %v6674_v59  ;;  %v6723_v47 = vld [vmem:[%s8560_s6 + $0x7a8] sm:$0xff]   ;;  %v2973_v59 = vpop.permute.xlu0 %2972 }
 0x35b   :  { %6089 = vmatprep.subr.bf16.mxu1 %v6668_v48  ;;  %v6721_v48 = vld [vmem:[%s8560_s6 + $0x730] sm:$0xff]  }
 0x35c   :  { %5096 = vmatmul.mubr.bf16.vlgmr.msra.gmra.mxu0 %v5578_v53  ;;  %v6727_v53 = vld [vmem:[%s8560_s6 + $0x7a0] sm:$0xff]  }
 0x35d   :  { %6144 = vmatpush3.bf16.msra.mxu0 %v6675_v52  ;;  %5175 = vmatprep.mubr.bf16.mxu0 %v5583_v57  ;;  %v6730_v57 = vld [vmem:[%s8560_s6 + $0x7d8] sm:$0xff]  }
 0x35e   :  { %6090 = vmatpush3.bf16.msra.mxu1 %v6669_v50  ;;  %6145 = vmatprep.subr.bf16.mxu0 %v6682_v56  ;;  %v6725_v56 = vld [vmem:[%s8560_s6 + $0x728] sm:$0xff]  }
 0x35f   :  { %6091 = vmatprep.subr.bf16.mxu1 %v6672_v49  ;;  %v6724_v49 = vld [vmem:[%s8560_s6 + $0x768] sm:$0xff]  }
 0x361   :  { %6146 = vmatpush3.bf16.msra.mxu0 %v6683_v60 }
 0x362   :  { %6092 = vmatpush3.bf16.msra.mxu1 %v6673_v55  ;;  %6147 = vmatprep.subr.bf16.mxu0 %v6686_v2  ;;  %v6732_v2 = vld [vmem:[%s8560_s6 + $0x758] sm:$0xff]  }
 0x363   :  { %6121 = vmatprep.subr.bf16.mxu1 %v6678_v54 }
 0x365   :  { %5056 = vmatmul.mubr.bf16.vlgmr.msra.gmra.mxu1 %v5576_v1  ;;  %6148 = vmatpush3.bf16.msra.mxu0 %v6687_v8  ;;  %v6729_v1 = vld [vmem:[%s8560_s6 + $0x720] sm:$0xff]   ;;  %v6733_v8 = vld [vmem:[%s8560_s6 + $0x718] sm:$0xff]  }
 0x366   :  { %6122 = vmatpush3.bf16.msra.mxu1 %v6679_v62  ;;  %5135 = vmatprep.mubr.bf16.mxu1 %v5581_v3  ;;  %v6731_v62 = vld [vmem:[%s8560_s6 + $0x798] sm:$0xff]   ;;  %v6735_v3 = vld [vmem:[%s8560_s6 + $0x790] sm:$0xff]  }
 0x367   :  { %6123 = vmatprep.subr.bf16.mxu1 %v6684_v58  ;;  %6149 = vmatprep.subr.bf16.mxu0 %v6690_v9  ;;  %v6734_v58 = vld [vmem:[%s8560_s6 + $0x7d0] sm:$0xff]  }
 0x368   :  { %v6736_v9 = vld [vmem:[%s8560_s6 + $0x750] sm:$0xff]  }
 0x369   :  { %6150 = vmatpush3.bf16.msra.mxu0 %v6691_v51  ;;  %v6737_v51 = vld [vmem:[%s8560_s6 + $0x710] sm:$0xff]  }
 0x36a   :  { %6124 = vmatpush3.bf16.msra.mxu1 %v6685_v15  ;;  %6151 = vmatprep.subr.bf16.mxu0 %v6694_v41  ;;  %v6738_v15 = vld [vmem:[%s8560_s6 + $0x7c8] sm:$0xff]  }
 0x36b   :  { %6125 = vmatprep.subr.bf16.mxu1 %v6688_v24  ;;  %v6739_v24 = vld [vmem:[%s8560_s6 + $0x788] sm:$0xff]  }
 0x36c   :  { %v6740_v41 = vld [vmem:[%s8560_s6 + $0x748] sm:$0xff]  }
 0x36d   :  { %6152 = vmatpush3.bf16.msra.mxu0 %v6695_v35  ;;  %v6741_v35 = vld [vmem:[%s8560_s6 + $0x708] sm:$0xff]  }
 0x36e   :  { %6126 = vmatpush3.bf16.msra.mxu1 %v6689_v31  ;;  %6153 = vmatprep.subr.bf16.mxu0 %v6698_v19  ;;  %v6742_v31 = vld [vmem:[%s8560_s6 + $0x7c0] sm:$0xff]   ;;  %v5586_v19 = vcombine.low %v8439_v11, %v8439_v11 }
 0x36f   :  { %6127 = vmatprep.subr.bf16.mxu1 %v6692_v14  ;;  %v6743_v14 = vld [vmem:[%s8560_s6 + $0x780] sm:$0xff]  }
 0x371   :  { %6154 = vmatpush3.bf16.msra.mxu0 %v6699_v5 }
 0x372   :  { %6128 = vmatpush3.bf16.msra.mxu1 %v6693_v39  ;;  %6155 = vmatprep.subr.bf16.mxu0 %v6702_v63  ;;  %v6744_v39 = vld [vmem:[%s8560_s6 + $0x740] sm:$0xff]   ;;  %v5584_v63 = vcombine.low %v8457_v28, %v8457_v28 }
 0x373   :  { %6129 = vmatprep.subr.bf16.mxu1 %v6696_v17  ;;  %v6745_v17 = vld [vmem:[%s8560_s6 + $0x700] sm:$0xff]  }
 0x375   :  { %6156 = vmatpush3.bf16.msra.mxu0 %v6703_v6 }
 0x376   :  { %6130 = vmatpush3.bf16.msra.mxu1 %v6697_v10  ;;  %6157 = vmatprep.subr.bf16.mxu0 %v6706_v12 }
 0x377   :  { %6131 = vmatprep.subr.bf16.mxu1 %v6700_v21 }
 0x379   :  { %6158 = vmatpush3.bf16.msra.mxu0 %v6707_v18 }
 0x37a   :  { %6132 = vmatpush3.bf16.msra.mxu1 %v6701_v20  ;;  %6187 = vmatprep.subr.bf16.mxu0 %v6710_v23 }
 0x37b   :  { %6133 = vmatprep.subr.bf16.mxu1 %v6704_v13  ;;  %v5895_v32 = vpop.f32.mrf.mxu0 }
 0x37c   :  { %5176 = vmatmul.mubr.bf16.vlgmr.msra.gmra.mxu0 %v5582_v33 }
 0x37d   :  { %6188 = vmatpush3.bf16.msra.mxu0 %v6711_v27  ;;  %5255 = vmatprep.mubr.bf16.mxu0 %v5587_v30  ;;  %v5896_v61 = vpop.f32.mrf.mxu0 }
 0x37e   :  { %6134 = vmatpush3.bf16.msra.mxu1 %v6705_v22  ;;  %6189 = vmatprep.subr.bf16.mxu0 %v6718_v7  ;;  %v5897_v40 = vadd.f32 %v5896_v61, %v5895_v32 }
 0x37f   :  { %6135 = vmatprep.subr.bf16.mxu1 %v6708_v26  ;;  %v5898_v44 = vpop.f32.mrf.mxu0 }
 0x381   :  { %6190 = vmatpush3.bf16.msra.mxu0 %v6719_v37  ;;  %v5899_v25 = vpop.f32.mrf.mxu0 }
 0x382   :  { %6136 = vmatpush3.bf16.msra.mxu1 %v6709_v0  ;;  %6191 = vmatprep.subr.bf16.mxu0 %v6722_v43 }
 0x383   :  { %6165 = vmatprep.subr.bf16.mxu1 %v6714_v29 }
 0x385   :  { %5136 = vmatmul.mubr.bf16.vlgmr.msra.gmra.mxu1 %v5580_v4  ;;  %v5873_v46 = vpop.f32.mrf.mxu1  ;;  %6192 = vmatpush3.bf16.msra.mxu0 %v6723_v47 }
 0x386   :  { %6166 = vmatpush3.bf16.msra.mxu1 %v6715_v34  ;;  %5215 = vmatprep.mubr.bf16.mxu1 %v5585_v38 }
 0x387   :  { %v5874_v50 = vpop.f32.mrf.mxu1  ;;  %6167 = vmatprep.subr.bf16.mxu1 %v6720_v42  ;;  %6193 = vmatprep.subr.bf16.mxu0 %v6726_v45 }
 0x388   :  { %v5875_v36 = vadd.f32 %v5874_v50, %v5873_v46 }
 0x389   :  { %v5876_v52 = vpop.f32.mrf.mxu1  ;;  %6194 = vmatpush3.bf16.msra.mxu0 %v6727_v53 }
 0x38a   :  { %v4658_v55 = vadd.f32 %v5875_v36, %v2973_v59  ;;  %6168 = vmatpush3.bf16.msra.mxu1 %v6721_v48  ;;  %6195 = vmatprep.subr.bf16.mxu0 %v6730_v57  ;;  %v6755_v36 = vmov 0.0  }
 0x38b   :  { %v5877_v54 = vpop.f32.mrf.mxu1  ;;  %6169 = vmatprep.subr.bf16.mxu1 %v6724_v49 }
 0x38c   :  { %v4698_v60 = vadd.f32 %v5897_v40, %v4658_v55 }
 0x38d   :  { %6196 = vmatpush3.bf16.msra.mxu0 %v6731_v62 }
 0x38e   :  { %6170 = vmatpush3.bf16.msra.mxu1 %v6725_v56  ;;  %6197 = vmatprep.subr.bf16.mxu0 %v6734_v58 }
 0x38f   :  { %6171 = vmatprep.subr.bf16.mxu1 %v6728_v16 }
 0x391   :  { %6198 = vmatpush3.bf16.msra.mxu0 %v6735_v3 }
 0x392   :  { %6172 = vmatpush3.bf16.msra.mxu1 %v6729_v1  ;;  %6199 = vmatprep.subr.bf16.mxu0 %v6738_v15 }
 0x393   :  { %6173 = vmatprep.subr.bf16.mxu1 %v6732_v2 }
 0x395   :  { %6200 = vmatpush3.bf16.msra.mxu0 %v6739_v24 }
 0x396   :  { %6174 = vmatpush3.bf16.msra.mxu1 %v6733_v8  ;;  %6201 = vmatprep.subr.bf16.mxu0 %v6742_v31 }
 0x397   :  { %6175 = vmatprep.subr.bf16.mxu1 %v6736_v9 }
 0x399   :  { %6202 = vmatpush3.bf16.msra.mxu0 %v6743_v14 }
 0x39a   :  { %6176 = vmatpush3.bf16.msra.mxu1 %v6737_v51 }
 0x39b   :  { %6177 = vmatprep.subr.bf16.mxu1 %v6740_v41 }
 0x39c   :  { %v5939_v5 = vpop.f32.mrf.mxu0  ;;  %5256 = vmatmul.mubr.bf16.vlgmr.msra.gmra.mxu0 %v5586_v19 }
 0x39e   :  { %6178 = vmatpush3.bf16.msra.mxu1 %v6741_v35  ;;  %v5940_v10 = vpop.f32.mrf.mxu0 }
 0x39f   :  { %6179 = vmatprep.subr.bf16.mxu1 %v6744_v39  ;;  %v5941_v21 = vadd.f32 %v5940_v10, %v5939_v5 }
 0x3a0   :  { %v5942_v6 = vpop.f32.mrf.mxu0 }
 0x3a2   :  { %6180 = vmatpush3.bf16.msra.mxu1 %v6745_v17  ;;  %v5943_v12 = vpop.f32.mrf.mxu0 }
 0x3a3   :  { %6211 = vmatprep.subr.mxu1 %v6755_v36 }
 0x3a5   :  { %v5917_v20 = vpop.f32.mrf.mxu1  ;;  %5216 = vmatmul.mubr.bf16.vlgmr.msra.gmra.mxu1 %v5584_v63 }
 0x3a6   :  { %6213 = vmatprep.mubr.msk.f32.mxu1 %vm6756_vm14, %v6755_v36 }
 0x3a7   :  { %v5918_v13 = vpop.f32.mrf.mxu1 }
 0x3a8   :  { %v5919_v18 = vadd.f32 %v5918_v13, %v5917_v20 }
 0x3a9   :  { %v5920_v22 = vpop.f32.mrf.mxu1 }
 0x3aa   :  { %v4738_v23 = vadd.f32 %v5919_v18, %v4698_v60 }
 0x3ab   :  { %v5921_v26 = vpop.f32.mrf.mxu1 }
 0x3ac   :  { %v4778_v11 = vadd.f32 %v5941_v21, %v4738_v23 }
 0x3bc   :  { %v5983_v27 = vpop.f32.mrf.mxu0 }
 0x3be   :  { %v5984_v33 = vpop.f32.mrf.mxu0 }
 0x3bf   :  { %v5985_v0 = vadd.f32 %v5984_v33, %v5983_v27 }
 0x3c0   :  { %v5986_v7 = vpop.f32.mrf.mxu0 }
 0x3c2   :  { %v5987_v29 = vpop.f32.mrf.mxu0 }
 0x3c5   :  { %v5961_v30 = vpop.f32.mrf.mxu1 }
 0x3c7   :  { %v5962_v32 = vpop.f32.mrf.mxu1 }
 0x3c8   :  { %v5963_v37 = vadd.f32 %v5962_v32, %v5961_v30 }
 0x3c9   :  { %v5964_v28 = vpop.f32.mrf.mxu1 }
 0x3ca   :  { %v4818_v61 = vadd.f32 %v5963_v37, %v4778_v11 }
 0x3cb   :  { %v5965_v34 = vpop.f32.mrf.mxu1 }
 0x3cc   :  { %v4858_v4 = vadd.f32 %v5985_v0, %v4818_v61 }
 0x3dc   :  { %v6027_v40 = vpop.f32.mrf.mxu0 }
 0x3de   :  { %v6028_v42 = vpop.f32.mrf.mxu0 }
 0x3df   :  { %v6029_v43 = vadd.f32 %v6028_v42, %v6027_v40  ;;  %v5269_v40 = vld [vmem:[%s8565_s8] sm:$0x3] }
 0x3e0   :  { %v6030_v38 = vpop.f32.mrf.mxu0 }
 0x3e2   :  { %v6031_v46 = vpop.f32.mrf.mxu0 }
 0x3e5   :  { %v6005_v44 = vpop.f32.mrf.mxu1 }
 0x3e7   :  { %v6006_v47 = vpop.f32.mrf.mxu1 }
 0x3e8   :  { %v6007_v25 = vadd.f32 %v6006_v47, %v6005_v44 }
 0x3e9   :  { %v6008_v48 = vpop.f32.mrf.mxu1 }
 0x3ea   :  { %v4898_v45 = vadd.f32 %v6007_v25, %v4858_v4 }
 0x3eb   :  { %v6009_v50 = vpop.f32.mrf.mxu1 }
 0x3ec   :  { %v4938_v59 = vadd.f32 %v6029_v43, %v4898_v45 }
 0x3fc   :  { %v6071_v49 = vpop.f32.mrf.mxu0 }
 0x3fe   :  { %v6072_v52 = vpop.f32.mrf.mxu0 }
 0x3ff   :  { %v6073_v53 = vadd.f32 %v6072_v52, %v6071_v49 }
 0x400   :  { %v6074_v55 = vpop.f32.mrf.mxu0 }
 0x402   :  { %v6075_v57 = vpop.f32.mrf.mxu0 }
 0x405   :  { %v6049_v56 = vpop.f32.mrf.mxu1 }
 0x407   :  { %v6050_v54 = vpop.f32.mrf.mxu1 }
 0x408   :  { %v6051_v16 = vadd.f32 %v6050_v54, %v6049_v56 }
 0x409   :  { %v6052_v60 = vpop.f32.mrf.mxu1 }
 0x40a   :  { %v4978_v62 = vadd.f32 %v6051_v16, %v4938_v59 }
 0x40b   :  { %v6053_v1 = vpop.f32.mrf.mxu1 }
 0x40c   :  { %v5018_v58 = vadd.f32 %v6073_v53, %v4978_v62 }
 0x41c   :  { %v6115_v2 = vpop.f32.mrf.mxu0 }
 0x41e   :  { %v6116_v3 = vpop.f32.mrf.mxu0 }
 0x41f   :  { %v6117_v41 = vadd.f32 %v6116_v3, %v6115_v2 }
 0x420   :  { %v6118_v8 = vpop.f32.mrf.mxu0 }
 0x422   :  { %v6119_v9 = vpop.f32.mrf.mxu0 }
 0x425   :  { %v6093_v15 = vpop.f32.mrf.mxu1 }
 0x427   :  { %v6094_v24 = vpop.f32.mrf.mxu1 }
 0x428   :  { %v6095_v51 = vadd.f32 %v6094_v24, %v6093_v15 }
 0x429   :  { %v6096_v31 = vpop.f32.mrf.mxu1 }
 0x42a   :  { %v5058_v14 = vadd.f32 %v6095_v51, %v5018_v58 }
 0x42b   :  { %v6097_v35 = vpop.f32.mrf.mxu1 }
 0x42c   :  { %v5098_v39 = vadd.f32 %v6117_v41, %v5058_v14 }
 0x43c   :  { %v6159_v19 = vpop.f32.mrf.mxu0 }
 0x43e   :  { %v6160_v17 = vpop.f32.mrf.mxu0 }
 0x43f   :  { %v6161_v11 = vadd.f32 %v6160_v17, %v6159_v19 }
 0x440   :  { %v6162_v5 = vpop.f32.mrf.mxu0 }
 0x442   :  { %v6163_v63 = vpop.f32.mrf.mxu0 }
 0x445   :  { %v6137_v10 = vpop.f32.mrf.mxu1 }
 0x447   :  { %v6138_v21 = vpop.f32.mrf.mxu1 }
 0x448   :  { %v6139_v12 = vadd.f32 %v6138_v21, %v6137_v10 }
 0x449   :  { %v6140_v6 = vpop.f32.mrf.mxu1 }
 0x44a   :  { %v5138_v22 = vadd.f32 %v6139_v12, %v5098_v39 }
 0x44b   :  { %v6141_v20 = vpop.f32.mrf.mxu1 }
 0x44c   :  { %v5178_v0 = vadd.f32 %v6161_v11, %v5138_v22 }
 0x45c   :  { %v6203_v13 = vpop.f32.mrf.mxu0 }
 0x45e   :  { %v6204_v18 = vpop.f32.mrf.mxu0 }
 0x45f   :  { %v6205_v29 = vadd.f32 %v6204_v18, %v6203_v13 }
 0x460   :  { %v6206_v23 = vpop.f32.mrf.mxu0 }
 0x462   :  { %v6207_v27 = vpop.f32.mrf.mxu0 }
 0x465   :  { %v6181_v26 = vpop.f32.mrf.mxu1 }
 0x467   :  { %v6182_v33 = vpop.f32.mrf.mxu1 }
 0x468   :  { %v6183_v7 = vadd.f32 %v6182_v33, %v6181_v26 }
 0x469   :  { %v6184_v30 = vpop.f32.mrf.mxu1 }
 0x46a   :  { %v5218_v32 = vadd.f32 %v6183_v7, %v5178_v0 }
 0x46b   :  { %v6185_v37 = vpop.f32.mrf.mxu1 }
 0x46c   :  { %v5258_v28 = vadd.f32 %v6205_v29, %v5218_v32 }
 0x46e   :  { %v5844_v61 = vmul.f32 -1.442695, %v5258_v28 }
 0x470   :  { %6750 = vpow2.f32 %v5844_v61 }
 0x47d   :  { %v6751_v34 = vpop.eup %6750 }
 0x47e   :  { %v5266_v4 = vadd.f32 1.0, %v6751_v34 }
 0x480   :  { %6752 = vrcp.f32 %v5266_v4 }
 0x48d   :  { %v6753_v42 = vpop.eup %6752 }
 0x48e   :  { %6212 = vmatpush3.msra.mxu1 %v6753_v42 }
 0x48f   :  { %6214 = vmatmul.mubr.msk.f32.vlgmr.msra.gmra.mxu1 %vm5270_vm15, %v5269_v40 }
 0x54f   :  { %v5340_v43 = vpop.f32.mrf.mxu1 }
 0x550   :  { %5345 = vst.msk [vmem:[%s8566_s9] sm:$0x3] %vm5344_vm12, %v5340_v43 }
 0x551   :  { %v6215_v38 = vpop.f32.mrf.mxu1 }

</bundles_post_ra>
